<compile_context>
chip_gen: v7x
topology: tpu7x:2x2x1
jax: 0.10.0
libtpu: 0.0.40
codegen_flags: <defaults>
</compile_context>

<pallas_src>
import jax
import jax.numpy as jnp
from jax.experimental import pallas as pl
from jax.experimental.pallas import tpu as pltpu

C = 3          # EnhanceNetwork(channels=3): every conv is 3 -> 3 channels
K = 3          # 3x3 kernels, stride 1, padding 1
BN_EPS = 1e-5
LANE = 128     # TPU vreg lane width


def _make_kernel(H, L, W):
    """Kernel for blocks of shape (1, C, H, L); the lane axis L packs samples of
    width W side by side (plus zero lane padding up to a 128-multiple)."""

    def shifts9(plane, m_dx, m_dy):
        # 9 shifted copies of the (H, L) plane implementing per-sample zero padding,
        # indexed by t = ky*3 + kx (ky, kx in 0..2).  Shifts use pltpu.roll (XLU slot,
        # otherwise idle here) instead of unaligned VMEM slices; wrap-around data is
        # squashed with precomputed boundary masks.
        cols = {0: plane}
        for dx in (-1, 1):
            q = pltpu.roll(plane, shift=(-dx) % L, axis=1)      # q[w] = plane[w + dx]
            cols[dx] = jnp.where(m_dx[dx], q, 0.0)
        out = []
        for dy in (-1, 0, 1):
            for dx in (-1, 0, 1):
                q = cols[dx]
                if dy != 0:
                    q = pltpu.roll(q, shift=(-dy) % H, axis=0)  # q[h] = cols[h + dy]
                    q = jnp.where(m_dy[dy], q, 0.0)
                out.append(q)
        return out

    def conv3x3(src_list, w_ref, b_ref, m_dx, m_dy):
        # src_list: C planes of (H, L); w_ref: SMEM (C*C*9,) flattened OIHW; b_ref: SMEM (C,)
        sh = [shifts9(p, m_dx, m_dy) for p in src_list]
        outs = []
        for co in range(C):
            acc = None
            for ci in range(C):
                for t in range(K * K):
                    term = w_ref[(co * C + ci) * (K * K) + t] * sh[ci][t]
                    acc = term if acc is None else acc + term
            outs.append(acc + b_ref[co])        # scalar bias add, no full-tile broadcast
        return outs

    def kernel(x_ref, w1_ref, b1_ref, w2_ref, b2_ref, w3_ref, b3_ref,
               i_ref, r_ref):
        x = x_ref[0]                            # (C, H, L) float32

        # Boundary masks: built once per grid step, reused by all three convs.
        col = jax.lax.broadcasted_iota(jnp.int32, (H, L), 1) % W
        row = jax.lax.broadcasted_iota(jnp.int32, (H, L), 0)
        m_dx = {-1: col != 0, 1: col != W - 1}
        m_dy = {-1: row != 0, 1: row != H - 1}

        xs = [x[ci] for ci in range(C)]

        # in_conv: Conv2d + (folded) BatchNorm2d + ReLU
        fea = [jnp.maximum(v, 0.0)
               for v in conv3x3(xs, w1_ref, b1_ref, m_dx, m_dy)]
        # residual block (layers=1): fea = fea + ReLU(BN(Conv(fea)))
        fea = [f + jnp.maximum(v, 0.0)
               for f, v in zip(fea, conv3x3(fea, w2_ref, b2_ref, m_dx, m_dy))]
        # out_conv: Conv2d + Sigmoid
        zs = conv3x3(fea, w3_ref, b3_ref, m_dx, m_dy)
        out = jnp.stack([1.0 / (1.0 + jnp.exp(-z)) for z in zs], axis=0)

        illu = jnp.clip(out + x, 1e-4, 1.0)     # i  (EnhanceNetwork output)
        i_ref[0] = illu
        r_ref[0] = jnp.clip(x / illu, 0.0, 1.0) # r  (Finetunemodel output)

    return kernel


def finetunemodel_forward(x, params):
    """x: (B, 3, H, W) float32; params: BN-folded, flattened conv weights/biases."""
    B, Cin, H, W = x.shape
    assert Cin == C
    x = x.astype(jnp.float32)
    w1, b1, w2, b2, w3, b3 = params

    # Pack as many samples per grid step as fit in 128 lanes (amortizes per-step
    # overhead and makes stores lane-dense); keep Bg a divisor of B.
    max_pack = max(1, LANE // W)
    Bg = 1
    for d in range(min(B, max_pack), 0, -1):
        if B % d == 0:
            Bg = d
            break
    G = B // Bg                     # grid size; grows with B (feeds both TCs on v7x)
    L0 = Bg * W
    L = ((L0 + LANE - 1) // LANE) * LANE

    # Layout plumbing only: (B,C,H,W) -> (G,C,H,Bg*W), zero-pad lanes to a 128-multiple.
    xt = x.reshape(G, Bg, C, H, W).transpose(0, 2, 3, 1, 4).reshape(G, C, H, L0)
    if L != L0:
        xt = jnp.pad(xt, ((0, 0), (0, 0), (0, 0), (0, L - L0)))

    smem = pl.BlockSpec(memory_space=pltpu.MemorySpace.SMEM)
    blk = pl.BlockSpec((1, C, H, L), lambda g: (g, 0, 0, 0))

    i_t, r_t = pl.pallas_call(
        _make_kernel(H, L, W),
        out_shape=(jax.ShapeDtypeStruct((G, C, H, L), jnp.float32),
                   jax.ShapeDtypeStruct((G, C, H, L), jnp.float32)),
        grid=(G,),
        in_specs=[
            blk,                     # packed input, single HBM read
            smem, smem,              # conv1 (BN-folded) w, b
            smem, smem,              # conv2 (BN-folded) w, b
            smem, smem,              # out conv w, b
        ],
        out_specs=(blk, blk),
        compiler_params=pltpu.CompilerParams(
            dimension_semantics=("parallel",),
            # above the v5e/v6e scoped defaults, within v7x's 64 MiB physical VMEM
            vmem_limit_bytes=32 * 1024 * 1024),
    )(xt, w1, b1, w2, b2, w3, b3)

    def unpack(y):
        return (y[..., :L0]
                .reshape(G, C, H, Bg, W)
                .transpose(0, 3, 1, 2, 4)
                .reshape(B, C, H, W))

    return unpack(i_t), unpack(r_t)


# ----------------- deterministic parameter init + BN folding (glue) -----------------
def init_params(key):
    ks = jax.random.split(key, 5)

    def conv_init(k):
        w = 0.02 * jax.random.normal(k, (C, C, K, K), jnp.float32)  # OIHW
        b = jnp.zeros((C,), jnp.float32)
        return w, b

    def bn_init(k):
        gamma = 1.0 + 0.02 * jax.random.normal(k, (C,), jnp.float32)
        beta = jnp.zeros((C,), jnp.float32)
        running_mean = jnp.zeros((C,), jnp.float32)
        running_var = jnp.ones((C,), jnp.float32)
        return gamma, beta, running_mean, running_var

    w1, b1 = conv_init(ks[0]); bn1 = bn_init(ks[1])
    w2, b2 = conv_init(ks[2]); bn2 = bn_init(ks[3])
    w3, b3 = conv_init(ks[4])
    return (w1, b1, bn1), (w2, b2, bn2), (w3, b3)


def fold_bn(w, b, bn):
    gamma, beta, mean, var = bn
    scale = gamma / jnp.sqrt(var + BN_EPS)
    return w * scale[:, None, None, None], (b - mean) * scale + beta


# ----------------- pure-JAX reference for verification -----------------
def reference(x, params):
    w1, b1, w2, b2, w3, b3 = params

    def conv(v, w, b):
        y = jax.lax.conv_general_dilated(
            v, w, (1, 1), 'SAME', dimension_numbers=('NCHW', 'OIHW', 'NCHW'))
        return y + b[None, :, None, None]

    fea = jax.nn.relu(conv(x, w1, b1))
    fea = fea + jax.nn.relu(conv(fea, w2, b2))
    out = jax.nn.sigmoid(conv(fea, w3, b3))
    i = jnp.clip(out + x, 1e-4, 1.0)
    r = jnp.clip(x / i, 0.0, 1.0)
    return i, r


if __name__ == "__main__":
    key = jax.random.PRNGKey(0)
    pkey, xkey = jax.random.split(key)

    (w1, b1, bn1), (w2, b2, bn2), (w3, b3) = init_params(pkey)
    w1f, b1f = fold_bn(w1, b1, bn1)
    w2f, b2f = fold_bn(w2, b2, bn2)

    kernel_params = (w1f.reshape(-1), b1f,
                     w2f.reshape(-1), b2f,
                     w3.reshape(-1), b3)
    ref_params = (w1f, b1f, w2f, b2f, w3, b3)

    B, H, W = 2, 16, 16
    x = jax.random.uniform(xkey, (B, C, H, W), jnp.float32, minval=0.05, maxval=1.0)

    i_out, r_out = jax.block_until_ready(finetunemodel_forward(x, kernel_params))

    i_ref, r_ref = reference(x, ref_params)
    assert jnp.allclose(i_out, i_ref, atol=1e-5, rtol=1e-5), "i mismatch vs reference"
    assert jnp.allclose(r_out, r_ref, atol=1e-4, rtol=1e-4), "r mismatch vs reference"

    print("KERNEL_OK")
</pallas_src>

<mosaic_0001>
module attributes {stable_mosaic.version = 11 : i64} {
  func.func @kernel(%arg0: i32, %arg1: memref<1x3x16x128xf32, #tpu.memory_space<vmem>>, %arg2: memref<81xf32, #tpu.memory_space<smem>>, %arg3: memref<3xf32, #tpu.memory_space<smem>>, %arg4: memref<81xf32, #tpu.memory_space<smem>>, %arg5: memref<3xf32, #tpu.memory_space<smem>>, %arg6: memref<81xf32, #tpu.memory_space<smem>>, %arg7: memref<3xf32, #tpu.memory_space<smem>>, %arg8: memref<1x3x16x128xf32, #tpu.memory_space<vmem>>, %arg9: memref<1x3x16x128xf32, #tpu.memory_space<vmem>>) attributes {dimension_semantics = [#tpu.dimension_semantics<parallel>], iteration_bounds = array<i64: 1>, scalar_prefetch = 0 : i64, scratch_operands = 0 : i64, tpu.core_type = #tpu.core_type<tc>, window_params = [{transform_indices = @transform_0, window_bounds = array<i64: 1, 3, 16, 128>}, {transform_indices = @transform_1, window_bounds = array<i64: 81>}, {transform_indices = @transform_2, window_bounds = array<i64: 3>}, {transform_indices = @transform_3, window_bounds = array<i64: 81>}, {transform_indices = @transform_4, window_bounds = array<i64: 3>}, {transform_indices = @transform_5, window_bounds = array<i64: 81>}, {transform_indices = @transform_6, window_bounds = array<i64: 3>}, {transform_indices = @transform_7, window_bounds = array<i64: 1, 3, 16, 128>}, {transform_indices = @transform_8, window_bounds = array<i64: 1, 3, 16, 128>}]} {
    %c0 = arith.constant 0 : index
    %c0_0 = arith.constant 0 : index
    %c0_1 = arith.constant 0 : index
    %c0_2 = arith.constant 0 : index
    %0 = vector.load %arg1[%c0, %c0_0, %c0_1, %c0_2] : memref<1x3x16x128xf32, #tpu.memory_space<vmem>>, vector<1x3x16x128xf32>
    %1 = vector.shape_cast %0 : vector<1x3x16x128xf32> to vector<3x16x128xf32>
    %2 = tpu.iota {dimensions = array<i32: 1>} : vector<16x128xi32>
    %c16_i32 = arith.constant 16 : i32
    %c0_i32 = arith.constant 0 : i32
    %3 = arith.cmpi eq, %c16_i32, %c0_i32 : i32
    %c1_i32 = arith.constant 1 : i32
    %4 = arith.select %3, %c1_i32, %c16_i32 : i32
    %5 = vector.broadcast %4 : i32 to vector<16x128xi32>
    %6 = arith.remsi %2, %5 : vector<16x128xi32>
    %c0_i32_3 = arith.constant 0 : i32
    %7 = vector.broadcast %c0_i32_3 : i32 to vector<16x128xi32>
    %8 = arith.cmpi ne, %6, %7 : vector<16x128xi32>
    %c0_i32_4 = arith.constant 0 : i32
    %9 = vector.broadcast %c0_i32_4 : i32 to vector<16x128xi32>
    %10 = arith.cmpi slt, %6, %9 : vector<16x128xi32>
    %c0_i32_5 = arith.constant 0 : i32
    %11 = arith.cmpi slt, %4, %c0_i32_5 : i32
    %12 = vector.broadcast %11 : i1 to vector<16x128xi1>
    %13 = vector.broadcast %12 : vector<16x128xi1> to vector<16x128xi1>
    %14 = arith.xori %10, %13 : vector<16x128xi1>
    %15 = arith.andi %14, %8 : vector<16x128xi1>
    %16 = vector.broadcast %4 : i32 to vector<16x128xi32>
    %17 = arith.addi %6, %16 : vector<16x128xi32>
    %18 = arith.select %15, %17, %6 : vector<16x128xi1>, vector<16x128xi32>
    %19 = tpu.iota {dimensions = array<i32: 0>} : vector<16x128xi32>
    %c0_i32_6 = arith.constant 0 : i32
    %20 = vector.broadcast %c0_i32_6 : i32 to vector<16x128xi32>
    %21 = arith.cmpi ne, %18, %20 : vector<16x128xi32>
    %c15_i32 = arith.constant 15 : i32
    %22 = vector.broadcast %c15_i32 : i32 to vector<16x128xi32>
    %23 = arith.cmpi ne, %18, %22 : vector<16x128xi32>
    %c0_i32_7 = arith.constant 0 : i32
    %24 = vector.broadcast %c0_i32_7 : i32 to vector<16x128xi32>
    %25 = arith.cmpi ne, %19, %24 : vector<16x128xi32>
    %c15_i32_8 = arith.constant 15 : i32
    %26 = vector.broadcast %c15_i32_8 : i32 to vector<16x128xi32>
    %27 = arith.cmpi ne, %19, %26 : vector<16x128xi32>
    %28 = vector.extract_strided_slice %1 {offsets = [0, 0, 0], sizes = [1, 16, 128], strides = [1, 1, 1]} : vector<3x16x128xf32> to vector<1x16x128xf32>
    %29 = vector.shape_cast %28 : vector<1x16x128xf32> to vector<16x128xf32>
    %30 = vector.extract_strided_slice %1 {offsets = [1, 0, 0], sizes = [1, 16, 128], strides = [1, 1, 1]} : vector<3x16x128xf32> to vector<1x16x128xf32>
    %31 = vector.shape_cast %30 : vector<1x16x128xf32> to vector<16x128xf32>
    %32 = vector.extract_strided_slice %1 {offsets = [2, 0, 0], sizes = [1, 16, 128], strides = [1, 1, 1]} : vector<3x16x128xf32> to vector<1x16x128xf32>
    %33 = vector.shape_cast %32 : vector<1x16x128xf32> to vector<16x128xf32>
    %c1_i32_9 = arith.constant 1 : i32
    %34 = tpu.dynamic_rotate %29 by %c1_i32_9 dim 1 : vector<16x128xf32>, i32 -> vector<16x128xf32>
    %cst = arith.constant 0.000000e+00 : f32
    %35 = vector.broadcast %cst : f32 to vector<16x128xf32>
    %36 = arith.select %21, %34, %35 : vector<16x128xi1>, vector<16x128xf32>
    %c127_i32 = arith.constant 127 : i32
    %37 = tpu.dynamic_rotate %29 by %c127_i32 dim 1 : vector<16x128xf32>, i32 -> vector<16x128xf32>
    %cst_10 = arith.constant 0.000000e+00 : f32
    %38 = vector.broadcast %cst_10 : f32 to vector<16x128xf32>
    %39 = arith.select %23, %37, %38 : vector<16x128xi1>, vector<16x128xf32>
    %c1_i32_11 = arith.constant 1 : i32
    %40 = tpu.dynamic_rotate %36 by %c1_i32_11 dim 0 : vector<16x128xf32>, i32 -> vector<16x128xf32>
    %cst_12 = arith.constant 0.000000e+00 : f32
    %41 = vector.broadcast %cst_12 : f32 to vector<16x128xf32>
    %42 = arith.select %25, %40, %41 : vector<16x128xi1>, vector<16x128xf32>
    %c1_i32_13 = arith.constant 1 : i32
    %43 = tpu.dynamic_rotate %29 by %c1_i32_13 dim 0 : vector<16x128xf32>, i32 -> vector<16x128xf32>
    %cst_14 = arith.constant 0.000000e+00 : f32
    %44 = vector.broadcast %cst_14 : f32 to vector<16x128xf32>
    %45 = arith.select %25, %43, %44 : vector<16x128xi1>, vector<16x128xf32>
    %c1_i32_15 = arith.constant 1 : i32
    %46 = tpu.dynamic_rotate %39 by %c1_i32_15 dim 0 : vector<16x128xf32>, i32 -> vector<16x128xf32>
    %cst_16 = arith.constant 0.000000e+00 : f32
    %47 = vector.broadcast %cst_16 : f32 to vector<16x128xf32>
    %48 = arith.select %25, %46, %47 : vector<16x128xi1>, vector<16x128xf32>
    %c15_i32_17 = arith.constant 15 : i32
    %49 = tpu.dynamic_rotate %36 by %c15_i32_17 dim 0 : vector<16x128xf32>, i32 -> vector<16x128xf32>
    %cst_18 = arith.constant 0.000000e+00 : f32
    %50 = vector.broadcast %cst_18 : f32 to vector<16x128xf32>
    %51 = arith.select %27, %49, %50 : vector<16x128xi1>, vector<16x128xf32>
    %c15_i32_19 = arith.constant 15 : i32
    %52 = tpu.dynamic_rotate %29 by %c15_i32_19 dim 0 : vector<16x128xf32>, i32 -> vector<16x128xf32>
    %cst_20 = arith.constant 0.000000e+00 : f32
    %53 = vector.broadcast %cst_20 : f32 to vector<16x128xf32>
    %54 = arith.select %27, %52, %53 : vector<16x128xi1>, vector<16x128xf32>
    %c15_i32_21 = arith.constant 15 : i32
    %55 = tpu.dynamic_rotate %39 by %c15_i32_21 dim 0 : vector<16x128xf32>, i32 -> vector<16x128xf32>
    %cst_22 = arith.constant 0.000000e+00 : f32
    %56 = vector.broadcast %cst_22 : f32 to vector<16x128xf32>
    %57 = arith.select %27, %55, %56 : vector<16x128xi1>, vector<16x128xf32>
    %c1_i32_23 = arith.constant 1 : i32
    %58 = tpu.dynamic_rotate %31 by %c1_i32_23 dim 1 : vector<16x128xf32>, i32 -> vector<16x128xf32>
    %cst_24 = arith.constant 0.000000e+00 : f32
    %59 = vector.broadcast %cst_24 : f32 to vector<16x128xf32>
    %60 = arith.select %21, %58, %59 : vector<16x128xi1>, vector<16x128xf32>
    %c127_i32_25 = arith.constant 127 : i32
    %61 = tpu.dynamic_rotate %31 by %c127_i32_25 dim 1 : vector<16x128xf32>, i32 -> vector<16x128xf32>
    %cst_26 = arith.constant 0.000000e+00 : f32
    %62 = vector.broadcast %cst_26 : f32 to vector<16x128xf32>
    %63 = arith.select %23, %61, %62 : vector<16x128xi1>, vector<16x128xf32>
    %c1_i32_27 = arith.constant 1 : i32
    %64 = tpu.dynamic_rotate %60 by %c1_i32_27 dim 0 : vector<16x128xf32>, i32 -> vector<16x128xf32>
    %cst_28 = arith.constant 0.000000e+00 : f32
    %65 = vector.broadcast %cst_28 : f32 to vector<16x128xf32>
    %66 = arith.select %25, %64, %65 : vector<16x128xi1>, vector<16x128xf32>
    %c1_i32_29 = arith.constant 1 : i32
    %67 = tpu.dynamic_rotate %31 by %c1_i32_29 dim 0 : vector<16x128xf32>, i32 -> vector<16x128xf32>
    %cst_30 = arith.constant 0.000000e+00 : f32
    %68 = vector.broadcast %cst_30 : f32 to vector<16x128xf32>
    %69 = arith.select %25, %67, %68 : vector<16x128xi1>, vector<16x128xf32>
    %c1_i32_31 = arith.constant 1 : i32
    %70 = tpu.dynamic_rotate %63 by %c1_i32_31 dim 0 : vector<16x128xf32>, i32 -> vector<16x128xf32>
    %cst_32 = arith.constant 0.000000e+00 : f32
    %71 = vector.broadcast %cst_32 : f32 to vector<16x128xf32>
    %72 = arith.select %25, %70, %71 : vector<16x128xi1>, vector<16x128xf32>
    %c15_i32_33 = arith.constant 15 : i32
    %73 = tpu.dynamic_rotate %60 by %c15_i32_33 dim 0 : vector<16x128xf32>, i32 -> vector<16x128xf32>
    %cst_34 = arith.constant 0.000000e+00 : f32
    %74 = vector.broadcast %cst_34 : f32 to vector<16x128xf32>
    %75 = arith.select %27, %73, %74 : vector<16x128xi1>, vector<16x128xf32>
    %c15_i32_35 = arith.constant 15 : i32
    %76 = tpu.dynamic_rotate %31 by %c15_i32_35 dim 0 : vector<16x128xf32>, i32 -> vector<16x128xf32>
    %cst_36 = arith.constant 0.000000e+00 : f32
    %77 = vector.broadcast %cst_36 : f32 to vector<16x128xf32>
    %78 = arith.select %27, %76, %77 : vector<16x128xi1>, vector<16x128xf32>
    %c15_i32_37 = arith.constant 15 : i32
    %79 = tpu.dynamic_rotate %63 by %c15_i32_37 dim 0 : vector<16x128xf32>, i32 -> vector<16x128xf32>
    %cst_38 = arith.constant 0.000000e+00 : f32
    %80 = vector.broadcast %cst_38 : f32 to vector<16x128xf32>
    %81 = arith.select %27, %79, %80 : vector<16x128xi1>, vector<16x128xf32>
    %c1_i32_39 = arith.constant 1 : i32
    %82 = tpu.dynamic_rotate %33 by %c1_i32_39 dim 1 : vector<16x128xf32>, i32 -> vector<16x128xf32>
    %cst_40 = arith.constant 0.000000e+00 : f32
    %83 = vector.broadcast %cst_40 : f32 to vector<16x128xf32>
    %84 = arith.select %21, %82, %83 : vector<16x128xi1>, vector<16x128xf32>
    %c127_i32_41 = arith.constant 127 : i32
    %85 = tpu.dynamic_rotate %33 by %c127_i32_41 dim 1 : vector<16x128xf32>, i32 -> vector<16x128xf32>
    %cst_42 = arith.constant 0.000000e+00 : f32
    %86 = vector.broadcast %cst_42 : f32 to vector<16x128xf32>
    %87 = arith.select %23, %85, %86 : vector<16x128xi1>, vector<16x128xf32>
    %c1_i32_43 = arith.constant 1 : i32
    %88 = tpu.dynamic_rotate %84 by %c1_i32_43 dim 0 : vector<16x128xf32>, i32 -> vector<16x128xf32>
    %cst_44 = arith.constant 0.000000e+00 : f32
    %89 = vector.broadcast %cst_44 : f32 to vector<16x128xf32>
    %90 = arith.select %25, %88, %89 : vector<16x128xi1>, vector<16x128xf32>
    %c1_i32_45 = arith.constant 1 : i32
    %91 = tpu.dynamic_rotate %33 by %c1_i32_45 dim 0 : vector<16x128xf32>, i32 -> vector<16x128xf32>
    %cst_46 = arith.constant 0.000000e+00 : f32
    %92 = vector.broadcast %cst_46 : f32 to vector<16x128xf32>
    %93 = arith.select %25, %91, %92 : vector<16x128xi1>, vector<16x128xf32>
    %c1_i32_47 = arith.constant 1 : i32
    %94 = tpu.dynamic_rotate %87 by %c1_i32_47 dim 0 : vector<16x128xf32>, i32 -> vector<16x128xf32>
    %cst_48 = arith.constant 0.000000e+00 : f32
    %95 = vector.broadcast %cst_48 : f32 to vector<16x128xf32>
    %96 = arith.select %25, %94, %95 : vector<16x128xi1>, vector<16x128xf32>
    %c15_i32_49 = arith.constant 15 : i32
    %97 = tpu.dynamic_rotate %84 by %c15_i32_49 dim 0 : vector<16x128xf32>, i32 -> vector<16x128xf32>
    %cst_50 = arith.constant 0.000000e+00 : f32
    %98 = vector.broadcast %cst_50 : f32 to vector<16x128xf32>
    %99 = arith.select %27, %97, %98 : vector<16x128xi1>, vector<16x128xf32>
    %c15_i32_51 = arith.constant 15 : i32
    %100 = tpu.dynamic_rotate %33 by %c15_i32_51 dim 0 : vector<16x128xf32>, i32 -> vector<16x128xf32>
    %cst_52 = arith.constant 0.000000e+00 : f32
    %101 = vector.broadcast %cst_52 : f32 to vector<16x128xf32>
    %102 = arith.select %27, %100, %101 : vector<16x128xi1>, vector<16x128xf32>
    %c15_i32_53 = arith.constant 15 : i32
    %103 = tpu.dynamic_rotate %87 by %c15_i32_53 dim 0 : vector<16x128xf32>, i32 -> vector<16x128xf32>
    %cst_54 = arith.constant 0.000000e+00 : f32
    %104 = vector.broadcast %cst_54 : f32 to vector<16x128xf32>
    %105 = arith.select %27, %103, %104 : vector<16x128xi1>, vector<16x128xf32>
    %c0_55 = arith.constant 0 : index
    %106 = memref.load %arg2[%c0_55] : memref<81xf32, #tpu.memory_space<smem>>
    %107 = vector.broadcast %106 : f32 to vector<16x128xf32>
    %108 = arith.mulf %107, %42 : vector<16x128xf32>
    %c1 = arith.constant 1 : index
    %109 = memref.load %arg2[%c1] : memref<81xf32, #tpu.memory_space<smem>>
    %110 = vector.broadcast %109 : f32 to vector<16x128xf32>
    %111 = arith.mulf %110, %45 : vector<16x128xf32>
    %112 = arith.addf %108, %111 : vector<16x128xf32>
    %c2 = arith.constant 2 : index
    %113 = memref.load %arg2[%c2] : memref<81xf32, #tpu.memory_space<smem>>
    %114 = vector.broadcast %113 : f32 to vector<16x128xf32>
    %115 = arith.mulf %114, %48 : vector<16x128xf32>
    %116 = arith.addf %112, %115 : vector<16x128xf32>
    %c3 = arith.constant 3 : index
    %117 = memref.load %arg2[%c3] : memref<81xf32, #tpu.memory_space<smem>>
    %118 = vector.broadcast %117 : f32 to vector<16x128xf32>
    %119 = arith.mulf %118, %36 : vector<16x128xf32>
    %120 = arith.addf %116, %119 : vector<16x128xf32>
    %c4 = arith.constant 4 : index
    %121 = memref.load %arg2[%c4] : memref<81xf32, #tpu.memory_space<smem>>
    %122 = vector.broadcast %121 : f32 to vector<16x128xf32>
    %123 = arith.mulf %122, %29 : vector<16x128xf32>
    %124 = arith.addf %120, %123 : vector<16x128xf32>
    %c5 = arith.constant 5 : index
    %125 = memref.load %arg2[%c5] : memref<81xf32, #tpu.memory_space<smem>>
    %126 = vector.broadcast %125 : f32 to vector<16x128xf32>
    %127 = arith.mulf %126, %39 : vector<16x128xf32>
    %128 = arith.addf %124, %127 : vector<16x128xf32>
    %c6 = arith.constant 6 : index
    %129 = memref.load %arg2[%c6] : memref<81xf32, #tpu.memory_space<smem>>
    %130 = vector.broadcast %129 : f32 to vector<16x128xf32>
    %131 = arith.mulf %130, %51 : vector<16x128xf32>
    %132 = arith.addf %128, %131 : vector<16x128xf32>
    %c7 = arith.constant 7 : index
    %133 = memref.load %arg2[%c7] : memref<81xf32, #tpu.memory_space<smem>>
    %134 = vector.broadcast %133 : f32 to vector<16x128xf32>
    %135 = arith.mulf %134, %54 : vector<16x128xf32>
    %136 = arith.addf %132, %135 : vector<16x128xf32>
    %c8 = arith.constant 8 : index
    %137 = memref.load %arg2[%c8] : memref<81xf32, #tpu.memory_space<smem>>
    %138 = vector.broadcast %137 : f32 to vector<16x128xf32>
    %139 = arith.mulf %138, %57 : vector<16x128xf32>
    %140 = arith.addf %136, %139 : vector<16x128xf32>
    %c9 = arith.constant 9 : index
    %141 = memref.load %arg2[%c9] : memref<81xf32, #tpu.memory_space<smem>>
    %142 = vector.broadcast %141 : f32 to vector<16x128xf32>
    %143 = arith.mulf %142, %66 : vector<16x128xf32>
    %144 = arith.addf %140, %143 : vector<16x128xf32>
    %c10 = arith.constant 10 : index
    %145 = memref.load %arg2[%c10] : memref<81xf32, #tpu.memory_space<smem>>
    %146 = vector.broadcast %145 : f32 to vector<16x128xf32>
    %147 = arith.mulf %146, %69 : vector<16x128xf32>
    %148 = arith.addf %144, %147 : vector<16x128xf32>
    %c11 = arith.constant 11 : index
    %149 = memref.load %arg2[%c11] : memref<81xf32, #tpu.memory_space<smem>>
    %150 = vector.broadcast %149 : f32 to vector<16x128xf32>
    %151 = arith.mulf %150, %72 : vector<16x128xf32>
    %152 = arith.addf %148, %151 : vector<16x128xf32>
    %c12 = arith.constant 12 : index
    %153 = memref.load %arg2[%c12] : memref<81xf32, #tpu.memory_space<smem>>
    %154 = vector.broadcast %153 : f32 to vector<16x128xf32>
    %155 = arith.mulf %154, %60 : vector<16x128xf32>
    %156 = arith.addf %152, %155 : vector<16x128xf32>
    %c13 = arith.constant 13 : index
    %157 = memref.load %arg2[%c13] : memref<81xf32, #tpu.memory_space<smem>>
    %158 = vector.broadcast %157 : f32 to vector<16x128xf32>
    %159 = arith.mulf %158, %31 : vector<16x128xf32>
    %160 = arith.addf %156, %159 : vector<16x128xf32>
    %c14 = arith.constant 14 : index
    %161 = memref.load %arg2[%c14] : memref<81xf32, #tpu.memory_space<smem>>
    %162 = vector.broadcast %161 : f32 to vector<16x128xf32>
    %163 = arith.mulf %162, %63 : vector<16x128xf32>
    %164 = arith.addf %160, %163 : vector<16x128xf32>
    %c15 = arith.constant 15 : index
    %165 = memref.load %arg2[%c15] : memref<81xf32, #tpu.memory_space<smem>>
    %166 = vector.broadcast %165 : f32 to vector<16x128xf32>
    %167 = arith.mulf %166, %75 : vector<16x128xf32>
    %168 = arith.addf %164, %167 : vector<16x128xf32>
    %c16 = arith.constant 16 : index
    %169 = memref.load %arg2[%c16] : memref<81xf32, #tpu.memory_space<smem>>
    %170 = vector.broadcast %169 : f32 to vector<16x128xf32>
    %171 = arith.mulf %170, %78 : vector<16x128xf32>
    %172 = arith.addf %168, %171 : vector<16x128xf32>
    %c17 = arith.constant 17 : index
    %173 = memref.load %arg2[%c17] : memref<81xf32, #tpu.memory_space<smem>>
    %174 = vector.broadcast %173 : f32 to vector<16x128xf32>
    %175 = arith.mulf %174, %81 : vector<16x128xf32>
    %176 = arith.addf %172, %175 : vector<16x128xf32>
    %c18 = arith.constant 18 : index
    %177 = memref.load %arg2[%c18] : memref<81xf32, #tpu.memory_space<smem>>
    %178 = vector.broadcast %177 : f32 to vector<16x128xf32>
    %179 = arith.mulf %178, %90 : vector<16x128xf32>
    %180 = arith.addf %176, %179 : vector<16x128xf32>
    %c19 = arith.constant 19 : index
    %181 = memref.load %arg2[%c19] : memref<81xf32, #tpu.memory_space<smem>>
    %182 = vector.broadcast %181 : f32 to vector<16x128xf32>
    %183 = arith.mulf %182, %93 : vector<16x128xf32>
    %184 = arith.addf %180, %183 : vector<16x128xf32>
    %c20 = arith.constant 20 : index
    %185 = memref.load %arg2[%c20] : memref<81xf32, #tpu.memory_space<smem>>
    %186 = vector.broadcast %185 : f32 to vector<16x128xf32>
    %187 = arith.mulf %186, %96 : vector<16x128xf32>
    %188 = arith.addf %184, %187 : vector<16x128xf32>
    %c21 = arith.constant 21 : index
    %189 = memref.load %arg2[%c21] : memref<81xf32, #tpu.memory_space<smem>>
    %190 = vector.broadcast %189 : f32 to vector<16x128xf32>
    %191 = arith.mulf %190, %84 : vector<16x128xf32>
    %192 = arith.addf %188, %191 : vector<16x128xf32>
    %c22 = arith.constant 22 : index
    %193 = memref.load %arg2[%c22] : memref<81xf32, #tpu.memory_space<smem>>
    %194 = vector.broadcast %193 : f32 to vector<16x128xf32>
    %195 = arith.mulf %194, %33 : vector<16x128xf32>
    %196 = arith.addf %192, %195 : vector<16x128xf32>
    %c23 = arith.constant 23 : index
    %197 = memref.load %arg2[%c23] : memref<81xf32, #tpu.memory_space<smem>>
    %198 = vector.broadcast %197 : f32 to vector<16x128xf32>
    %199 = arith.mulf %198, %87 : vector<16x128xf32>
    %200 = arith.addf %196, %199 : vector<16x128xf32>
    %c24 = arith.constant 24 : index
    %201 = memref.load %arg2[%c24] : memref<81xf32, #tpu.memory_space<smem>>
    %202 = vector.broadcast %201 : f32 to vector<16x128xf32>
    %203 = arith.mulf %202, %99 : vector<16x128xf32>
    %204 = arith.addf %200, %203 : vector<16x128xf32>
    %c25 = arith.constant 25 : index
    %205 = memref.load %arg2[%c25] : memref<81xf32, #tpu.memory_space<smem>>
    %206 = vector.broadcast %205 : f32 to vector<16x128xf32>
    %207 = arith.mulf %206, %102 : vector<16x128xf32>
    %208 = arith.addf %204, %207 : vector<16x128xf32>
    %c26 = arith.constant 26 : index
    %209 = memref.load %arg2[%c26] : memref<81xf32, #tpu.memory_space<smem>>
    %210 = vector.broadcast %209 : f32 to vector<16x128xf32>
    %211 = arith.mulf %210, %105 : vector<16x128xf32>
    %212 = arith.addf %208, %211 : vector<16x128xf32>
    %c0_56 = arith.constant 0 : index
    %213 = memref.load %arg3[%c0_56] : memref<3xf32, #tpu.memory_space<smem>>
    %214 = vector.broadcast %213 : f32 to vector<16x128xf32>
    %215 = arith.addf %212, %214 : vector<16x128xf32>
    %c27 = arith.constant 27 : index
    %216 = memref.load %arg2[%c27] : memref<81xf32, #tpu.memory_space<smem>>
    %217 = vector.broadcast %216 : f32 to vector<16x128xf32>
    %218 = arith.mulf %217, %42 : vector<16x128xf32>
    %c28 = arith.constant 28 : index
    %219 = memref.load %arg2[%c28] : memref<81xf32, #tpu.memory_space<smem>>
    %220 = vector.broadcast %219 : f32 to vector<16x128xf32>
    %221 = arith.mulf %220, %45 : vector<16x128xf32>
    %222 = arith.addf %218, %221 : vector<16x128xf32>
    %c29 = arith.constant 29 : index
    %223 = memref.load %arg2[%c29] : memref<81xf32, #tpu.memory_space<smem>>
    %224 = vector.broadcast %223 : f32 to vector<16x128xf32>
    %225 = arith.mulf %224, %48 : vector<16x128xf32>
    %226 = arith.addf %222, %225 : vector<16x128xf32>
    %c30 = arith.constant 30 : index
    %227 = memref.load %arg2[%c30] : memref<81xf32, #tpu.memory_space<smem>>
    %228 = vector.broadcast %227 : f32 to vector<16x128xf32>
    %229 = arith.mulf %228, %36 : vector<16x128xf32>
    %230 = arith.addf %226, %229 : vector<16x128xf32>
    %c31 = arith.constant 31 : index
    %231 = memref.load %arg2[%c31] : memref<81xf32, #tpu.memory_space<smem>>
    %232 = vector.broadcast %231 : f32 to vector<16x128xf32>
    %233 = arith.mulf %232, %29 : vector<16x128xf32>
    %234 = arith.addf %230, %233 : vector<16x128xf32>
    %c32 = arith.constant 32 : index
    %235 = memref.load %arg2[%c32] : memref<81xf32, #tpu.memory_space<smem>>
    %236 = vector.broadcast %235 : f32 to vector<16x128xf32>
    %237 = arith.mulf %236, %39 : vector<16x128xf32>
    %238 = arith.addf %234, %237 : vector<16x128xf32>
    %c33 = arith.constant 33 : index
    %239 = memref.load %arg2[%c33] : memref<81xf32, #tpu.memory_space<smem>>
    %240 = vector.broadcast %239 : f32 to vector<16x128xf32>
    %241 = arith.mulf %240, %51 : vector<16x128xf32>
    %242 = arith.addf %238, %241 : vector<16x128xf32>
    %c34 = arith.constant 34 : index
    %243 = memref.load %arg2[%c34] : memref<81xf32, #tpu.memory_space<smem>>
    %244 = vector.broadcast %243 : f32 to vector<16x128xf32>
    %245 = arith.mulf %244, %54 : vector<16x128xf32>
    %246 = arith.addf %242, %245 : vector<16x128xf32>
    %c35 = arith.constant 35 : index
    %247 = memref.load %arg2[%c35] : memref<81xf32, #tpu.memory_space<smem>>
    %248 = vector.broadcast %247 : f32 to vector<16x128xf32>
    %249 = arith.mulf %248, %57 : vector<16x128xf32>
    %250 = arith.addf %246, %249 : vector<16x128xf32>
    %c36 = arith.constant 36 : index
    %251 = memref.load %arg2[%c36] : memref<81xf32, #tpu.memory_space<smem>>
    %252 = vector.broadcast %251 : f32 to vector<16x128xf32>
    %253 = arith.mulf %252, %66 : vector<16x128xf32>
    %254 = arith.addf %250, %253 : vector<16x128xf32>
    %c37 = arith.constant 37 : index
    %255 = memref.load %arg2[%c37] : memref<81xf32, #tpu.memory_space<smem>>
    %256 = vector.broadcast %255 : f32 to vector<16x128xf32>
    %257 = arith.mulf %256, %69 : vector<16x128xf32>
    %258 = arith.addf %254, %257 : vector<16x128xf32>
    %c38 = arith.constant 38 : index
    %259 = memref.load %arg2[%c38] : memref<81xf32, #tpu.memory_space<smem>>
    %260 = vector.broadcast %259 : f32 to vector<16x128xf32>
    %261 = arith.mulf %260, %72 : vector<16x128xf32>
    %262 = arith.addf %258, %261 : vector<16x128xf32>
    %c39 = arith.constant 39 : index
    %263 = memref.load %arg2[%c39] : memref<81xf32, #tpu.memory_space<smem>>
    %264 = vector.broadcast %263 : f32 to vector<16x128xf32>
    %265 = arith.mulf %264, %60 : vector<16x128xf32>
    %266 = arith.addf %262, %265 : vector<16x128xf32>
    %c40 = arith.constant 40 : index
    %267 = memref.load %arg2[%c40] : memref<81xf32, #tpu.memory_space<smem>>
    %268 = vector.broadcast %267 : f32 to vector<16x128xf32>
    %269 = arith.mulf %268, %31 : vector<16x128xf32>
    %270 = arith.addf %266, %269 : vector<16x128xf32>
    %c41 = arith.constant 41 : index
    %271 = memref.load %arg2[%c41] : memref<81xf32, #tpu.memory_space<smem>>
    %272 = vector.broadcast %271 : f32 to vector<16x128xf32>
    %273 = arith.mulf %272, %63 : vector<16x128xf32>
    %274 = arith.addf %270, %273 : vector<16x128xf32>
    %c42 = arith.constant 42 : index
    %275 = memref.load %arg2[%c42] : memref<81xf32, #tpu.memory_space<smem>>
    %276 = vector.broadcast %275 : f32 to vector<16x128xf32>
    %277 = arith.mulf %276, %75 : vector<16x128xf32>
    %278 = arith.addf %274, %277 : vector<16x128xf32>
    %c43 = arith.constant 43 : index
    %279 = memref.load %arg2[%c43] : memref<81xf32, #tpu.memory_space<smem>>
    %280 = vector.broadcast %279 : f32 to vector<16x128xf32>
    %281 = arith.mulf %280, %78 : vector<16x128xf32>
    %282 = arith.addf %278, %281 : vector<16x128xf32>
    %c44 = arith.constant 44 : index
    %283 = memref.load %arg2[%c44] : memref<81xf32, #tpu.memory_space<smem>>
    %284 = vector.broadcast %283 : f32 to vector<16x128xf32>
    %285 = arith.mulf %284, %81 : vector<16x128xf32>
    %286 = arith.addf %282, %285 : vector<16x128xf32>
    %c45 = arith.constant 45 : index
    %287 = memref.load %arg2[%c45] : memref<81xf32, #tpu.memory_space<smem>>
    %288 = vector.broadcast %287 : f32 to vector<16x128xf32>
    %289 = arith.mulf %288, %90 : vector<16x128xf32>
    %290 = arith.addf %286, %289 : vector<16x128xf32>
    %c46 = arith.constant 46 : index
    %291 = memref.load %arg2[%c46] : memref<81xf32, #tpu.memory_space<smem>>
    %292 = vector.broadcast %291 : f32 to vector<16x128xf32>
    %293 = arith.mulf %292, %93 : vector<16x128xf32>
    %294 = arith.addf %290, %293 : vector<16x128xf32>
    %c47 = arith.constant 47 : index
    %295 = memref.load %arg2[%c47] : memref<81xf32, #tpu.memory_space<smem>>
    %296 = vector.broadcast %295 : f32 to vector<16x128xf32>
    %297 = arith.mulf %296, %96 : vector<16x128xf32>
    %298 = arith.addf %294, %297 : vector<16x128xf32>
    %c48 = arith.constant 48 : index
    %299 = memref.load %arg2[%c48] : memref<81xf32, #tpu.memory_space<smem>>
    %300 = vector.broadcast %299 : f32 to vector<16x128xf32>
    %301 = arith.mulf %300, %84 : vector<16x128xf32>
    %302 = arith.addf %298, %301 : vector<16x128xf32>
    %c49 = arith.constant 49 : index
    %303 = memref.load %arg2[%c49] : memref<81xf32, #tpu.memory_space<smem>>
    %304 = vector.broadcast %303 : f32 to vector<16x128xf32>
    %305 = arith.mulf %304, %33 : vector<16x128xf32>
    %306 = arith.addf %302, %305 : vector<16x128xf32>
    %c50 = arith.constant 50 : index
    %307 = memref.load %arg2[%c50] : memref<81xf32, #tpu.memory_space<smem>>
    %308 = vector.broadcast %307 : f32 to vector<16x128xf32>
    %309 = arith.mulf %308, %87 : vector<16x128xf32>
    %310 = arith.addf %306, %309 : vector<16x128xf32>
    %c51 = arith.constant 51 : index
    %311 = memref.load %arg2[%c51] : memref<81xf32, #tpu.memory_space<smem>>
    %312 = vector.broadcast %311 : f32 to vector<16x128xf32>
    %313 = arith.mulf %312, %99 : vector<16x128xf32>
    %314 = arith.addf %310, %313 : vector<16x128xf32>
    %c52 = arith.constant 52 : index
    %315 = memref.load %arg2[%c52] : memref<81xf32, #tpu.memory_space<smem>>
    %316 = vector.broadcast %315 : f32 to vector<16x128xf32>
    %317 = arith.mulf %316, %102 : vector<16x128xf32>
    %318 = arith.addf %314, %317 : vector<16x128xf32>
    %c53 = arith.constant 53 : index
    %319 = memref.load %arg2[%c53] : memref<81xf32, #tpu.memory_space<smem>>
    %320 = vector.broadcast %319 : f32 to vector<16x128xf32>
    %321 = arith.mulf %320, %105 : vector<16x128xf32>
    %322 = arith.addf %318, %321 : vector<16x128xf32>
    %c1_57 = arith.constant 1 : index
    %323 = memref.load %arg3[%c1_57] : memref<3xf32, #tpu.memory_space<smem>>
    %324 = vector.broadcast %323 : f32 to vector<16x128xf32>
    %325 = arith.addf %322, %324 : vector<16x128xf32>
    %c54 = arith.constant 54 : index
    %326 = memref.load %arg2[%c54] : memref<81xf32, #tpu.memory_space<smem>>
    %327 = vector.broadcast %326 : f32 to vector<16x128xf32>
    %328 = arith.mulf %327, %42 : vector<16x128xf32>
    %c55 = arith.constant 55 : index
    %329 = memref.load %arg2[%c55] : memref<81xf32, #tpu.memory_space<smem>>
    %330 = vector.broadcast %329 : f32 to vector<16x128xf32>
    %331 = arith.mulf %330, %45 : vector<16x128xf32>
    %332 = arith.addf %328, %331 : vector<16x128xf32>
    %c56 = arith.constant 56 : index
    %333 = memref.load %arg2[%c56] : memref<81xf32, #tpu.memory_space<smem>>
    %334 = vector.broadcast %333 : f32 to vector<16x128xf32>
    %335 = arith.mulf %334, %48 : vector<16x128xf32>
    %336 = arith.addf %332, %335 : vector<16x128xf32>
    %c57 = arith.constant 57 : index
    %337 = memref.load %arg2[%c57] : memref<81xf32, #tpu.memory_space<smem>>
    %338 = vector.broadcast %337 : f32 to vector<16x128xf32>
    %339 = arith.mulf %338, %36 : vector<16x128xf32>
    %340 = arith.addf %336, %339 : vector<16x128xf32>
    %c58 = arith.constant 58 : index
    %341 = memref.load %arg2[%c58] : memref<81xf32, #tpu.memory_space<smem>>
    %342 = vector.broadcast %341 : f32 to vector<16x128xf32>
    %343 = arith.mulf %342, %29 : vector<16x128xf32>
    %344 = arith.addf %340, %343 : vector<16x128xf32>
    %c59 = arith.constant 59 : index
    %345 = memref.load %arg2[%c59] : memref<81xf32, #tpu.memory_space<smem>>
    %346 = vector.broadcast %345 : f32 to vector<16x128xf32>
    %347 = arith.mulf %346, %39 : vector<16x128xf32>
    %348 = arith.addf %344, %347 : vector<16x128xf32>
    %c60 = arith.constant 60 : index
    %349 = memref.load %arg2[%c60] : memref<81xf32, #tpu.memory_space<smem>>
    %350 = vector.broadcast %349 : f32 to vector<16x128xf32>
    %351 = arith.mulf %350, %51 : vector<16x128xf32>
    %352 = arith.addf %348, %351 : vector<16x128xf32>
    %c61 = arith.constant 61 : index
    %353 = memref.load %arg2[%c61] : memref<81xf32, #tpu.memory_space<smem>>
    %354 = vector.broadcast %353 : f32 to vector<16x128xf32>
    %355 = arith.mulf %354, %54 : vector<16x128xf32>
    %356 = arith.addf %352, %355 : vector<16x128xf32>
    %c62 = arith.constant 62 : index
    %357 = memref.load %arg2[%c62] : memref<81xf32, #tpu.memory_space<smem>>
    %358 = vector.broadcast %357 : f32 to vector<16x128xf32>
    %359 = arith.mulf %358, %57 : vector<16x128xf32>
    %360 = arith.addf %356, %359 : vector<16x128xf32>
    %c63 = arith.constant 63 : index
    %361 = memref.load %arg2[%c63] : memref<81xf32, #tpu.memory_space<smem>>
    %362 = vector.broadcast %361 : f32 to vector<16x128xf32>
    %363 = arith.mulf %362, %66 : vector<16x128xf32>
    %364 = arith.addf %360, %363 : vector<16x128xf32>
    %c64 = arith.constant 64 : index
    %365 = memref.load %arg2[%c64] : memref<81xf32, #tpu.memory_space<smem>>
    %366 = vector.broadcast %365 : f32 to vector<16x128xf32>
    %367 = arith.mulf %366, %69 : vector<16x128xf32>
    %368 = arith.addf %364, %367 : vector<16x128xf32>
    %c65 = arith.constant 65 : index
    %369 = memref.load %arg2[%c65] : memref<81xf32, #tpu.memory_space<smem>>
    %370 = vector.broadcast %369 : f32 to vector<16x128xf32>
    %371 = arith.mulf %370, %72 : vector<16x128xf32>
    %372 = arith.addf %368, %371 : vector<16x128xf32>
    %c66 = arith.constant 66 : index
    %373 = memref.load %arg2[%c66] : memref<81xf32, #tpu.memory_space<smem>>
    %374 = vector.broadcast %373 : f32 to vector<16x128xf32>
    %375 = arith.mulf %374, %60 : vector<16x128xf32>
    %376 = arith.addf %372, %375 : vector<16x128xf32>
    %c67 = arith.constant 67 : index
    %377 = memref.load %arg2[%c67] : memref<81xf32, #tpu.memory_space<smem>>
    %378 = vector.broadcast %377 : f32 to vector<16x128xf32>
    %379 = arith.mulf %378, %31 : vector<16x128xf32>
    %380 = arith.addf %376, %379 : vector<16x128xf32>
    %c68 = arith.constant 68 : index
    %381 = memref.load %arg2[%c68] : memref<81xf32, #tpu.memory_space<smem>>
    %382 = vector.broadcast %381 : f32 to vector<16x128xf32>
    %383 = arith.mulf %382, %63 : vector<16x128xf32>
    %384 = arith.addf %380, %383 : vector<16x128xf32>
    %c69 = arith.constant 69 : index
    %385 = memref.load %arg2[%c69] : memref<81xf32, #tpu.memory_space<smem>>
    %386 = vector.broadcast %385 : f32 to vector<16x128xf32>
    %387 = arith.mulf %386, %75 : vector<16x128xf32>
    %388 = arith.addf %384, %387 : vector<16x128xf32>
    %c70 = arith.constant 70 : index
    %389 = memref.load %arg2[%c70] : memref<81xf32, #tpu.memory_space<smem>>
    %390 = vector.broadcast %389 : f32 to vector<16x128xf32>
    %391 = arith.mulf %390, %78 : vector<16x128xf32>
    %392 = arith.addf %388, %391 : vector<16x128xf32>
    %c71 = arith.constant 71 : index
    %393 = memref.load %arg2[%c71] : memref<81xf32, #tpu.memory_space<smem>>
    %394 = vector.broadcast %393 : f32 to vector<16x128xf32>
    %395 = arith.mulf %394, %81 : vector<16x128xf32>
    %396 = arith.addf %392, %395 : vector<16x128xf32>
    %c72 = arith.constant 72 : index
    %397 = memref.load %arg2[%c72] : memref<81xf32, #tpu.memory_space<smem>>
    %398 = vector.broadcast %397 : f32 to vector<16x128xf32>
    %399 = arith.mulf %398, %90 : vector<16x128xf32>
    %400 = arith.addf %396, %399 : vector<16x128xf32>
    %c73 = arith.constant 73 : index
    %401 = memref.load %arg2[%c73] : memref<81xf32, #tpu.memory_space<smem>>
    %402 = vector.broadcast %401 : f32 to vector<16x128xf32>
    %403 = arith.mulf %402, %93 : vector<16x128xf32>
    %404 = arith.addf %400, %403 : vector<16x128xf32>
    %c74 = arith.constant 74 : index
    %405 = memref.load %arg2[%c74] : memref<81xf32, #tpu.memory_space<smem>>
    %406 = vector.broadcast %405 : f32 to vector<16x128xf32>
    %407 = arith.mulf %406, %96 : vector<16x128xf32>
    %408 = arith.addf %404, %407 : vector<16x128xf32>
    %c75 = arith.constant 75 : index
    %409 = memref.load %arg2[%c75] : memref<81xf32, #tpu.memory_space<smem>>
    %410 = vector.broadcast %409 : f32 to vector<16x128xf32>
    %411 = arith.mulf %410, %84 : vector<16x128xf32>
    %412 = arith.addf %408, %411 : vector<16x128xf32>
    %c76 = arith.constant 76 : index
    %413 = memref.load %arg2[%c76] : memref<81xf32, #tpu.memory_space<smem>>
    %414 = vector.broadcast %413 : f32 to vector<16x128xf32>
    %415 = arith.mulf %414, %33 : vector<16x128xf32>
    %416 = arith.addf %412, %415 : vector<16x128xf32>
    %c77 = arith.constant 77 : index
    %417 = memref.load %arg2[%c77] : memref<81xf32, #tpu.memory_space<smem>>
    %418 = vector.broadcast %417 : f32 to vector<16x128xf32>
    %419 = arith.mulf %418, %87 : vector<16x128xf32>
    %420 = arith.addf %416, %419 : vector<16x128xf32>
    %c78 = arith.constant 78 : index
    %421 = memref.load %arg2[%c78] : memref<81xf32, #tpu.memory_space<smem>>
    %422 = vector.broadcast %421 : f32 to vector<16x128xf32>
    %423 = arith.mulf %422, %99 : vector<16x128xf32>
    %424 = arith.addf %420, %423 : vector<16x128xf32>
    %c79 = arith.constant 79 : index
    %425 = memref.load %arg2[%c79] : memref<81xf32, #tpu.memory_space<smem>>
    %426 = vector.broadcast %425 : f32 to vector<16x128xf32>
    %427 = arith.mulf %426, %102 : vector<16x128xf32>
    %428 = arith.addf %424, %427 : vector<16x128xf32>
    %c80 = arith.constant 80 : index
    %429 = memref.load %arg2[%c80] : memref<81xf32, #tpu.memory_space<smem>>
    %430 = vector.broadcast %429 : f32 to vector<16x128xf32>
    %431 = arith.mulf %430, %105 : vector<16x128xf32>
    %432 = arith.addf %428, %431 : vector<16x128xf32>
    %c2_58 = arith.constant 2 : index
    %433 = memref.load %arg3[%c2_58] : memref<3xf32, #tpu.memory_space<smem>>
    %434 = vector.broadcast %433 : f32 to vector<16x128xf32>
    %435 = arith.addf %432, %434 : vector<16x128xf32>
    %cst_59 = arith.constant 0.000000e+00 : f32
    %436 = vector.broadcast %cst_59 : f32 to vector<16x128xf32>
    %437 = arith.maximumf %215, %436 : vector<16x128xf32>
    %cst_60 = arith.constant 0.000000e+00 : f32
    %438 = vector.broadcast %cst_60 : f32 to vector<16x128xf32>
    %439 = arith.maximumf %325, %438 : vector<16x128xf32>
    %cst_61 = arith.constant 0.000000e+00 : f32
    %440 = vector.broadcast %cst_61 : f32 to vector<16x128xf32>
    %441 = arith.maximumf %435, %440 : vector<16x128xf32>
    %c1_i32_62 = arith.constant 1 : i32
    %442 = tpu.dynamic_rotate %437 by %c1_i32_62 dim 1 : vector<16x128xf32>, i32 -> vector<16x128xf32>
    %cst_63 = arith.constant 0.000000e+00 : f32
    %443 = vector.broadcast %cst_63 : f32 to vector<16x128xf32>
    %444 = arith.select %21, %442, %443 : vector<16x128xi1>, vector<16x128xf32>
    %c127_i32_64 = arith.constant 127 : i32
    %445 = tpu.dynamic_rotate %437 by %c127_i32_64 dim 1 : vector<16x128xf32>, i32 -> vector<16x128xf32>
    %cst_65 = arith.constant 0.000000e+00 : f32
    %446 = vector.broadcast %cst_65 : f32 to vector<16x128xf32>
    %447 = arith.select %23, %445, %446 : vector<16x128xi1>, vector<16x128xf32>
    %c1_i32_66 = arith.constant 1 : i32
    %448 = tpu.dynamic_rotate %444 by %c1_i32_66 dim 0 : vector<16x128xf32>, i32 -> vector<16x128xf32>
    %cst_67 = arith.constant 0.000000e+00 : f32
    %449 = vector.broadcast %cst_67 : f32 to vector<16x128xf32>
    %450 = arith.select %25, %448, %449 : vector<16x128xi1>, vector<16x128xf32>
    %c1_i32_68 = arith.constant 1 : i32
    %451 = tpu.dynamic_rotate %437 by %c1_i32_68 dim 0 : vector<16x128xf32>, i32 -> vector<16x128xf32>
    %cst_69 = arith.constant 0.000000e+00 : f32
    %452 = vector.broadcast %cst_69 : f32 to vector<16x128xf32>
    %453 = arith.select %25, %451, %452 : vector<16x128xi1>, vector<16x128xf32>
    %c1_i32_70 = arith.constant 1 : i32
    %454 = tpu.dynamic_rotate %447 by %c1_i32_70 dim 0 : vector<16x128xf32>, i32 -> vector<16x128xf32>
    %cst_71 = arith.constant 0.000000e+00 : f32
    %455 = vector.broadcast %cst_71 : f32 to vector<16x128xf32>
    %456 = arith.select %25, %454, %455 : vector<16x128xi1>, vector<16x128xf32>
    %c15_i32_72 = arith.constant 15 : i32
    %457 = tpu.dynamic_rotate %444 by %c15_i32_72 dim 0 : vector<16x128xf32>, i32 -> vector<16x128xf32>
    %cst_73 = arith.constant 0.000000e+00 : f32
    %458 = vector.broadcast %cst_73 : f32 to vector<16x128xf32>
    %459 = arith.select %27, %457, %458 : vector<16x128xi1>, vector<16x128xf32>
    %c15_i32_74 = arith.constant 15 : i32
    %460 = tpu.dynamic_rotate %437 by %c15_i32_74 dim 0 : vector<16x128xf32>, i32 -> vector<16x128xf32>
    %cst_75 = arith.constant 0.000000e+00 : f32
    %461 = vector.broadcast %cst_75 : f32 to vector<16x128xf32>
    %462 = arith.select %27, %460, %461 : vector<16x128xi1>, vector<16x128xf32>
    %c15_i32_76 = arith.constant 15 : i32
    %463 = tpu.dynamic_rotate %447 by %c15_i32_76 dim 0 : vector<16x128xf32>, i32 -> vector<16x128xf32>
    %cst_77 = arith.constant 0.000000e+00 : f32
    %464 = vector.broadcast %cst_77 : f32 to vector<16x128xf32>
    %465 = arith.select %27, %463, %464 : vector<16x128xi1>, vector<16x128xf32>
    %c1_i32_78 = arith.constant 1 : i32
    %466 = tpu.dynamic_rotate %439 by %c1_i32_78 dim 1 : vector<16x128xf32>, i32 -> vector<16x128xf32>
    %cst_79 = arith.constant 0.000000e+00 : f32
    %467 = vector.broadcast %cst_79 : f32 to vector<16x128xf32>
    %468 = arith.select %21, %466, %467 : vector<16x128xi1>, vector<16x128xf32>
    %c127_i32_80 = arith.constant 127 : i32
    %469 = tpu.dynamic_rotate %439 by %c127_i32_80 dim 1 : vector<16x128xf32>, i32 -> vector<16x128xf32>
    %cst_81 = arith.constant 0.000000e+00 : f32
    %470 = vector.broadcast %cst_81 : f32 to vector<16x128xf32>
    %471 = arith.select %23, %469, %470 : vector<16x128xi1>, vector<16x128xf32>
    %c1_i32_82 = arith.constant 1 : i32
    %472 = tpu.dynamic_rotate %468 by %c1_i32_82 dim 0 : vector<16x128xf32>, i32 -> vector<16x128xf32>
    %cst_83 = arith.constant 0.000000e+00 : f32
    %473 = vector.broadcast %cst_83 : f32 to vector<16x128xf32>
    %474 = arith.select %25, %472, %473 : vector<16x128xi1>, vector<16x128xf32>
    %c1_i32_84 = arith.constant 1 : i32
    %475 = tpu.dynamic_rotate %439 by %c1_i32_84 dim 0 : vector<16x128xf32>, i32 -> vector<16x128xf32>
    %cst_85 = arith.constant 0.000000e+00 : f32
    %476 = vector.broadcast %cst_85 : f32 to vector<16x128xf32>
    %477 = arith.select %25, %475, %476 : vector<16x128xi1>, vector<16x128xf32>
    %c1_i32_86 = arith.constant 1 : i32
    %478 = tpu.dynamic_rotate %471 by %c1_i32_86 dim 0 : vector<16x128xf32>, i32 -> vector<16x128xf32>
    %cst_87 = arith.constant 0.000000e+00 : f32
    %479 = vector.broadcast %cst_87 : f32 to vector<16x128xf32>
    %480 = arith.select %25, %478, %479 : vector<16x128xi1>, vector<16x128xf32>
    %c15_i32_88 = arith.constant 15 : i32
    %481 = tpu.dynamic_rotate %468 by %c15_i32_88 dim 0 : vector<16x128xf32>, i32 -> vector<16x128xf32>
    %cst_89 = arith.constant 0.000000e+00 : f32
    %482 = vector.broadcast %cst_89 : f32 to vector<16x128xf32>
    %483 = arith.select %27, %481, %482 : vector<16x128xi1>, vector<16x128xf32>
    %c15_i32_90 = arith.constant 15 : i32
    %484 = tpu.dynamic_rotate %439 by %c15_i32_90 dim 0 : vector<16x128xf32>, i32 -> vector<16x128xf32>
    %cst_91 = arith.constant 0.000000e+00 : f32
    %485 = vector.broadcast %cst_91 : f32 to vector<16x128xf32>
    %486 = arith.select %27, %484, %485 : vector<16x128xi1>, vector<16x128xf32>
    %c15_i32_92 = arith.constant 15 : i32
    %487 = tpu.dynamic_rotate %471 by %c15_i32_92 dim 0 : vector<16x128xf32>, i32 -> vector<16x128xf32>
    %cst_93 = arith.constant 0.000000e+00 : f32
    %488 = vector.broadcast %cst_93 : f32 to vector<16x128xf32>
    %489 = arith.select %27, %487, %488 : vector<16x128xi1>, vector<16x128xf32>
    %c1_i32_94 = arith.constant 1 : i32
    %490 = tpu.dynamic_rotate %441 by %c1_i32_94 dim 1 : vector<16x128xf32>, i32 -> vector<16x128xf32>
    %cst_95 = arith.constant 0.000000e+00 : f32
    %491 = vector.broadcast %cst_95 : f32 to vector<16x128xf32>
    %492 = arith.select %21, %490, %491 : vector<16x128xi1>, vector<16x128xf32>
    %c127_i32_96 = arith.constant 127 : i32
    %493 = tpu.dynamic_rotate %441 by %c127_i32_96 dim 1 : vector<16x128xf32>, i32 -> vector<16x128xf32>
    %cst_97 = arith.constant 0.000000e+00 : f32
    %494 = vector.broadcast %cst_97 : f32 to vector<16x128xf32>
    %495 = arith.select %23, %493, %494 : vector<16x128xi1>, vector<16x128xf32>
    %c1_i32_98 = arith.constant 1 : i32
    %496 = tpu.dynamic_rotate %492 by %c1_i32_98 dim 0 : vector<16x128xf32>, i32 -> vector<16x128xf32>
    %cst_99 = arith.constant 0.000000e+00 : f32
    %497 = vector.broadcast %cst_99 : f32 to vector<16x128xf32>
    %498 = arith.select %25, %496, %497 : vector<16x128xi1>, vector<16x128xf32>
    %c1_i32_100 = arith.constant 1 : i32
    %499 = tpu.dynamic_rotate %441 by %c1_i32_100 dim 0 : vector<16x128xf32>, i32 -> vector<16x128xf32>
    %cst_101 = arith.constant 0.000000e+00 : f32
    %500 = vector.broadcast %cst_101 : f32 to vector<16x128xf32>
    %501 = arith.select %25, %499, %500 : vector<16x128xi1>, vector<16x128xf32>
    %c1_i32_102 = arith.constant 1 : i32
    %502 = tpu.dynamic_rotate %495 by %c1_i32_102 dim 0 : vector<16x128xf32>, i32 -> vector<16x128xf32>
    %cst_103 = arith.constant 0.000000e+00 : f32
    %503 = vector.broadcast %cst_103 : f32 to vector<16x128xf32>
    %504 = arith.select %25, %502, %503 : vector<16x128xi1>, vector<16x128xf32>
    %c15_i32_104 = arith.constant 15 : i32
    %505 = tpu.dynamic_rotate %492 by %c15_i32_104 dim 0 : vector<16x128xf32>, i32 -> vector<16x128xf32>
    %cst_105 = arith.constant 0.000000e+00 : f32
    %506 = vector.broadcast %cst_105 : f32 to vector<16x128xf32>
    %507 = arith.select %27, %505, %506 : vector<16x128xi1>, vector<16x128xf32>
    %c15_i32_106 = arith.constant 15 : i32
    %508 = tpu.dynamic_rotate %441 by %c15_i32_106 dim 0 : vector<16x128xf32>, i32 -> vector<16x128xf32>
    %cst_107 = arith.constant 0.000000e+00 : f32
    %509 = vector.broadcast %cst_107 : f32 to vector<16x128xf32>
    %510 = arith.select %27, %508, %509 : vector<16x128xi1>, vector<16x128xf32>
    %c15_i32_108 = arith.constant 15 : i32
    %511 = tpu.dynamic_rotate %495 by %c15_i32_108 dim 0 : vector<16x128xf32>, i32 -> vector<16x128xf32>
    %cst_109 = arith.constant 0.000000e+00 : f32
    %512 = vector.broadcast %cst_109 : f32 to vector<16x128xf32>
    %513 = arith.select %27, %511, %512 : vector<16x128xi1>, vector<16x128xf32>
    %c0_110 = arith.constant 0 : index
    %514 = memref.load %arg4[%c0_110] : memref<81xf32, #tpu.memory_space<smem>>
    %515 = vector.broadcast %514 : f32 to vector<16x128xf32>
    %516 = arith.mulf %515, %450 : vector<16x128xf32>
    %c1_111 = arith.constant 1 : index
    %517 = memref.load %arg4[%c1_111] : memref<81xf32, #tpu.memory_space<smem>>
    %518 = vector.broadcast %517 : f32 to vector<16x128xf32>
    %519 = arith.mulf %518, %453 : vector<16x128xf32>
    %520 = arith.addf %516, %519 : vector<16x128xf32>
    %c2_112 = arith.constant 2 : index
    %521 = memref.load %arg4[%c2_112] : memref<81xf32, #tpu.memory_space<smem>>
    %522 = vector.broadcast %521 : f32 to vector<16x128xf32>
    %523 = arith.mulf %522, %456 : vector<16x128xf32>
    %524 = arith.addf %520, %523 : vector<16x128xf32>
    %c3_113 = arith.constant 3 : index
    %525 = memref.load %arg4[%c3_113] : memref<81xf32, #tpu.memory_space<smem>>
    %526 = vector.broadcast %525 : f32 to vector<16x128xf32>
    %527 = arith.mulf %526, %444 : vector<16x128xf32>
    %528 = arith.addf %524, %527 : vector<16x128xf32>
    %c4_114 = arith.constant 4 : index
    %529 = memref.load %arg4[%c4_114] : memref<81xf32, #tpu.memory_space<smem>>
    %530 = vector.broadcast %529 : f32 to vector<16x128xf32>
    %531 = arith.mulf %530, %437 : vector<16x128xf32>
    %532 = arith.addf %528, %531 : vector<16x128xf32>
    %c5_115 = arith.constant 5 : index
    %533 = memref.load %arg4[%c5_115] : memref<81xf32, #tpu.memory_space<smem>>
    %534 = vector.broadcast %533 : f32 to vector<16x128xf32>
    %535 = arith.mulf %534, %447 : vector<16x128xf32>
    %536 = arith.addf %532, %535 : vector<16x128xf32>
    %c6_116 = arith.constant 6 : index
    %537 = memref.load %arg4[%c6_116] : memref<81xf32, #tpu.memory_space<smem>>
    %538 = vector.broadcast %537 : f32 to vector<16x128xf32>
    %539 = arith.mulf %538, %459 : vector<16x128xf32>
    %540 = arith.addf %536, %539 : vector<16x128xf32>
    %c7_117 = arith.constant 7 : index
    %541 = memref.load %arg4[%c7_117] : memref<81xf32, #tpu.memory_space<smem>>
    %542 = vector.broadcast %541 : f32 to vector<16x128xf32>
    %543 = arith.mulf %542, %462 : vector<16x128xf32>
    %544 = arith.addf %540, %543 : vector<16x128xf32>
    %c8_118 = arith.constant 8 : index
    %545 = memref.load %arg4[%c8_118] : memref<81xf32, #tpu.memory_space<smem>>
    %546 = vector.broadcast %545 : f32 to vector<16x128xf32>
    %547 = arith.mulf %546, %465 : vector<16x128xf32>
    %548 = arith.addf %544, %547 : vector<16x128xf32>
    %c9_119 = arith.constant 9 : index
    %549 = memref.load %arg4[%c9_119] : memref<81xf32, #tpu.memory_space<smem>>
    %550 = vector.broadcast %549 : f32 to vector<16x128xf32>
    %551 = arith.mulf %550, %474 : vector<16x128xf32>
    %552 = arith.addf %548, %551 : vector<16x128xf32>
    %c10_120 = arith.constant 10 : index
    %553 = memref.load %arg4[%c10_120] : memref<81xf32, #tpu.memory_space<smem>>
    %554 = vector.broadcast %553 : f32 to vector<16x128xf32>
    %555 = arith.mulf %554, %477 : vector<16x128xf32>
    %556 = arith.addf %552, %555 : vector<16x128xf32>
    %c11_121 = arith.constant 11 : index
    %557 = memref.load %arg4[%c11_121] : memref<81xf32, #tpu.memory_space<smem>>
    %558 = vector.broadcast %557 : f32 to vector<16x128xf32>
    %559 = arith.mulf %558, %480 : vector<16x128xf32>
    %560 = arith.addf %556, %559 : vector<16x128xf32>
    %c12_122 = arith.constant 12 : index
    %561 = memref.load %arg4[%c12_122] : memref<81xf32, #tpu.memory_space<smem>>
    %562 = vector.broadcast %561 : f32 to vector<16x128xf32>
    %563 = arith.mulf %562, %468 : vector<16x128xf32>
    %564 = arith.addf %560, %563 : vector<16x128xf32>
    %c13_123 = arith.constant 13 : index
    %565 = memref.load %arg4[%c13_123] : memref<81xf32, #tpu.memory_space<smem>>
    %566 = vector.broadcast %565 : f32 to vector<16x128xf32>
    %567 = arith.mulf %566, %439 : vector<16x128xf32>
    %568 = arith.addf %564, %567 : vector<16x128xf32>
    %c14_124 = arith.constant 14 : index
    %569 = memref.load %arg4[%c14_124] : memref<81xf32, #tpu.memory_space<smem>>
    %570 = vector.broadcast %569 : f32 to vector<16x128xf32>
    %571 = arith.mulf %570, %471 : vector<16x128xf32>
    %572 = arith.addf %568, %571 : vector<16x128xf32>
    %c15_125 = arith.constant 15 : index
    %573 = memref.load %arg4[%c15_125] : memref<81xf32, #tpu.memory_space<smem>>
    %574 = vector.broadcast %573 : f32 to vector<16x128xf32>
    %575 = arith.mulf %574, %483 : vector<16x128xf32>
    %576 = arith.addf %572, %575 : vector<16x128xf32>
    %c16_126 = arith.constant 16 : index
    %577 = memref.load %arg4[%c16_126] : memref<81xf32, #tpu.memory_space<smem>>
    %578 = vector.broadcast %577 : f32 to vector<16x128xf32>
    %579 = arith.mulf %578, %486 : vector<16x128xf32>
    %580 = arith.addf %576, %579 : vector<16x128xf32>
    %c17_127 = arith.constant 17 : index
    %581 = memref.load %arg4[%c17_127] : memref<81xf32, #tpu.memory_space<smem>>
    %582 = vector.broadcast %581 : f32 to vector<16x128xf32>
    %583 = arith.mulf %582, %489 : vector<16x128xf32>
    %584 = arith.addf %580, %583 : vector<16x128xf32>
    %c18_128 = arith.constant 18 : index
    %585 = memref.load %arg4[%c18_128] : memref<81xf32, #tpu.memory_space<smem>>
    %586 = vector.broadcast %585 : f32 to vector<16x128xf32>
    %587 = arith.mulf %586, %498 : vector<16x128xf32>
    %588 = arith.addf %584, %587 : vector<16x128xf32>
    %c19_129 = arith.constant 19 : index
    %589 = memref.load %arg4[%c19_129] : memref<81xf32, #tpu.memory_space<smem>>
    %590 = vector.broadcast %589 : f32 to vector<16x128xf32>
    %591 = arith.mulf %590, %501 : vector<16x128xf32>
    %592 = arith.addf %588, %591 : vector<16x128xf32>
    %c20_130 = arith.constant 20 : index
    %593 = memref.load %arg4[%c20_130] : memref<81xf32, #tpu.memory_space<smem>>
    %594 = vector.broadcast %593 : f32 to vector<16x128xf32>
    %595 = arith.mulf %594, %504 : vector<16x128xf32>
    %596 = arith.addf %592, %595 : vector<16x128xf32>
    %c21_131 = arith.constant 21 : index
    %597 = memref.load %arg4[%c21_131] : memref<81xf32, #tpu.memory_space<smem>>
    %598 = vector.broadcast %597 : f32 to vector<16x128xf32>
    %599 = arith.mulf %598, %492 : vector<16x128xf32>
    %600 = arith.addf %596, %599 : vector<16x128xf32>
    %c22_132 = arith.constant 22 : index
    %601 = memref.load %arg4[%c22_132] : memref<81xf32, #tpu.memory_space<smem>>
    %602 = vector.broadcast %601 : f32 to vector<16x128xf32>
    %603 = arith.mulf %602, %441 : vector<16x128xf32>
    %604 = arith.addf %600, %603 : vector<16x128xf32>
    %c23_133 = arith.constant 23 : index
    %605 = memref.load %arg4[%c23_133] : memref<81xf32, #tpu.memory_space<smem>>
    %606 = vector.broadcast %605 : f32 to vector<16x128xf32>
    %607 = arith.mulf %606, %495 : vector<16x128xf32>
    %608 = arith.addf %604, %607 : vector<16x128xf32>
    %c24_134 = arith.constant 24 : index
    %609 = memref.load %arg4[%c24_134] : memref<81xf32, #tpu.memory_space<smem>>
    %610 = vector.broadcast %609 : f32 to vector<16x128xf32>
    %611 = arith.mulf %610, %507 : vector<16x128xf32>
    %612 = arith.addf %608, %611 : vector<16x128xf32>
    %c25_135 = arith.constant 25 : index
    %613 = memref.load %arg4[%c25_135] : memref<81xf32, #tpu.memory_space<smem>>
    %614 = vector.broadcast %613 : f32 to vector<16x128xf32>
    %615 = arith.mulf %614, %510 : vector<16x128xf32>
    %616 = arith.addf %612, %615 : vector<16x128xf32>
    %c26_136 = arith.constant 26 : index
    %617 = memref.load %arg4[%c26_136] : memref<81xf32, #tpu.memory_space<smem>>
    %618 = vector.broadcast %617 : f32 to vector<16x128xf32>
    %619 = arith.mulf %618, %513 : vector<16x128xf32>
    %620 = arith.addf %616, %619 : vector<16x128xf32>
    %c0_137 = arith.constant 0 : index
    %621 = memref.load %arg5[%c0_137] : memref<3xf32, #tpu.memory_space<smem>>
    %622 = vector.broadcast %621 : f32 to vector<16x128xf32>
    %623 = arith.addf %620, %622 : vector<16x128xf32>
    %c27_138 = arith.constant 27 : index
    %624 = memref.load %arg4[%c27_138] : memref<81xf32, #tpu.memory_space<smem>>
    %625 = vector.broadcast %624 : f32 to vector<16x128xf32>
    %626 = arith.mulf %625, %450 : vector<16x128xf32>
    %c28_139 = arith.constant 28 : index
    %627 = memref.load %arg4[%c28_139] : memref<81xf32, #tpu.memory_space<smem>>
    %628 = vector.broadcast %627 : f32 to vector<16x128xf32>
    %629 = arith.mulf %628, %453 : vector<16x128xf32>
    %630 = arith.addf %626, %629 : vector<16x128xf32>
    %c29_140 = arith.constant 29 : index
    %631 = memref.load %arg4[%c29_140] : memref<81xf32, #tpu.memory_space<smem>>
    %632 = vector.broadcast %631 : f32 to vector<16x128xf32>
    %633 = arith.mulf %632, %456 : vector<16x128xf32>
    %634 = arith.addf %630, %633 : vector<16x128xf32>
    %c30_141 = arith.constant 30 : index
    %635 = memref.load %arg4[%c30_141] : memref<81xf32, #tpu.memory_space<smem>>
    %636 = vector.broadcast %635 : f32 to vector<16x128xf32>
    %637 = arith.mulf %636, %444 : vector<16x128xf32>
    %638 = arith.addf %634, %637 : vector<16x128xf32>
    %c31_142 = arith.constant 31 : index
    %639 = memref.load %arg4[%c31_142] : memref<81xf32, #tpu.memory_space<smem>>
    %640 = vector.broadcast %639 : f32 to vector<16x128xf32>
    %641 = arith.mulf %640, %437 : vector<16x128xf32>
    %642 = arith.addf %638, %641 : vector<16x128xf32>
    %c32_143 = arith.constant 32 : index
    %643 = memref.load %arg4[%c32_143] : memref<81xf32, #tpu.memory_space<smem>>
    %644 = vector.broadcast %643 : f32 to vector<16x128xf32>
    %645 = arith.mulf %644, %447 : vector<16x128xf32>
    %646 = arith.addf %642, %645 : vector<16x128xf32>
    %c33_144 = arith.constant 33 : index
    %647 = memref.load %arg4[%c33_144] : memref<81xf32, #tpu.memory_space<smem>>
    %648 = vector.broadcast %647 : f32 to vector<16x128xf32>
    %649 = arith.mulf %648, %459 : vector<16x128xf32>
    %650 = arith.addf %646, %649 : vector<16x128xf32>
    %c34_145 = arith.constant 34 : index
    %651 = memref.load %arg4[%c34_145] : memref<81xf32, #tpu.memory_space<smem>>
    %652 = vector.broadcast %651 : f32 to vector<16x128xf32>
    %653 = arith.mulf %652, %462 : vector<16x128xf32>
    %654 = arith.addf %650, %653 : vector<16x128xf32>
    %c35_146 = arith.constant 35 : index
    %655 = memref.load %arg4[%c35_146] : memref<81xf32, #tpu.memory_space<smem>>
    %656 = vector.broadcast %655 : f32 to vector<16x128xf32>
    %657 = arith.mulf %656, %465 : vector<16x128xf32>
    %658 = arith.addf %654, %657 : vector<16x128xf32>
    %c36_147 = arith.constant 36 : index
    %659 = memref.load %arg4[%c36_147] : memref<81xf32, #tpu.memory_space<smem>>
    %660 = vector.broadcast %659 : f32 to vector<16x128xf32>
    %661 = arith.mulf %660, %474 : vector<16x128xf32>
    %662 = arith.addf %658, %661 : vector<16x128xf32>
    %c37_148 = arith.constant 37 : index
    %663 = memref.load %arg4[%c37_148] : memref<81xf32, #tpu.memory_space<smem>>
    %664 = vector.broadcast %663 : f32 to vector<16x128xf32>
    %665 = arith.mulf %664, %477 : vector<16x128xf32>
    %666 = arith.addf %662, %665 : vector<16x128xf32>
    %c38_149 = arith.constant 38 : index
    %667 = memref.load %arg4[%c38_149] : memref<81xf32, #tpu.memory_space<smem>>
    %668 = vector.broadcast %667 : f32 to vector<16x128xf32>
    %669 = arith.mulf %668, %480 : vector<16x128xf32>
    %670 = arith.addf %666, %669 : vector<16x128xf32>
    %c39_150 = arith.constant 39 : index
    %671 = memref.load %arg4[%c39_150] : memref<81xf32, #tpu.memory_space<smem>>
    %672 = vector.broadcast %671 : f32 to vector<16x128xf32>
    %673 = arith.mulf %672, %468 : vector<16x128xf32>
    %674 = arith.addf %670, %673 : vector<16x128xf32>
    %c40_151 = arith.constant 40 : index
    %675 = memref.load %arg4[%c40_151] : memref<81xf32, #tpu.memory_space<smem>>
    %676 = vector.broadcast %675 : f32 to vector<16x128xf32>
    %677 = arith.mulf %676, %439 : vector<16x128xf32>
    %678 = arith.addf %674, %677 : vector<16x128xf32>
    %c41_152 = arith.constant 41 : index
    %679 = memref.load %arg4[%c41_152] : memref<81xf32, #tpu.memory_space<smem>>
    %680 = vector.broadcast %679 : f32 to vector<16x128xf32>
    %681 = arith.mulf %680, %471 : vector<16x128xf32>
    %682 = arith.addf %678, %681 : vector<16x128xf32>
    %c42_153 = arith.constant 42 : index
    %683 = memref.load %arg4[%c42_153] : memref<81xf32, #tpu.memory_space<smem>>
    %684 = vector.broadcast %683 : f32 to vector<16x128xf32>
    %685 = arith.mulf %684, %483 : vector<16x128xf32>
    %686 = arith.addf %682, %685 : vector<16x128xf32>
    %c43_154 = arith.constant 43 : index
    %687 = memref.load %arg4[%c43_154] : memref<81xf32, #tpu.memory_space<smem>>
    %688 = vector.broadcast %687 : f32 to vector<16x128xf32>
    %689 = arith.mulf %688, %486 : vector<16x128xf32>
    %690 = arith.addf %686, %689 : vector<16x128xf32>
    %c44_155 = arith.constant 44 : index
    %691 = memref.load %arg4[%c44_155] : memref<81xf32, #tpu.memory_space<smem>>
    %692 = vector.broadcast %691 : f32 to vector<16x128xf32>
    %693 = arith.mulf %692, %489 : vector<16x128xf32>
    %694 = arith.addf %690, %693 : vector<16x128xf32>
    %c45_156 = arith.constant 45 : index
    %695 = memref.load %arg4[%c45_156] : memref<81xf32, #tpu.memory_space<smem>>
    %696 = vector.broadcast %695 : f32 to vector<16x128xf32>
    %697 = arith.mulf %696, %498 : vector<16x128xf32>
    %698 = arith.addf %694, %697 : vector<16x128xf32>
    %c46_157 = arith.constant 46 : index
    %699 = memref.load %arg4[%c46_157] : memref<81xf32, #tpu.memory_space<smem>>
    %700 = vector.broadcast %699 : f32 to vector<16x128xf32>
    %701 = arith.mulf %700, %501 : vector<16x128xf32>
    %702 = arith.addf %698, %701 : vector<16x128xf32>
    %c47_158 = arith.constant 47 : index
    %703 = memref.load %arg4[%c47_158] : memref<81xf32, #tpu.memory_space<smem>>
    %704 = vector.broadcast %703 : f32 to vector<16x128xf32>
    %705 = arith.mulf %704, %504 : vector<16x128xf32>
    %706 = arith.addf %702, %705 : vector<16x128xf32>
    %c48_159 = arith.constant 48 : index
    %707 = memref.load %arg4[%c48_159] : memref<81xf32, #tpu.memory_space<smem>>
    %708 = vector.broadcast %707 : f32 to vector<16x128xf32>
    %709 = arith.mulf %708, %492 : vector<16x128xf32>
    %710 = arith.addf %706, %709 : vector<16x128xf32>
    %c49_160 = arith.constant 49 : index
    %711 = memref.load %arg4[%c49_160] : memref<81xf32, #tpu.memory_space<smem>>
    %712 = vector.broadcast %711 : f32 to vector<16x128xf32>
    %713 = arith.mulf %712, %441 : vector<16x128xf32>
    %714 = arith.addf %710, %713 : vector<16x128xf32>
    %c50_161 = arith.constant 50 : index
    %715 = memref.load %arg4[%c50_161] : memref<81xf32, #tpu.memory_space<smem>>
    %716 = vector.broadcast %715 : f32 to vector<16x128xf32>
    %717 = arith.mulf %716, %495 : vector<16x128xf32>
    %718 = arith.addf %714, %717 : vector<16x128xf32>
    %c51_162 = arith.constant 51 : index
    %719 = memref.load %arg4[%c51_162] : memref<81xf32, #tpu.memory_space<smem>>
    %720 = vector.broadcast %719 : f32 to vector<16x128xf32>
    %721 = arith.mulf %720, %507 : vector<16x128xf32>
    %722 = arith.addf %718, %721 : vector<16x128xf32>
    %c52_163 = arith.constant 52 : index
    %723 = memref.load %arg4[%c52_163] : memref<81xf32, #tpu.memory_space<smem>>
    %724 = vector.broadcast %723 : f32 to vector<16x128xf32>
    %725 = arith.mulf %724, %510 : vector<16x128xf32>
    %726 = arith.addf %722, %725 : vector<16x128xf32>
    %c53_164 = arith.constant 53 : index
    %727 = memref.load %arg4[%c53_164] : memref<81xf32, #tpu.memory_space<smem>>
    %728 = vector.broadcast %727 : f32 to vector<16x128xf32>
    %729 = arith.mulf %728, %513 : vector<16x128xf32>
    %730 = arith.addf %726, %729 : vector<16x128xf32>
    %c1_165 = arith.constant 1 : index
    %731 = memref.load %arg5[%c1_165] : memref<3xf32, #tpu.memory_space<smem>>
    %732 = vector.broadcast %731 : f32 to vector<16x128xf32>
    %733 = arith.addf %730, %732 : vector<16x128xf32>
    %c54_166 = arith.constant 54 : index
    %734 = memref.load %arg4[%c54_166] : memref<81xf32, #tpu.memory_space<smem>>
    %735 = vector.broadcast %734 : f32 to vector<16x128xf32>
    %736 = arith.mulf %735, %450 : vector<16x128xf32>
    %c55_167 = arith.constant 55 : index
    %737 = memref.load %arg4[%c55_167] : memref<81xf32, #tpu.memory_space<smem>>
    %738 = vector.broadcast %737 : f32 to vector<16x128xf32>
    %739 = arith.mulf %738, %453 : vector<16x128xf32>
    %740 = arith.addf %736, %739 : vector<16x128xf32>
    %c56_168 = arith.constant 56 : index
    %741 = memref.load %arg4[%c56_168] : memref<81xf32, #tpu.memory_space<smem>>
    %742 = vector.broadcast %741 : f32 to vector<16x128xf32>
    %743 = arith.mulf %742, %456 : vector<16x128xf32>
    %744 = arith.addf %740, %743 : vector<16x128xf32>
    %c57_169 = arith.constant 57 : index
    %745 = memref.load %arg4[%c57_169] : memref<81xf32, #tpu.memory_space<smem>>
    %746 = vector.broadcast %745 : f32 to vector<16x128xf32>
    %747 = arith.mulf %746, %444 : vector<16x128xf32>
    %748 = arith.addf %744, %747 : vector<16x128xf32>
    %c58_170 = arith.constant 58 : index
    %749 = memref.load %arg4[%c58_170] : memref<81xf32, #tpu.memory_space<smem>>
    %750 = vector.broadcast %749 : f32 to vector<16x128xf32>
    %751 = arith.mulf %750, %437 : vector<16x128xf32>
    %752 = arith.addf %748, %751 : vector<16x128xf32>
    %c59_171 = arith.constant 59 : index
    %753 = memref.load %arg4[%c59_171] : memref<81xf32, #tpu.memory_space<smem>>
    %754 = vector.broadcast %753 : f32 to vector<16x128xf32>
    %755 = arith.mulf %754, %447 : vector<16x128xf32>
    %756 = arith.addf %752, %755 : vector<16x128xf32>
    %c60_172 = arith.constant 60 : index
    %757 = memref.load %arg4[%c60_172] : memref<81xf32, #tpu.memory_space<smem>>
    %758 = vector.broadcast %757 : f32 to vector<16x128xf32>
    %759 = arith.mulf %758, %459 : vector<16x128xf32>
    %760 = arith.addf %756, %759 : vector<16x128xf32>
    %c61_173 = arith.constant 61 : index
    %761 = memref.load %arg4[%c61_173] : memref<81xf32, #tpu.memory_space<smem>>
    %762 = vector.broadcast %761 : f32 to vector<16x128xf32>
    %763 = arith.mulf %762, %462 : vector<16x128xf32>
    %764 = arith.addf %760, %763 : vector<16x128xf32>
    %c62_174 = arith.constant 62 : index
    %765 = memref.load %arg4[%c62_174] : memref<81xf32, #tpu.memory_space<smem>>
    %766 = vector.broadcast %765 : f32 to vector<16x128xf32>
    %767 = arith.mulf %766, %465 : vector<16x128xf32>
    %768 = arith.addf %764, %767 : vector<16x128xf32>
    %c63_175 = arith.constant 63 : index
    %769 = memref.load %arg4[%c63_175] : memref<81xf32, #tpu.memory_space<smem>>
    %770 = vector.broadcast %769 : f32 to vector<16x128xf32>
    %771 = arith.mulf %770, %474 : vector<16x128xf32>
    %772 = arith.addf %768, %771 : vector<16x128xf32>
    %c64_176 = arith.constant 64 : index
    %773 = memref.load %arg4[%c64_176] : memref<81xf32, #tpu.memory_space<smem>>
    %774 = vector.broadcast %773 : f32 to vector<16x128xf32>
    %775 = arith.mulf %774, %477 : vector<16x128xf32>
    %776 = arith.addf %772, %775 : vector<16x128xf32>
    %c65_177 = arith.constant 65 : index
    %777 = memref.load %arg4[%c65_177] : memref<81xf32, #tpu.memory_space<smem>>
    %778 = vector.broadcast %777 : f32 to vector<16x128xf32>
    %779 = arith.mulf %778, %480 : vector<16x128xf32>
    %780 = arith.addf %776, %779 : vector<16x128xf32>
    %c66_178 = arith.constant 66 : index
    %781 = memref.load %arg4[%c66_178] : memref<81xf32, #tpu.memory_space<smem>>
    %782 = vector.broadcast %781 : f32 to vector<16x128xf32>
    %783 = arith.mulf %782, %468 : vector<16x128xf32>
    %784 = arith.addf %780, %783 : vector<16x128xf32>
    %c67_179 = arith.constant 67 : index
    %785 = memref.load %arg4[%c67_179] : memref<81xf32, #tpu.memory_space<smem>>
    %786 = vector.broadcast %785 : f32 to vector<16x128xf32>
    %787 = arith.mulf %786, %439 : vector<16x128xf32>
    %788 = arith.addf %784, %787 : vector<16x128xf32>
    %c68_180 = arith.constant 68 : index
    %789 = memref.load %arg4[%c68_180] : memref<81xf32, #tpu.memory_space<smem>>
    %790 = vector.broadcast %789 : f32 to vector<16x128xf32>
    %791 = arith.mulf %790, %471 : vector<16x128xf32>
    %792 = arith.addf %788, %791 : vector<16x128xf32>
    %c69_181 = arith.constant 69 : index
    %793 = memref.load %arg4[%c69_181] : memref<81xf32, #tpu.memory_space<smem>>
    %794 = vector.broadcast %793 : f32 to vector<16x128xf32>
    %795 = arith.mulf %794, %483 : vector<16x128xf32>
    %796 = arith.addf %792, %795 : vector<16x128xf32>
    %c70_182 = arith.constant 70 : index
    %797 = memref.load %arg4[%c70_182] : memref<81xf32, #tpu.memory_space<smem>>
    %798 = vector.broadcast %797 : f32 to vector<16x128xf32>
    %799 = arith.mulf %798, %486 : vector<16x128xf32>
    %800 = arith.addf %796, %799 : vector<16x128xf32>
    %c71_183 = arith.constant 71 : index
    %801 = memref.load %arg4[%c71_183] : memref<81xf32, #tpu.memory_space<smem>>
    %802 = vector.broadcast %801 : f32 to vector<16x128xf32>
    %803 = arith.mulf %802, %489 : vector<16x128xf32>
    %804 = arith.addf %800, %803 : vector<16x128xf32>
    %c72_184 = arith.constant 72 : index
    %805 = memref.load %arg4[%c72_184] : memref<81xf32, #tpu.memory_space<smem>>
    %806 = vector.broadcast %805 : f32 to vector<16x128xf32>
    %807 = arith.mulf %806, %498 : vector<16x128xf32>
    %808 = arith.addf %804, %807 : vector<16x128xf32>
    %c73_185 = arith.constant 73 : index
    %809 = memref.load %arg4[%c73_185] : memref<81xf32, #tpu.memory_space<smem>>
    %810 = vector.broadcast %809 : f32 to vector<16x128xf32>
    %811 = arith.mulf %810, %501 : vector<16x128xf32>
    %812 = arith.addf %808, %811 : vector<16x128xf32>
    %c74_186 = arith.constant 74 : index
    %813 = memref.load %arg4[%c74_186] : memref<81xf32, #tpu.memory_space<smem>>
    %814 = vector.broadcast %813 : f32 to vector<16x128xf32>
    %815 = arith.mulf %814, %504 : vector<16x128xf32>
    %816 = arith.addf %812, %815 : vector<16x128xf32>
    %c75_187 = arith.constant 75 : index
    %817 = memref.load %arg4[%c75_187] : memref<81xf32, #tpu.memory_space<smem>>
    %818 = vector.broadcast %817 : f32 to vector<16x128xf32>
    %819 = arith.mulf %818, %492 : vector<16x128xf32>
    %820 = arith.addf %816, %819 : vector<16x128xf32>
    %c76_188 = arith.constant 76 : index
    %821 = memref.load %arg4[%c76_188] : memref<81xf32, #tpu.memory_space<smem>>
    %822 = vector.broadcast %821 : f32 to vector<16x128xf32>
    %823 = arith.mulf %822, %441 : vector<16x128xf32>
    %824 = arith.addf %820, %823 : vector<16x128xf32>
    %c77_189 = arith.constant 77 : index
    %825 = memref.load %arg4[%c77_189] : memref<81xf32, #tpu.memory_space<smem>>
    %826 = vector.broadcast %825 : f32 to vector<16x128xf32>
    %827 = arith.mulf %826, %495 : vector<16x128xf32>
    %828 = arith.addf %824, %827 : vector<16x128xf32>
    %c78_190 = arith.constant 78 : index
    %829 = memref.load %arg4[%c78_190] : memref<81xf32, #tpu.memory_space<smem>>
    %830 = vector.broadcast %829 : f32 to vector<16x128xf32>
    %831 = arith.mulf %830, %507 : vector<16x128xf32>
    %832 = arith.addf %828, %831 : vector<16x128xf32>
    %c79_191 = arith.constant 79 : index
    %833 = memref.load %arg4[%c79_191] : memref<81xf32, #tpu.memory_space<smem>>
    %834 = vector.broadcast %833 : f32 to vector<16x128xf32>
    %835 = arith.mulf %834, %510 : vector<16x128xf32>
    %836 = arith.addf %832, %835 : vector<16x128xf32>
    %c80_192 = arith.constant 80 : index
    %837 = memref.load %arg4[%c80_192] : memref<81xf32, #tpu.memory_space<smem>>
    %838 = vector.broadcast %837 : f32 to vector<16x128xf32>
    %839 = arith.mulf %838, %513 : vector<16x128xf32>
    %840 = arith.addf %836, %839 : vector<16x128xf32>
    %c2_193 = arith.constant 2 : index
    %841 = memref.load %arg5[%c2_193] : memref<3xf32, #tpu.memory_space<smem>>
    %842 = vector.broadcast %841 : f32 to vector<16x128xf32>
    %843 = arith.addf %840, %842 : vector<16x128xf32>
    %cst_194 = arith.constant 0.000000e+00 : f32
    %844 = vector.broadcast %cst_194 : f32 to vector<16x128xf32>
    %845 = arith.maximumf %623, %844 : vector<16x128xf32>
    %846 = arith.addf %437, %845 : vector<16x128xf32>
    %cst_195 = arith.constant 0.000000e+00 : f32
    %847 = vector.broadcast %cst_195 : f32 to vector<16x128xf32>
    %848 = arith.maximumf %733, %847 : vector<16x128xf32>
    %849 = arith.addf %439, %848 : vector<16x128xf32>
    %cst_196 = arith.constant 0.000000e+00 : f32
    %850 = vector.broadcast %cst_196 : f32 to vector<16x128xf32>
    %851 = arith.maximumf %843, %850 : vector<16x128xf32>
    %852 = arith.addf %441, %851 : vector<16x128xf32>
    %c1_i32_197 = arith.constant 1 : i32
    %853 = tpu.dynamic_rotate %846 by %c1_i32_197 dim 1 : vector<16x128xf32>, i32 -> vector<16x128xf32>
    %cst_198 = arith.constant 0.000000e+00 : f32
    %854 = vector.broadcast %cst_198 : f32 to vector<16x128xf32>
    %855 = arith.select %21, %853, %854 : vector<16x128xi1>, vector<16x128xf32>
    %c127_i32_199 = arith.constant 127 : i32
    %856 = tpu.dynamic_rotate %846 by %c127_i32_199 dim 1 : vector<16x128xf32>, i32 -> vector<16x128xf32>
    %cst_200 = arith.constant 0.000000e+00 : f32
    %857 = vector.broadcast %cst_200 : f32 to vector<16x128xf32>
    %858 = arith.select %23, %856, %857 : vector<16x128xi1>, vector<16x128xf32>
    %c1_i32_201 = arith.constant 1 : i32
    %859 = tpu.dynamic_rotate %855 by %c1_i32_201 dim 0 : vector<16x128xf32>, i32 -> vector<16x128xf32>
    %cst_202 = arith.constant 0.000000e+00 : f32
    %860 = vector.broadcast %cst_202 : f32 to vector<16x128xf32>
    %861 = arith.select %25, %859, %860 : vector<16x128xi1>, vector<16x128xf32>
    %c1_i32_203 = arith.constant 1 : i32
    %862 = tpu.dynamic_rotate %846 by %c1_i32_203 dim 0 : vector<16x128xf32>, i32 -> vector<16x128xf32>
    %cst_204 = arith.constant 0.000000e+00 : f32
    %863 = vector.broadcast %cst_204 : f32 to vector<16x128xf32>
    %864 = arith.select %25, %862, %863 : vector<16x128xi1>, vector<16x128xf32>
    %c1_i32_205 = arith.constant 1 : i32
    %865 = tpu.dynamic_rotate %858 by %c1_i32_205 dim 0 : vector<16x128xf32>, i32 -> vector<16x128xf32>
    %cst_206 = arith.constant 0.000000e+00 : f32
    %866 = vector.broadcast %cst_206 : f32 to vector<16x128xf32>
    %867 = arith.select %25, %865, %866 : vector<16x128xi1>, vector<16x128xf32>
    %c15_i32_207 = arith.constant 15 : i32
    %868 = tpu.dynamic_rotate %855 by %c15_i32_207 dim 0 : vector<16x128xf32>, i32 -> vector<16x128xf32>
    %cst_208 = arith.constant 0.000000e+00 : f32
    %869 = vector.broadcast %cst_208 : f32 to vector<16x128xf32>
    %870 = arith.select %27, %868, %869 : vector<16x128xi1>, vector<16x128xf32>
    %c15_i32_209 = arith.constant 15 : i32
    %871 = tpu.dynamic_rotate %846 by %c15_i32_209 dim 0 : vector<16x128xf32>, i32 -> vector<16x128xf32>
    %cst_210 = arith.constant 0.000000e+00 : f32
    %872 = vector.broadcast %cst_210 : f32 to vector<16x128xf32>
    %873 = arith.select %27, %871, %872 : vector<16x128xi1>, vector<16x128xf32>
    %c15_i32_211 = arith.constant 15 : i32
    %874 = tpu.dynamic_rotate %858 by %c15_i32_211 dim 0 : vector<16x128xf32>, i32 -> vector<16x128xf32>
    %cst_212 = arith.constant 0.000000e+00 : f32
    %875 = vector.broadcast %cst_212 : f32 to vector<16x128xf32>
    %876 = arith.select %27, %874, %875 : vector<16x128xi1>, vector<16x128xf32>
    %c1_i32_213 = arith.constant 1 : i32
    %877 = tpu.dynamic_rotate %849 by %c1_i32_213 dim 1 : vector<16x128xf32>, i32 -> vector<16x128xf32>
    %cst_214 = arith.constant 0.000000e+00 : f32
    %878 = vector.broadcast %cst_214 : f32 to vector<16x128xf32>
    %879 = arith.select %21, %877, %878 : vector<16x128xi1>, vector<16x128xf32>
    %c127_i32_215 = arith.constant 127 : i32
    %880 = tpu.dynamic_rotate %849 by %c127_i32_215 dim 1 : vector<16x128xf32>, i32 -> vector<16x128xf32>
    %cst_216 = arith.constant 0.000000e+00 : f32
    %881 = vector.broadcast %cst_216 : f32 to vector<16x128xf32>
    %882 = arith.select %23, %880, %881 : vector<16x128xi1>, vector<16x128xf32>
    %c1_i32_217 = arith.constant 1 : i32
    %883 = tpu.dynamic_rotate %879 by %c1_i32_217 dim 0 : vector<16x128xf32>, i32 -> vector<16x128xf32>
    %cst_218 = arith.constant 0.000000e+00 : f32
    %884 = vector.broadcast %cst_218 : f32 to vector<16x128xf32>
    %885 = arith.select %25, %883, %884 : vector<16x128xi1>, vector<16x128xf32>
    %c1_i32_219 = arith.constant 1 : i32
    %886 = tpu.dynamic_rotate %849 by %c1_i32_219 dim 0 : vector<16x128xf32>, i32 -> vector<16x128xf32>
    %cst_220 = arith.constant 0.000000e+00 : f32
    %887 = vector.broadcast %cst_220 : f32 to vector<16x128xf32>
    %888 = arith.select %25, %886, %887 : vector<16x128xi1>, vector<16x128xf32>
    %c1_i32_221 = arith.constant 1 : i32
    %889 = tpu.dynamic_rotate %882 by %c1_i32_221 dim 0 : vector<16x128xf32>, i32 -> vector<16x128xf32>
    %cst_222 = arith.constant 0.000000e+00 : f32
    %890 = vector.broadcast %cst_222 : f32 to vector<16x128xf32>
    %891 = arith.select %25, %889, %890 : vector<16x128xi1>, vector<16x128xf32>
    %c15_i32_223 = arith.constant 15 : i32
    %892 = tpu.dynamic_rotate %879 by %c15_i32_223 dim 0 : vector<16x128xf32>, i32 -> vector<16x128xf32>
    %cst_224 = arith.constant 0.000000e+00 : f32
    %893 = vector.broadcast %cst_224 : f32 to vector<16x128xf32>
    %894 = arith.select %27, %892, %893 : vector<16x128xi1>, vector<16x128xf32>
    %c15_i32_225 = arith.constant 15 : i32
    %895 = tpu.dynamic_rotate %849 by %c15_i32_225 dim 0 : vector<16x128xf32>, i32 -> vector<16x128xf32>
    %cst_226 = arith.constant 0.000000e+00 : f32
    %896 = vector.broadcast %cst_226 : f32 to vector<16x128xf32>
    %897 = arith.select %27, %895, %896 : vector<16x128xi1>, vector<16x128xf32>
    %c15_i32_227 = arith.constant 15 : i32
    %898 = tpu.dynamic_rotate %882 by %c15_i32_227 dim 0 : vector<16x128xf32>, i32 -> vector<16x128xf32>
    %cst_228 = arith.constant 0.000000e+00 : f32
    %899 = vector.broadcast %cst_228 : f32 to vector<16x128xf32>
    %900 = arith.select %27, %898, %899 : vector<16x128xi1>, vector<16x128xf32>
    %c1_i32_229 = arith.constant 1 : i32
    %901 = tpu.dynamic_rotate %852 by %c1_i32_229 dim 1 : vector<16x128xf32>, i32 -> vector<16x128xf32>
    %cst_230 = arith.constant 0.000000e+00 : f32
    %902 = vector.broadcast %cst_230 : f32 to vector<16x128xf32>
    %903 = arith.select %21, %901, %902 : vector<16x128xi1>, vector<16x128xf32>
    %c127_i32_231 = arith.constant 127 : i32
    %904 = tpu.dynamic_rotate %852 by %c127_i32_231 dim 1 : vector<16x128xf32>, i32 -> vector<16x128xf32>
    %cst_232 = arith.constant 0.000000e+00 : f32
    %905 = vector.broadcast %cst_232 : f32 to vector<16x128xf32>
    %906 = arith.select %23, %904, %905 : vector<16x128xi1>, vector<16x128xf32>
    %c1_i32_233 = arith.constant 1 : i32
    %907 = tpu.dynamic_rotate %903 by %c1_i32_233 dim 0 : vector<16x128xf32>, i32 -> vector<16x128xf32>
    %cst_234 = arith.constant 0.000000e+00 : f32
    %908 = vector.broadcast %cst_234 : f32 to vector<16x128xf32>
    %909 = arith.select %25, %907, %908 : vector<16x128xi1>, vector<16x128xf32>
    %c1_i32_235 = arith.constant 1 : i32
    %910 = tpu.dynamic_rotate %852 by %c1_i32_235 dim 0 : vector<16x128xf32>, i32 -> vector<16x128xf32>
    %cst_236 = arith.constant 0.000000e+00 : f32
    %911 = vector.broadcast %cst_236 : f32 to vector<16x128xf32>
    %912 = arith.select %25, %910, %911 : vector<16x128xi1>, vector<16x128xf32>
    %c1_i32_237 = arith.constant 1 : i32
    %913 = tpu.dynamic_rotate %906 by %c1_i32_237 dim 0 : vector<16x128xf32>, i32 -> vector<16x128xf32>
    %cst_238 = arith.constant 0.000000e+00 : f32
    %914 = vector.broadcast %cst_238 : f32 to vector<16x128xf32>
    %915 = arith.select %25, %913, %914 : vector<16x128xi1>, vector<16x128xf32>
    %c15_i32_239 = arith.constant 15 : i32
    %916 = tpu.dynamic_rotate %903 by %c15_i32_239 dim 0 : vector<16x128xf32>, i32 -> vector<16x128xf32>
    %cst_240 = arith.constant 0.000000e+00 : f32
    %917 = vector.broadcast %cst_240 : f32 to vector<16x128xf32>
    %918 = arith.select %27, %916, %917 : vector<16x128xi1>, vector<16x128xf32>
    %c15_i32_241 = arith.constant 15 : i32
    %919 = tpu.dynamic_rotate %852 by %c15_i32_241 dim 0 : vector<16x128xf32>, i32 -> vector<16x128xf32>
    %cst_242 = arith.constant 0.000000e+00 : f32
    %920 = vector.broadcast %cst_242 : f32 to vector<16x128xf32>
    %921 = arith.select %27, %919, %920 : vector<16x128xi1>, vector<16x128xf32>
    %c15_i32_243 = arith.constant 15 : i32
    %922 = tpu.dynamic_rotate %906 by %c15_i32_243 dim 0 : vector<16x128xf32>, i32 -> vector<16x128xf32>
    %cst_244 = arith.constant 0.000000e+00 : f32
    %923 = vector.broadcast %cst_244 : f32 to vector<16x128xf32>
    %924 = arith.select %27, %922, %923 : vector<16x128xi1>, vector<16x128xf32>
    %c0_245 = arith.constant 0 : index
    %925 = memref.load %arg6[%c0_245] : memref<81xf32, #tpu.memory_space<smem>>
    %926 = vector.broadcast %925 : f32 to vector<16x128xf32>
    %927 = arith.mulf %926, %861 : vector<16x128xf32>
    %c1_246 = arith.constant 1 : index
    %928 = memref.load %arg6[%c1_246] : memref<81xf32, #tpu.memory_space<smem>>
    %929 = vector.broadcast %928 : f32 to vector<16x128xf32>
    %930 = arith.mulf %929, %864 : vector<16x128xf32>
    %931 = arith.addf %927, %930 : vector<16x128xf32>
    %c2_247 = arith.constant 2 : index
    %932 = memref.load %arg6[%c2_247] : memref<81xf32, #tpu.memory_space<smem>>
    %933 = vector.broadcast %932 : f32 to vector<16x128xf32>
    %934 = arith.mulf %933, %867 : vector<16x128xf32>
    %935 = arith.addf %931, %934 : vector<16x128xf32>
    %c3_248 = arith.constant 3 : index
    %936 = memref.load %arg6[%c3_248] : memref<81xf32, #tpu.memory_space<smem>>
    %937 = vector.broadcast %936 : f32 to vector<16x128xf32>
    %938 = arith.mulf %937, %855 : vector<16x128xf32>
    %939 = arith.addf %935, %938 : vector<16x128xf32>
    %c4_249 = arith.constant 4 : index
    %940 = memref.load %arg6[%c4_249] : memref<81xf32, #tpu.memory_space<smem>>
    %941 = vector.broadcast %940 : f32 to vector<16x128xf32>
    %942 = arith.mulf %941, %846 : vector<16x128xf32>
    %943 = arith.addf %939, %942 : vector<16x128xf32>
    %c5_250 = arith.constant 5 : index
    %944 = memref.load %arg6[%c5_250] : memref<81xf32, #tpu.memory_space<smem>>
    %945 = vector.broadcast %944 : f32 to vector<16x128xf32>
    %946 = arith.mulf %945, %858 : vector<16x128xf32>
    %947 = arith.addf %943, %946 : vector<16x128xf32>
    %c6_251 = arith.constant 6 : index
    %948 = memref.load %arg6[%c6_251] : memref<81xf32, #tpu.memory_space<smem>>
    %949 = vector.broadcast %948 : f32 to vector<16x128xf32>
    %950 = arith.mulf %949, %870 : vector<16x128xf32>
    %951 = arith.addf %947, %950 : vector<16x128xf32>
    %c7_252 = arith.constant 7 : index
    %952 = memref.load %arg6[%c7_252] : memref<81xf32, #tpu.memory_space<smem>>
    %953 = vector.broadcast %952 : f32 to vector<16x128xf32>
    %954 = arith.mulf %953, %873 : vector<16x128xf32>
    %955 = arith.addf %951, %954 : vector<16x128xf32>
    %c8_253 = arith.constant 8 : index
    %956 = memref.load %arg6[%c8_253] : memref<81xf32, #tpu.memory_space<smem>>
    %957 = vector.broadcast %956 : f32 to vector<16x128xf32>
    %958 = arith.mulf %957, %876 : vector<16x128xf32>
    %959 = arith.addf %955, %958 : vector<16x128xf32>
    %c9_254 = arith.constant 9 : index
    %960 = memref.load %arg6[%c9_254] : memref<81xf32, #tpu.memory_space<smem>>
    %961 = vector.broadcast %960 : f32 to vector<16x128xf32>
    %962 = arith.mulf %961, %885 : vector<16x128xf32>
    %963 = arith.addf %959, %962 : vector<16x128xf32>
    %c10_255 = arith.constant 10 : index
    %964 = memref.load %arg6[%c10_255] : memref<81xf32, #tpu.memory_space<smem>>
    %965 = vector.broadcast %964 : f32 to vector<16x128xf32>
    %966 = arith.mulf %965, %888 : vector<16x128xf32>
    %967 = arith.addf %963, %966 : vector<16x128xf32>
    %c11_256 = arith.constant 11 : index
    %968 = memref.load %arg6[%c11_256] : memref<81xf32, #tpu.memory_space<smem>>
    %969 = vector.broadcast %968 : f32 to vector<16x128xf32>
    %970 = arith.mulf %969, %891 : vector<16x128xf32>
    %971 = arith.addf %967, %970 : vector<16x128xf32>
    %c12_257 = arith.constant 12 : index
    %972 = memref.load %arg6[%c12_257] : memref<81xf32, #tpu.memory_space<smem>>
    %973 = vector.broadcast %972 : f32 to vector<16x128xf32>
    %974 = arith.mulf %973, %879 : vector<16x128xf32>
    %975 = arith.addf %971, %974 : vector<16x128xf32>
    %c13_258 = arith.constant 13 : index
    %976 = memref.load %arg6[%c13_258] : memref<81xf32, #tpu.memory_space<smem>>
    %977 = vector.broadcast %976 : f32 to vector<16x128xf32>
    %978 = arith.mulf %977, %849 : vector<16x128xf32>
    %979 = arith.addf %975, %978 : vector<16x128xf32>
    %c14_259 = arith.constant 14 : index
    %980 = memref.load %arg6[%c14_259] : memref<81xf32, #tpu.memory_space<smem>>
    %981 = vector.broadcast %980 : f32 to vector<16x128xf32>
    %982 = arith.mulf %981, %882 : vector<16x128xf32>
    %983 = arith.addf %979, %982 : vector<16x128xf32>
    %c15_260 = arith.constant 15 : index
    %984 = memref.load %arg6[%c15_260] : memref<81xf32, #tpu.memory_space<smem>>
    %985 = vector.broadcast %984 : f32 to vector<16x128xf32>
    %986 = arith.mulf %985, %894 : vector<16x128xf32>
    %987 = arith.addf %983, %986 : vector<16x128xf32>
    %c16_261 = arith.constant 16 : index
    %988 = memref.load %arg6[%c16_261] : memref<81xf32, #tpu.memory_space<smem>>
    %989 = vector.broadcast %988 : f32 to vector<16x128xf32>
    %990 = arith.mulf %989, %897 : vector<16x128xf32>
    %991 = arith.addf %987, %990 : vector<16x128xf32>
    %c17_262 = arith.constant 17 : index
    %992 = memref.load %arg6[%c17_262] : memref<81xf32, #tpu.memory_space<smem>>
    %993 = vector.broadcast %992 : f32 to vector<16x128xf32>
    %994 = arith.mulf %993, %900 : vector<16x128xf32>
    %995 = arith.addf %991, %994 : vector<16x128xf32>
    %c18_263 = arith.constant 18 : index
    %996 = memref.load %arg6[%c18_263] : memref<81xf32, #tpu.memory_space<smem>>
    %997 = vector.broadcast %996 : f32 to vector<16x128xf32>
    %998 = arith.mulf %997, %909 : vector<16x128xf32>
    %999 = arith.addf %995, %998 : vector<16x128xf32>
    %c19_264 = arith.constant 19 : index
    %1000 = memref.load %arg6[%c19_264] : memref<81xf32, #tpu.memory_space<smem>>
    %1001 = vector.broadcast %1000 : f32 to vector<16x128xf32>
    %1002 = arith.mulf %1001, %912 : vector<16x128xf32>
    %1003 = arith.addf %999, %1002 : vector<16x128xf32>
    %c20_265 = arith.constant 20 : index
    %1004 = memref.load %arg6[%c20_265] : memref<81xf32, #tpu.memory_space<smem>>
    %1005 = vector.broadcast %1004 : f32 to vector<16x128xf32>
    %1006 = arith.mulf %1005, %915 : vector<16x128xf32>
    %1007 = arith.addf %1003, %1006 : vector<16x128xf32>
    %c21_266 = arith.constant 21 : index
    %1008 = memref.load %arg6[%c21_266] : memref<81xf32, #tpu.memory_space<smem>>
    %1009 = vector.broadcast %1008 : f32 to vector<16x128xf32>
    %1010 = arith.mulf %1009, %903 : vector<16x128xf32>
    %1011 = arith.addf %1007, %1010 : vector<16x128xf32>
    %c22_267 = arith.constant 22 : index
    %1012 = memref.load %arg6[%c22_267] : memref<81xf32, #tpu.memory_space<smem>>
    %1013 = vector.broadcast %1012 : f32 to vector<16x128xf32>
    %1014 = arith.mulf %1013, %852 : vector<16x128xf32>
    %1015 = arith.addf %1011, %1014 : vector<16x128xf32>
    %c23_268 = arith.constant 23 : index
    %1016 = memref.load %arg6[%c23_268] : memref<81xf32, #tpu.memory_space<smem>>
    %1017 = vector.broadcast %1016 : f32 to vector<16x128xf32>
    %1018 = arith.mulf %1017, %906 : vector<16x128xf32>
    %1019 = arith.addf %1015, %1018 : vector<16x128xf32>
    %c24_269 = arith.constant 24 : index
    %1020 = memref.load %arg6[%c24_269] : memref<81xf32, #tpu.memory_space<smem>>
    %1021 = vector.broadcast %1020 : f32 to vector<16x128xf32>
    %1022 = arith.mulf %1021, %918 : vector<16x128xf32>
    %1023 = arith.addf %1019, %1022 : vector<16x128xf32>
    %c25_270 = arith.constant 25 : index
    %1024 = memref.load %arg6[%c25_270] : memref<81xf32, #tpu.memory_space<smem>>
    %1025 = vector.broadcast %1024 : f32 to vector<16x128xf32>
    %1026 = arith.mulf %1025, %921 : vector<16x128xf32>
    %1027 = arith.addf %1023, %1026 : vector<16x128xf32>
    %c26_271 = arith.constant 26 : index
    %1028 = memref.load %arg6[%c26_271] : memref<81xf32, #tpu.memory_space<smem>>
    %1029 = vector.broadcast %1028 : f32 to vector<16x128xf32>
    %1030 = arith.mulf %1029, %924 : vector<16x128xf32>
    %1031 = arith.addf %1027, %1030 : vector<16x128xf32>
    %c0_272 = arith.constant 0 : index
    %1032 = memref.load %arg7[%c0_272] : memref<3xf32, #tpu.memory_space<smem>>
    %1033 = vector.broadcast %1032 : f32 to vector<16x128xf32>
    %1034 = arith.addf %1031, %1033 : vector<16x128xf32>
    %c27_273 = arith.constant 27 : index
    %1035 = memref.load %arg6[%c27_273] : memref<81xf32, #tpu.memory_space<smem>>
    %1036 = vector.broadcast %1035 : f32 to vector<16x128xf32>
    %1037 = arith.mulf %1036, %861 : vector<16x128xf32>
    %c28_274 = arith.constant 28 : index
    %1038 = memref.load %arg6[%c28_274] : memref<81xf32, #tpu.memory_space<smem>>
    %1039 = vector.broadcast %1038 : f32 to vector<16x128xf32>
    %1040 = arith.mulf %1039, %864 : vector<16x128xf32>
    %1041 = arith.addf %1037, %1040 : vector<16x128xf32>
    %c29_275 = arith.constant 29 : index
    %1042 = memref.load %arg6[%c29_275] : memref<81xf32, #tpu.memory_space<smem>>
    %1043 = vector.broadcast %1042 : f32 to vector<16x128xf32>
    %1044 = arith.mulf %1043, %867 : vector<16x128xf32>
    %1045 = arith.addf %1041, %1044 : vector<16x128xf32>
    %c30_276 = arith.constant 30 : index
    %1046 = memref.load %arg6[%c30_276] : memref<81xf32, #tpu.memory_space<smem>>
    %1047 = vector.broadcast %1046 : f32 to vector<16x128xf32>
    %1048 = arith.mulf %1047, %855 : vector<16x128xf32>
    %1049 = arith.addf %1045, %1048 : vector<16x128xf32>
    %c31_277 = arith.constant 31 : index
    %1050 = memref.load %arg6[%c31_277] : memref<81xf32, #tpu.memory_space<smem>>
    %1051 = vector.broadcast %1050 : f32 to vector<16x128xf32>
    %1052 = arith.mulf %1051, %846 : vector<16x128xf32>
    %1053 = arith.addf %1049, %1052 : vector<16x128xf32>
    %c32_278 = arith.constant 32 : index
    %1054 = memref.load %arg6[%c32_278] : memref<81xf32, #tpu.memory_space<smem>>
    %1055 = vector.broadcast %1054 : f32 to vector<16x128xf32>
    %1056 = arith.mulf %1055, %858 : vector<16x128xf32>
    %1057 = arith.addf %1053, %1056 : vector<16x128xf32>
    %c33_279 = arith.constant 33 : index
    %1058 = memref.load %arg6[%c33_279] : memref<81xf32, #tpu.memory_space<smem>>
    %1059 = vector.broadcast %1058 : f32 to vector<16x128xf32>
    %1060 = arith.mulf %1059, %870 : vector<16x128xf32>
    %1061 = arith.addf %1057, %1060 : vector<16x128xf32>
    %c34_280 = arith.constant 34 : index
    %1062 = memref.load %arg6[%c34_280] : memref<81xf32, #tpu.memory_space<smem>>
    %1063 = vector.broadcast %1062 : f32 to vector<16x128xf32>
    %1064 = arith.mulf %1063, %873 : vector<16x128xf32>
    %1065 = arith.addf %1061, %1064 : vector<16x128xf32>
    %c35_281 = arith.constant 35 : index
    %1066 = memref.load %arg6[%c35_281] : memref<81xf32, #tpu.memory_space<smem>>
    %1067 = vector.broadcast %1066 : f32 to vector<16x128xf32>
    %1068 = arith.mulf %1067, %876 : vector<16x128xf32>
    %1069 = arith.addf %1065, %1068 : vector<16x128xf32>
    %c36_282 = arith.constant 36 : index
    %1070 = memref.load %arg6[%c36_282] : memref<81xf32, #tpu.memory_space<smem>>
    %1071 = vector.broadcast %1070 : f32 to vector<16x128xf32>
    %1072 = arith.mulf %1071, %885 : vector<16x128xf32>
    %1073 = arith.addf %1069, %1072 : vector<16x128xf32>
    %c37_283 = arith.constant 37 : index
    %1074 = memref.load %arg6[%c37_283] : memref<81xf32, #tpu.memory_space<smem>>
    %1075 = vector.broadcast %1074 : f32 to vector<16x128xf32>
    %1076 = arith.mulf %1075, %888 : vector<16x128xf32>
    %1077 = arith.addf %1073, %1076 : vector<16x128xf32>
    %c38_284 = arith.constant 38 : index
    %1078 = memref.load %arg6[%c38_284] : memref<81xf32, #tpu.memory_space<smem>>
    %1079 = vector.broadcast %1078 : f32 to vector<16x128xf32>
    %1080 = arith.mulf %1079, %891 : vector<16x128xf32>
    %1081 = arith.addf %1077, %1080 : vector<16x128xf32>
    %c39_285 = arith.constant 39 : index
    %1082 = memref.load %arg6[%c39_285] : memref<81xf32, #tpu.memory_space<smem>>
    %1083 = vector.broadcast %1082 : f32 to vector<16x128xf32>
    %1084 = arith.mulf %1083, %879 : vector<16x128xf32>
    %1085 = arith.addf %1081, %1084 : vector<16x128xf32>
    %c40_286 = arith.constant 40 : index
    %1086 = memref.load %arg6[%c40_286] : memref<81xf32, #tpu.memory_space<smem>>
    %1087 = vector.broadcast %1086 : f32 to vector<16x128xf32>
    %1088 = arith.mulf %1087, %849 : vector<16x128xf32>
    %1089 = arith.addf %1085, %1088 : vector<16x128xf32>
    %c41_287 = arith.constant 41 : index
    %1090 = memref.load %arg6[%c41_287] : memref<81xf32, #tpu.memory_space<smem>>
    %1091 = vector.broadcast %1090 : f32 to vector<16x128xf32>
    %1092 = arith.mulf %1091, %882 : vector<16x128xf32>
    %1093 = arith.addf %1089, %1092 : vector<16x128xf32>
    %c42_288 = arith.constant 42 : index
    %1094 = memref.load %arg6[%c42_288] : memref<81xf32, #tpu.memory_space<smem>>
    %1095 = vector.broadcast %1094 : f32 to vector<16x128xf32>
    %1096 = arith.mulf %1095, %894 : vector<16x128xf32>
    %1097 = arith.addf %1093, %1096 : vector<16x128xf32>
    %c43_289 = arith.constant 43 : index
    %1098 = memref.load %arg6[%c43_289] : memref<81xf32, #tpu.memory_space<smem>>
    %1099 = vector.broadcast %1098 : f32 to vector<16x128xf32>
    %1100 = arith.mulf %1099, %897 : vector<16x128xf32>
    %1101 = arith.addf %1097, %1100 : vector<16x128xf32>
    %c44_290 = arith.constant 44 : index
    %1102 = memref.load %arg6[%c44_290] : memref<81xf32, #tpu.memory_space<smem>>
    %1103 = vector.broadcast %1102 : f32 to vector<16x128xf32>
    %1104 = arith.mulf %1103, %900 : vector<16x128xf32>
    %1105 = arith.addf %1101, %1104 : vector<16x128xf32>
    %c45_291 = arith.constant 45 : index
    %1106 = memref.load %arg6[%c45_291] : memref<81xf32, #tpu.memory_space<smem>>
    %1107 = vector.broadcast %1106 : f32 to vector<16x128xf32>
    %1108 = arith.mulf %1107, %909 : vector<16x128xf32>
    %1109 = arith.addf %1105, %1108 : vector<16x128xf32>
    %c46_292 = arith.constant 46 : index
    %1110 = memref.load %arg6[%c46_292] : memref<81xf32, #tpu.memory_space<smem>>
    %1111 = vector.broadcast %1110 : f32 to vector<16x128xf32>
    %1112 = arith.mulf %1111, %912 : vector<16x128xf32>
    %1113 = arith.addf %1109, %1112 : vector<16x128xf32>
    %c47_293 = arith.constant 47 : index
    %1114 = memref.load %arg6[%c47_293] : memref<81xf32, #tpu.memory_space<smem>>
    %1115 = vector.broadcast %1114 : f32 to vector<16x128xf32>
    %1116 = arith.mulf %1115, %915 : vector<16x128xf32>
    %1117 = arith.addf %1113, %1116 : vector<16x128xf32>
    %c48_294 = arith.constant 48 : index
    %1118 = memref.load %arg6[%c48_294] : memref<81xf32, #tpu.memory_space<smem>>
    %1119 = vector.broadcast %1118 : f32 to vector<16x128xf32>
    %1120 = arith.mulf %1119, %903 : vector<16x128xf32>
    %1121 = arith.addf %1117, %1120 : vector<16x128xf32>
    %c49_295 = arith.constant 49 : index
    %1122 = memref.load %arg6[%c49_295] : memref<81xf32, #tpu.memory_space<smem>>
    %1123 = vector.broadcast %1122 : f32 to vector<16x128xf32>
    %1124 = arith.mulf %1123, %852 : vector<16x128xf32>
    %1125 = arith.addf %1121, %1124 : vector<16x128xf32>
    %c50_296 = arith.constant 50 : index
    %1126 = memref.load %arg6[%c50_296] : memref<81xf32, #tpu.memory_space<smem>>
    %1127 = vector.broadcast %1126 : f32 to vector<16x128xf32>
    %1128 = arith.mulf %1127, %906 : vector<16x128xf32>
    %1129 = arith.addf %1125, %1128 : vector<16x128xf32>
    %c51_297 = arith.constant 51 : index
    %1130 = memref.load %arg6[%c51_297] : memref<81xf32, #tpu.memory_space<smem>>
    %1131 = vector.broadcast %1130 : f32 to vector<16x128xf32>
    %1132 = arith.mulf %1131, %918 : vector<16x128xf32>
    %1133 = arith.addf %1129, %1132 : vector<16x128xf32>
    %c52_298 = arith.constant 52 : index
    %1134 = memref.load %arg6[%c52_298] : memref<81xf32, #tpu.memory_space<smem>>
    %1135 = vector.broadcast %1134 : f32 to vector<16x128xf32>
    %1136 = arith.mulf %1135, %921 : vector<16x128xf32>
    %1137 = arith.addf %1133, %1136 : vector<16x128xf32>
    %c53_299 = arith.constant 53 : index
    %1138 = memref.load %arg6[%c53_299] : memref<81xf32, #tpu.memory_space<smem>>
    %1139 = vector.broadcast %1138 : f32 to vector<16x128xf32>
    %1140 = arith.mulf %1139, %924 : vector<16x128xf32>
    %1141 = arith.addf %1137, %1140 : vector<16x128xf32>
    %c1_300 = arith.constant 1 : index
    %1142 = memref.load %arg7[%c1_300] : memref<3xf32, #tpu.memory_space<smem>>
    %1143 = vector.broadcast %1142 : f32 to vector<16x128xf32>
    %1144 = arith.addf %1141, %1143 : vector<16x128xf32>
    %c54_301 = arith.constant 54 : index
    %1145 = memref.load %arg6[%c54_301] : memref<81xf32, #tpu.memory_space<smem>>
    %1146 = vector.broadcast %1145 : f32 to vector<16x128xf32>
    %1147 = arith.mulf %1146, %861 : vector<16x128xf32>
    %c55_302 = arith.constant 55 : index
    %1148 = memref.load %arg6[%c55_302] : memref<81xf32, #tpu.memory_space<smem>>
    %1149 = vector.broadcast %1148 : f32 to vector<16x128xf32>
    %1150 = arith.mulf %1149, %864 : vector<16x128xf32>
    %1151 = arith.addf %1147, %1150 : vector<16x128xf32>
    %c56_303 = arith.constant 56 : index
    %1152 = memref.load %arg6[%c56_303] : memref<81xf32, #tpu.memory_space<smem>>
    %1153 = vector.broadcast %1152 : f32 to vector<16x128xf32>
    %1154 = arith.mulf %1153, %867 : vector<16x128xf32>
    %1155 = arith.addf %1151, %1154 : vector<16x128xf32>
    %c57_304 = arith.constant 57 : index
    %1156 = memref.load %arg6[%c57_304] : memref<81xf32, #tpu.memory_space<smem>>
    %1157 = vector.broadcast %1156 : f32 to vector<16x128xf32>
    %1158 = arith.mulf %1157, %855 : vector<16x128xf32>
    %1159 = arith.addf %1155, %1158 : vector<16x128xf32>
    %c58_305 = arith.constant 58 : index
    %1160 = memref.load %arg6[%c58_305] : memref<81xf32, #tpu.memory_space<smem>>
    %1161 = vector.broadcast %1160 : f32 to vector<16x128xf32>
    %1162 = arith.mulf %1161, %846 : vector<16x128xf32>
    %1163 = arith.addf %1159, %1162 : vector<16x128xf32>
    %c59_306 = arith.constant 59 : index
    %1164 = memref.load %arg6[%c59_306] : memref<81xf32, #tpu.memory_space<smem>>
    %1165 = vector.broadcast %1164 : f32 to vector<16x128xf32>
    %1166 = arith.mulf %1165, %858 : vector<16x128xf32>
    %1167 = arith.addf %1163, %1166 : vector<16x128xf32>
    %c60_307 = arith.constant 60 : index
    %1168 = memref.load %arg6[%c60_307] : memref<81xf32, #tpu.memory_space<smem>>
    %1169 = vector.broadcast %1168 : f32 to vector<16x128xf32>
    %1170 = arith.mulf %1169, %870 : vector<16x128xf32>
    %1171 = arith.addf %1167, %1170 : vector<16x128xf32>
    %c61_308 = arith.constant 61 : index
    %1172 = memref.load %arg6[%c61_308] : memref<81xf32, #tpu.memory_space<smem>>
    %1173 = vector.broadcast %1172 : f32 to vector<16x128xf32>
    %1174 = arith.mulf %1173, %873 : vector<16x128xf32>
    %1175 = arith.addf %1171, %1174 : vector<16x128xf32>
    %c62_309 = arith.constant 62 : index
    %1176 = memref.load %arg6[%c62_309] : memref<81xf32, #tpu.memory_space<smem>>
    %1177 = vector.broadcast %1176 : f32 to vector<16x128xf32>
    %1178 = arith.mulf %1177, %876 : vector<16x128xf32>
    %1179 = arith.addf %1175, %1178 : vector<16x128xf32>
    %c63_310 = arith.constant 63 : index
    %1180 = memref.load %arg6[%c63_310] : memref<81xf32, #tpu.memory_space<smem>>
    %1181 = vector.broadcast %1180 : f32 to vector<16x128xf32>
    %1182 = arith.mulf %1181, %885 : vector<16x128xf32>
    %1183 = arith.addf %1179, %1182 : vector<16x128xf32>
    %c64_311 = arith.constant 64 : index
    %1184 = memref.load %arg6[%c64_311] : memref<81xf32, #tpu.memory_space<smem>>
    %1185 = vector.broadcast %1184 : f32 to vector<16x128xf32>
    %1186 = arith.mulf %1185, %888 : vector<16x128xf32>
    %1187 = arith.addf %1183, %1186 : vector<16x128xf32>
    %c65_312 = arith.constant 65 : index
    %1188 = memref.load %arg6[%c65_312] : memref<81xf32, #tpu.memory_space<smem>>
    %1189 = vector.broadcast %1188 : f32 to vector<16x128xf32>
    %1190 = arith.mulf %1189, %891 : vector<16x128xf32>
    %1191 = arith.addf %1187, %1190 : vector<16x128xf32>
    %c66_313 = arith.constant 66 : index
    %1192 = memref.load %arg6[%c66_313] : memref<81xf32, #tpu.memory_space<smem>>
    %1193 = vector.broadcast %1192 : f32 to vector<16x128xf32>
    %1194 = arith.mulf %1193, %879 : vector<16x128xf32>
    %1195 = arith.addf %1191, %1194 : vector<16x128xf32>
    %c67_314 = arith.constant 67 : index
    %1196 = memref.load %arg6[%c67_314] : memref<81xf32, #tpu.memory_space<smem>>
    %1197 = vector.broadcast %1196 : f32 to vector<16x128xf32>
    %1198 = arith.mulf %1197, %849 : vector<16x128xf32>
    %1199 = arith.addf %1195, %1198 : vector<16x128xf32>
    %c68_315 = arith.constant 68 : index
    %1200 = memref.load %arg6[%c68_315] : memref<81xf32, #tpu.memory_space<smem>>
    %1201 = vector.broadcast %1200 : f32 to vector<16x128xf32>
    %1202 = arith.mulf %1201, %882 : vector<16x128xf32>
    %1203 = arith.addf %1199, %1202 : vector<16x128xf32>
    %c69_316 = arith.constant 69 : index
    %1204 = memref.load %arg6[%c69_316] : memref<81xf32, #tpu.memory_space<smem>>
    %1205 = vector.broadcast %1204 : f32 to vector<16x128xf32>
    %1206 = arith.mulf %1205, %894 : vector<16x128xf32>
    %1207 = arith.addf %1203, %1206 : vector<16x128xf32>
    %c70_317 = arith.constant 70 : index
    %1208 = memref.load %arg6[%c70_317] : memref<81xf32, #tpu.memory_space<smem>>
    %1209 = vector.broadcast %1208 : f32 to vector<16x128xf32>
    %1210 = arith.mulf %1209, %897 : vector<16x128xf32>
    %1211 = arith.addf %1207, %1210 : vector<16x128xf32>
    %c71_318 = arith.constant 71 : index
    %1212 = memref.load %arg6[%c71_318] : memref<81xf32, #tpu.memory_space<smem>>
    %1213 = vector.broadcast %1212 : f32 to vector<16x128xf32>
    %1214 = arith.mulf %1213, %900 : vector<16x128xf32>
    %1215 = arith.addf %1211, %1214 : vector<16x128xf32>
    %c72_319 = arith.constant 72 : index
    %1216 = memref.load %arg6[%c72_319] : memref<81xf32, #tpu.memory_space<smem>>
    %1217 = vector.broadcast %1216 : f32 to vector<16x128xf32>
    %1218 = arith.mulf %1217, %909 : vector<16x128xf32>
    %1219 = arith.addf %1215, %1218 : vector<16x128xf32>
    %c73_320 = arith.constant 73 : index
    %1220 = memref.load %arg6[%c73_320] : memref<81xf32, #tpu.memory_space<smem>>
    %1221 = vector.broadcast %1220 : f32 to vector<16x128xf32>
    %1222 = arith.mulf %1221, %912 : vector<16x128xf32>
    %1223 = arith.addf %1219, %1222 : vector<16x128xf32>
    %c74_321 = arith.constant 74 : index
    %1224 = memref.load %arg6[%c74_321] : memref<81xf32, #tpu.memory_space<smem>>
    %1225 = vector.broadcast %1224 : f32 to vector<16x128xf32>
    %1226 = arith.mulf %1225, %915 : vector<16x128xf32>
    %1227 = arith.addf %1223, %1226 : vector<16x128xf32>
    %c75_322 = arith.constant 75 : index
    %1228 = memref.load %arg6[%c75_322] : memref<81xf32, #tpu.memory_space<smem>>
    %1229 = vector.broadcast %1228 : f32 to vector<16x128xf32>
    %1230 = arith.mulf %1229, %903 : vector<16x128xf32>
    %1231 = arith.addf %1227, %1230 : vector<16x128xf32>
    %c76_323 = arith.constant 76 : index
    %1232 = memref.load %arg6[%c76_323] : memref<81xf32, #tpu.memory_space<smem>>
    %1233 = vector.broadcast %1232 : f32 to vector<16x128xf32>
    %1234 = arith.mulf %1233, %852 : vector<16x128xf32>
    %1235 = arith.addf %1231, %1234 : vector<16x128xf32>
    %c77_324 = arith.constant 77 : index
    %1236 = memref.load %arg6[%c77_324] : memref<81xf32, #tpu.memory_space<smem>>
    %1237 = vector.broadcast %1236 : f32 to vector<16x128xf32>
    %1238 = arith.mulf %1237, %906 : vector<16x128xf32>
    %1239 = arith.addf %1235, %1238 : vector<16x128xf32>
    %c78_325 = arith.constant 78 : index
    %1240 = memref.load %arg6[%c78_325] : memref<81xf32, #tpu.memory_space<smem>>
    %1241 = vector.broadcast %1240 : f32 to vector<16x128xf32>
    %1242 = arith.mulf %1241, %918 : vector<16x128xf32>
    %1243 = arith.addf %1239, %1242 : vector<16x128xf32>
    %c79_326 = arith.constant 79 : index
    %1244 = memref.load %arg6[%c79_326] : memref<81xf32, #tpu.memory_space<smem>>
    %1245 = vector.broadcast %1244 : f32 to vector<16x128xf32>
    %1246 = arith.mulf %1245, %921 : vector<16x128xf32>
    %1247 = arith.addf %1243, %1246 : vector<16x128xf32>
    %c80_327 = arith.constant 80 : index
    %1248 = memref.load %arg6[%c80_327] : memref<81xf32, #tpu.memory_space<smem>>
    %1249 = vector.broadcast %1248 : f32 to vector<16x128xf32>
    %1250 = arith.mulf %1249, %924 : vector<16x128xf32>
    %1251 = arith.addf %1247, %1250 : vector<16x128xf32>
    %c2_328 = arith.constant 2 : index
    %1252 = memref.load %arg7[%c2_328] : memref<3xf32, #tpu.memory_space<smem>>
    %1253 = vector.broadcast %1252 : f32 to vector<16x128xf32>
    %1254 = arith.addf %1251, %1253 : vector<16x128xf32>
    %cst_329 = arith.constant 0.000000e+00 : f32
    %1255 = vector.broadcast %cst_329 : f32 to vector<16x128xf32>
    %1256 = arith.subf %1255, %1034 : vector<16x128xf32>
    %1257 = math.exp %1256 : vector<16x128xf32>
    %cst_330 = arith.constant 1.000000e+00 : f32
    %1258 = vector.broadcast %cst_330 : f32 to vector<16x128xf32>
    %1259 = arith.addf %1258, %1257 : vector<16x128xf32>
    %cst_331 = arith.constant 1.000000e+00 : f32
    %1260 = vector.broadcast %cst_331 : f32 to vector<16x128xf32>
    %1261 = arith.divf %1260, %1259 : vector<16x128xf32>
    %cst_332 = arith.constant 0.000000e+00 : f32
    %1262 = vector.broadcast %cst_332 : f32 to vector<16x128xf32>
    %1263 = arith.subf %1262, %1144 : vector<16x128xf32>
    %1264 = math.exp %1263 : vector<16x128xf32>
    %cst_333 = arith.constant 1.000000e+00 : f32
    %1265 = vector.broadcast %cst_333 : f32 to vector<16x128xf32>
    %1266 = arith.addf %1265, %1264 : vector<16x128xf32>
    %cst_334 = arith.constant 1.000000e+00 : f32
    %1267 = vector.broadcast %cst_334 : f32 to vector<16x128xf32>
    %1268 = arith.divf %1267, %1266 : vector<16x128xf32>
    %cst_335 = arith.constant 0.000000e+00 : f32
    %1269 = vector.broadcast %cst_335 : f32 to vector<16x128xf32>
    %1270 = arith.subf %1269, %1254 : vector<16x128xf32>
    %1271 = math.exp %1270 : vector<16x128xf32>
    %cst_336 = arith.constant 1.000000e+00 : f32
    %1272 = vector.broadcast %cst_336 : f32 to vector<16x128xf32>
    %1273 = arith.addf %1272, %1271 : vector<16x128xf32>
    %cst_337 = arith.constant 1.000000e+00 : f32
    %1274 = vector.broadcast %cst_337 : f32 to vector<16x128xf32>
    %1275 = arith.divf %1274, %1273 : vector<16x128xf32>
    %1276 = vector.shape_cast %1261 : vector<16x128xf32> to vector<1x16x128xf32>
    %1277 = vector.shape_cast %1268 : vector<16x128xf32> to vector<1x16x128xf32>
    %1278 = vector.shape_cast %1275 : vector<16x128xf32> to vector<1x16x128xf32>
    %1279 = tpu.concatenate %1276, %1277, %1278 in 0 : vector<1x16x128xf32>, vector<1x16x128xf32>, vector<1x16x128xf32> -> vector<3x16x128xf32>
    %1280 = arith.addf %1279, %1 : vector<3x16x128xf32>
    %cst_338 = arith.constant 9.99999974E-5 : f32
    %cst_339 = arith.constant 1.000000e+00 : f32
    %1281 = vector.broadcast %cst_338 : f32 to vector<3x16x128xf32>
    %1282 = arith.maximumf %1281, %1280 : vector<3x16x128xf32>
    %1283 = vector.broadcast %cst_339 : f32 to vector<3x16x128xf32>
    %1284 = arith.minimumf %1283, %1282 : vector<3x16x128xf32>
    %c0_340 = arith.constant 0 : index
    %c0_341 = arith.constant 0 : index
    %c0_342 = arith.constant 0 : index
    %c0_343 = arith.constant 0 : index
    %1285 = vector.load %arg8[%c0_340, %c0_341, %c0_342, %c0_343] : memref<1x3x16x128xf32, #tpu.memory_space<vmem>>, vector<1x3x16x128xf32>
    %1286 = vector.shape_cast %1285 : vector<1x3x16x128xf32> to vector<3x16x128xf32>
    %1287 = vector.shape_cast %1284 : vector<3x16x128xf32> to vector<1x3x16x128xf32>
    tpu.vector_store %arg8[%c0_340, %c0_341, %c0_342, %c0_343], %1287 {strides = array<i32>} : memref<1x3x16x128xf32, #tpu.memory_space<vmem>>, vector<1x3x16x128xf32>,
    %1288 = arith.divf %1, %1284 : vector<3x16x128xf32>
    %cst_344 = arith.constant 0.000000e+00 : f32
    %cst_345 = arith.constant 1.000000e+00 : f32
    %1289 = vector.broadcast %cst_344 : f32 to vector<3x16x128xf32>
    %1290 = arith.maximumf %1289, %1288 : vector<3x16x128xf32>
    %1291 = vector.broadcast %cst_345 : f32 to vector<3x16x128xf32>
    %1292 = arith.minimumf %1291, %1290 : vector<3x16x128xf32>
    %c0_346 = arith.constant 0 : index
    %c0_347 = arith.constant 0 : index
    %c0_348 = arith.constant 0 : index
    %c0_349 = arith.constant 0 : index
    %1293 = vector.load %arg9[%c0_346, %c0_347, %c0_348, %c0_349] : memref<1x3x16x128xf32, #tpu.memory_space<vmem>>, vector<1x3x16x128xf32>
    %1294 = vector.shape_cast %1293 : vector<1x3x16x128xf32> to vector<3x16x128xf32>
    %1295 = vector.shape_cast %1292 : vector<3x16x128xf32> to vector<1x3x16x128xf32>
    tpu.vector_store %arg9[%c0_346, %c0_347, %c0_348, %c0_349], %1295 {strides = array<i32>} : memref<1x3x16x128xf32, #tpu.memory_space<vmem>>, vector<1x3x16x128xf32>,
    return
  }
  func.func @transform_0(%arg0: i32) -> (i32, i32, i32, i32) {
    %c0_i32 = arith.constant 0 : i32
    %c0_i32_0 = arith.constant 0 : i32
    %c0_i32_1 = arith.constant 0 : i32
    %c0_i32_2 = arith.constant 0 : i32
    return %arg0, %c0_i32, %c0_i32_0, %c0_i32_1 : i32, i32, i32, i32
  }
  func.func @transform_1(%arg0: i32) -> i32 {
    %c0_i32 = arith.constant 0 : i32
    %c0_i32_0 = arith.constant 0 : i32
    return %c0_i32 : i32
  }
  func.func @transform_2(%arg0: i32) -> i32 {
    %c0_i32 = arith.constant 0 : i32
    %c0_i32_0 = arith.constant 0 : i32
    return %c0_i32 : i32
  }
  func.func @transform_3(%arg0: i32) -> i32 {
    %c0_i32 = arith.constant 0 : i32
    %c0_i32_0 = arith.constant 0 : i32
    return %c0_i32 : i32
  }
  func.func @transform_4(%arg0: i32) -> i32 {
    %c0_i32 = arith.constant 0 : i32
    %c0_i32_0 = arith.constant 0 : i32
    return %c0_i32 : i32
  }
  func.func @transform_5(%arg0: i32) -> i32 {
    %c0_i32 = arith.constant 0 : i32
    %c0_i32_0 = arith.constant 0 : i32
    return %c0_i32 : i32
  }
  func.func @transform_6(%arg0: i32) -> i32 {
    %c0_i32 = arith.constant 0 : i32
    %c0_i32_0 = arith.constant 0 : i32
    return %c0_i32 : i32
  }
  func.func @transform_7(%arg0: i32) -> (i32, i32, i32, i32) {
    %c0_i32 = arith.constant 0 : i32
    %c0_i32_0 = arith.constant 0 : i32
    %c0_i32_1 = arith.constant 0 : i32
    %c0_i32_2 = arith.constant 0 : i32
    return %arg0, %c0_i32, %c0_i32_0, %c0_i32_1 : i32, i32, i32, i32
  }
  func.func @transform_8(%arg0: i32) -> (i32, i32, i32, i32) {
    %c0_i32 = arith.constant 0 : i32
    %c0_i32_0 = arith.constant 0 : i32
    %c0_i32_1 = arith.constant 0 : i32
    %c0_i32_2 = arith.constant 0 : i32
    return %arg0, %c0_i32, %c0_i32_0, %c0_i32_1 : i32, i32, i32, i32
  }
}

</mosaic_0001>

<bundles_post_ra>
// kernel: tpu_custom_call.1
= control target key start
LH: loop header
LB: loop body
LE: loop exit
PB: predicated region body
PF: predicated region fallthrough
CT: control target
= control target key end

     0   :  { %s5719_s0 = inlined_call_operand.hbm [shape: f32[1,3,16,128], index: 0, kind: input, shape index: {}]   ;;  %s5720_s1 = inlined_call_operand.vmem [shape: f32[81], index: 1, kind: input, shape index: {}]   ;;  %s5721_s2 = inlined_call_operand.vmem [shape: f32[3], index: 2, kind: input, shape index: {}]   ;;  %s5722_s3 = inlined_call_operand.vmem [shape: f32[81], index: 3, kind: input, shape index: {}]   ;;  %s5723_s4 = inlined_call_operand.vmem [shape: f32[3], index: 4, kind: input, shape index: {}]   ;;  %s5724_s5 = inlined_call_operand.vmem [shape: f32[81], index: 5, kind: input, shape index: {}]   ;;  %s5725_s6 = inlined_call_operand.vmem [shape: f32[3], index: 6, kind: input, shape index: {}]   ;;  %s5726_s7 = inlined_call_operand.hbm [shape: f32[1,3,16,128], index: 7, kind: output, shape index: {0}]   ;;  %s5727_s8 = inlined_call_operand.hbm [shape: f32[1,3,16,128], index: 8, kind: output, shape index: {1}]  }
   0x1   :  { %5967 = sst [smem:[#allocation100_spill]] %s5726_s7 }
   0x2   :  { %5968 = sst [smem:[#allocation101_spill]] %s5727_s8 }
   0x3   :  { %14 = vsyncpa [#allocation3], 0 }
   0x4   :  { %15 = vsyncpa [#allocation5], 0 }
   0x5   :  { %16 = vsyncpa [#allocation8], 0 }
   0x6   :  { %17 = vsyncpa [#allocation11], 0 }
   0x7   :  { %18 = vsyncpa [#allocation14], 0 }
   0x8   :  { %19 = vsyncpa [#allocation4], 0  ;;  %s49_s29 = sshll.u32 %s5721_s2, 4  ;;  %s50_s29 = int_to_ptr.vmem [resolvable:$true] %s49_s29 }
   0x9   :  { %20 = vsyncpa [#allocation17], 0  ;;  %s69_s10 = sshll.u32 %s5723_s4, 4  ;;  %s2500_s11 = scalar_lea.vmem %s50_s29, 16  ;;  %s70_s10 = int_to_ptr.vmem [resolvable:$true] %s69_s10 }
   0xa   :  { %p2501_p0 = scmp.ne.s32.totalorder %s50_s29, %s2500_s11  ;;  %p2505_p1 = scmp.lt.s32.totalorder %s50_s29, %s50_s29 }
   0xb   :  { %p2506_p2 = scmp.lt.s32.totalorder %s2500_s11, %s2500_s11 }
   0xd   :  { %p2507_p3 = por %p2506_p2, %p2505_p1 }
   0xf   :  { %p2508_p4 = pnand %p2507_p3, %p2501_p0 }
  0x11   :  { %2511 = shalt.err (!%p2508_p4)
}
  0x12   :  { %s2652_s12 = smov [#allocation7]   ;;  %s2512_s13 = scalar_lea.vmem %s70_s10, 16 }
  0x13   :  { %52 = dma.vmem_to_smem %s50_s29, 16, %s2652_s12, [#allocation8]  }
  0x14   :  { %p2513_p5 = scmp.ne.s32.totalorder %s70_s10, %s2512_s13  ;;  %p2517_p6 = scmp.lt.s32.totalorder %s70_s10, %s70_s10 }
  0x15   :  { %p2518_p7 = scmp.lt.s32.totalorder %s2512_s13, %s2512_s13 }
  0x17   :  { %p2519_p8 = por %p2518_p7, %p2517_p6 }
  0x19   :  { %p2520_p9 = pnand %p2519_p8, %p2513_p5 }
  0x1b   :  { %2523 = shalt.err (!%p2520_p9)
}
  0x1c   :  { %s2653_s2 = smov [#allocation10]   ;;  %s2654_s4 = smov [#allocation2]  }
  0x1d   :  { %72 = dma.vmem_to_smem %s70_s10, 16, %s2653_s2, [#allocation11]  }
  0x1e   :  { %s26_s14 = sshll.u32 %s2654_s4, 4  ;;  %s39_s17 = sshll.u32 %s5720_s1, 4  ;;  %s27_s14 = int_to_ptr.vmem [resolvable:$true] %s26_s14  ;;  %s40_s17 = int_to_ptr.vmem [resolvable:$true] %s39_s17 }
  0x1f   :  { %s2524_s20 = scalar_lea.hbm %s5719_s0, 768 }
  0x20   :  { %p2525_p10 = scmp.ne.s32.totalorder %s5719_s0, %s2524_s20  ;;  %p2528_p11 = scmp.lt.u32.totalorder %s2524_s20, %s5719_s0 }
  0x22   :  { %p2530_p12 = pnand %p2528_p11, %p2525_p10 }
  0x24   :  { %2533 = shalt.err (!%p2530_p12)
}
  0x25   :  { %s2534_s25 = scalar_lea.vmem %s27_s14, 768  ;;  %p2539_p0 = scmp.lt.s32.totalorder %s27_s14, %s27_s14 }
  0x26   :  { %p2535_p13 = scmp.ne.s32.totalorder %s27_s14, %s2534_s25  ;;  %p2540_p1 = scmp.lt.s32.totalorder %s2534_s25, %s2534_s25 }
  0x28   :  { %p2541_p2 = por %p2540_p1, %p2539_p0 }
  0x2a   :  { %p2542_p3 = pnand %p2541_p2, %p2535_p13 }
  0x2c   :  { %2545 = shalt.err (!%p2542_p3)
}
  0x2d   :  { %s5728_s1 = smov 128   ;;  %s5730_s26 = smov 8  }
  0x2e   :  { %32 = dma.hbm_to_vmem [thread:$0]  %s5719_s0, 768, %s27_s14, [#allocation3], %s5728_s1, %s5728_s1, %s5730_s26  }
  0x2f   :  { %s2546_s29 = scalar_lea.vmem %s40_s17, 16  ;;  %p2551_p5 = scmp.lt.s32.totalorder %s40_s17, %s40_s17 }
  0x30   :  { %p2547_p4 = scmp.ne.s32.totalorder %s40_s17, %s2546_s29  ;;  %p2552_p6 = scmp.lt.s32.totalorder %s2546_s29, %s2546_s29 }
  0x32   :  { %p2553_p7 = por %p2552_p6, %p2551_p5 }
  0x34   :  { %p2554_p8 = pnand %p2553_p7, %p2547_p4 }
  0x36   :  { %2557 = shalt.err (!%p2554_p8)
}
  0x37   :  { %s2657_s30 = smov [#allocation6]   ;;  %s59_s11 = sshll.u32 %s5722_s3, 4  ;;  %s60_s11 = int_to_ptr.vmem [resolvable:$true] %s59_s11 }
  0x38   :  { %42 = dma.vmem_to_smem %s40_s17, 16, %s2657_s30, [#allocation5]  }
  0x39   :  { %s79_s2 = sshll.u32 %s5724_s5, 4  ;;  %s2558_s0 = scalar_lea.vmem %s60_s11, 16  ;;  %s80_s2 = int_to_ptr.vmem [resolvable:$true] %s79_s2 }
  0x3a   :  { %p2559_p9 = scmp.ne.s32.totalorder %s60_s11, %s2558_s0  ;;  %p2563_p10 = scmp.lt.s32.totalorder %s60_s11, %s60_s11 }
  0x3b   :  { %p2564_p11 = scmp.lt.s32.totalorder %s2558_s0, %s2558_s0 }
  0x3d   :  { %p2565_p12 = por %p2564_p11, %p2563_p10 }
  0x3f   :  { %p2566_p13 = pnand %p2565_p12, %p2559_p9 }
  0x41   :  { %2569 = shalt.err (!%p2566_p13)
}
  0x42   :  { %s2658_s4 = smov [#allocation9]   ;;  %s2570_s14 = scalar_lea.vmem %s80_s2, 16 }
  0x43   :  { %62 = dma.vmem_to_smem %s60_s11, 16, %s2658_s4, [#allocation8]  }
  0x44   :  { %p2571_p0 = scmp.ne.s32.totalorder %s80_s2, %s2570_s14  ;;  %p2575_p1 = scmp.lt.s32.totalorder %s80_s2, %s80_s2 }
  0x45   :  { %p2576_p2 = scmp.lt.s32.totalorder %s2570_s14, %s2570_s14 }
  0x47   :  { %p2577_p3 = por %p2576_p2, %p2575_p1 }
  0x49   :  { %p2578_p4 = pnand %p2577_p3, %p2571_p0 }
  0x4b   :  { %2581 = shalt.err (!%p2578_p4)
}
  0x4c   :  { %s2659_s3 = smov [#allocation12]   ;;  %s89_s16 = sshll.u32 %s5725_s6, 4  ;;  %s90_s16 = int_to_ptr.vmem [resolvable:$true] %s89_s16 }
  0x4d   :  { %82 = dma.vmem_to_smem %s80_s2, 16, %s2659_s3, [#allocation11]  }
  0x4e   :  { %s2582_s17 = scalar_lea.vmem %s90_s16, 16  ;;  %p2587_p6 = scmp.lt.s32.totalorder %s90_s16, %s90_s16 }
  0x4f   :  { %p2583_p5 = scmp.ne.s32.totalorder %s90_s16, %s2582_s17  ;;  %p2588_p7 = scmp.lt.s32.totalorder %s2582_s17, %s2582_s17 }
  0x51   :  { %p2589_p8 = por %p2588_p7, %p2587_p6 }
  0x53   :  { %p2590_p9 = pnand %p2589_p8, %p2583_p5 }
  0x55   :  { %2593 = shalt.err (!%p2590_p9)
}
  0x56   :  { %s2660_s18 = smov [#allocation13]  }
  0x57   :  { %92 = dma.vmem_to_smem %s90_s16, 16, %s2660_s18, [#allocation14]  }
  0x58   :  { %2638 = dma.done.wait [#allocation3], 768  }
  0x59   :  { %2639 = vsyncadd [#allocation3], 4294966528 }
  0x5a   :  { %2640 = dma.done.wait [#allocation5], 16  }
  0x5b   :  { %2641 = vsyncadd [#allocation5], 4294967280 }
  0x5c   :  { %2642 = dma.done.wait [#allocation8], 32  }
  0x5d   :  { %2643 = vsyncadd [#allocation8], 4294967264 }
  0x5e   :  { %2644 = dma.done.wait [#allocation11], 32  }
  0x5f   :  { %2645 = vsyncadd [#allocation11], 4294967264 }
  0x60   :  { %2646 = dma.done.wait [#allocation14], 16  }
  0x61   :  { %2647 = vsyncadd [#allocation14], 4294967280 }
  0x62   :  { %114 = sfence }
  0x63   :  { %v2743_v0 = vld [vmem:[#allocation2] sm:$0xff]  ;;  %s5732_s6 = smov 127   ;;  %s5734_s19 = smov 1   ;;  %v2749_v1 = vld [vmem:[#allocation2 + $0x8] sm:$0xff]  ;;  %v2755_v2 = vld [vmem:[#allocation2 + $0x18] sm:$0xff]  ;;  %v121_v6 = vlaneseq }
  0x64   :  { %150 = vrot.lane.b32.xlu1 %v2743_v0, %s5732_s6  ;;  %144 = vrot.lane.b32.xlu0 %v2743_v0, %s5734_s19  ;;  %v2757_v3 = vld [vmem:[#allocation2 + $0x10] sm:$0xff]  ;;  %v2767_v4 = vld [vmem:[#allocation2 + $0x28] sm:$0xff]  ;;  %v2769_v5 = vld [vmem:[#allocation2 + $0x20] sm:$0xff]  ;;  %s2779_s20 = sld [smem:[#allocation6 + $0x5]]  ;;  %s2781_s21 = sld [smem:[#allocation6 + $0x20]]  ;;  %v164_v8 = vrot.slane %v2749_v1, 7 }
  0x65   :  { %5969 = vst [vmem:[#allocation25_spill] sm:$0xff] %v2767_v4  ;;  %5970 = vst [vmem:[#allocation26_spill] sm:$0xff] %v2769_v5  ;;  %s2783_s22 = sld [smem:[#allocation6 + $0x3b]]  ;;  %v2787_v7 = vshrl.u32 %v121_v6, 7  ;;  %s2789_s24 = sld [smem:[#allocation6 + $0x1e]]  ;;  %v183_v9 = vrot.slane %v2749_v1, 1 }
  0x66   :  { %s2785_s23 = sld [smem:[#allocation6 + $0x3]]  ;;  %s2791_s25 = sld [smem:[#allocation6 + $0x39]]  ;;  %v163_v10 = vrot.slane %v2743_v0, 7  ;;  %v182_v11 = vrot.slane %v2743_v0, 1  ;;  %v2810_v12 = vand.u32 127, %v121_v6  ;;  %v212_v51 = vrot.slane %v2757_v3, 7 }
  0x67   :  { %s2793_s27 = sld [smem:[#allocation6 + $0x8]]  ;;  %s2795_s28 = sld [smem:[#allocation6 + $0x23]]  ;;  %vm158_vm0 = vcmp.lt.s32.totalorder %v2787_v7, 1  ;;  %v2817_v13 = vadd.s32 8, %v2787_v7  ;;  %vm140_vm1 = vcmp.ne.s32.totalorder %v2787_v7, 0  ;;  %vm177_vm2 = vcmp.lt.s32.totalorder %v2787_v7, 7 }
  0x68   :  { %152 = vrot.lane.b32.xlu1 %v2749_v1, %s5732_s6  ;;  %146 = vrot.lane.b32.xlu0 %v2749_v1, %s5734_s19  ;;  %s2798_s29 = sld [smem:[#allocation6 + $0x3e]]  ;;  %s2801_s30 = sld [smem:[#allocation6 + $0x1]]  ;;  %v166_v14 = vsel %vm158_vm0, %v164_v8, %v163_v10  ;;  %v185_v15 = vsel %vm177_vm2, %v183_v9, %v182_v11  ;;  %v127_v16 = vand.u32 15, %v2810_v12  ;;  %v2844_v17 = vsel %vm158_vm0, %v163_v10, %v164_v8 }
  0x69   :  { %s2805_s9 = sld [smem:[#allocation6]]  ;;  %s2807_s10 = sld [smem:[#allocation6 + $0x4]]  ;;  %vm143_vm3 = vcmp.ne.s32.totalorder %v2817_v13, 15  ;;  %v2854_v19 = vsel %vm140_vm1, %v166_v14, 0.0  ;;  %v2858_v20 = vsel %vm177_vm2, %v182_v11, %v183_v9  ;;  %v213_v52 = vrot.slane %v2755_v2, 7 }
  0x6a   :  { %s2812_s11 = sld [smem:[#allocation6 + $0x2]]  ;;  %s2814_s12 = sld [smem:[#allocation6 + $0x7]]  ;;  %v2869_v24 = vsel %vm143_vm3, %v185_v15, 0.0  ;;  %v230_v59 = vrot.slane %v2757_v3, 1  ;;  %v231_v60 = vrot.slane %v2755_v2, 1  ;;  %vm3106_vm4 = vcmp.ne.s32.totalorder %v127_v16, 15 }
  0x6b   :  { %s2819_s13 = sld [smem:[#allocation6 + $0x6]]  ;;  %s2821_s2 = sld [smem:[#allocation6 + $0x1c]]  ;;  %v215_v11 = vsel %vm158_vm0, %v213_v52, %v212_v51  ;;  %v278_v61 = vrot.slane %v2769_v5, 1  ;;  %vm3133_vm5 = vcmp.ne.s32.totalorder %v127_v16, 0 }
  0x6c   :  { %196 = vrot.lane.b32.xlu1 %v2755_v2, %s5734_s19  ;;  %194 = vrot.lane.b32.xlu0 %v2757_v3, %s5734_s19  ;;  %s2825_s0 = sld [smem:[#allocation6 + $0x1b]]  ;;  %s2827_s4 = sld [smem:[#allocation6 + $0x1f]] }
  0x6d   :  { %5971 = sst [smem:[#allocation27_spill]] %s2793_s27  ;;  %s2831_s14 = sld [smem:[#allocation6 + $0x1d]] }
  0x6e   :  { %5972 = sst [smem:[#allocation28_spill]] %s2795_s28  ;;  %s2838_s5 = sld [smem:[#allocation6 + $0x22]]  ;;  %v295_v23 = vstv %s2801_s30 }
  0x6f   :  { %5973 = sst [smem:[#allocation29_spill]] %s2798_s29  ;;  %s2833_s3 = sld [smem:[#allocation6 + $0x21]]  ;;  %v313_v28 = vstv %s2807_s10  ;;  %v2891_v36 = vmul.f32 %v295_v23, %v2854_v19  ;;  %v2903_v40 = vmul.f32 %v295_v23, %v2844_v17 }
  0x70   :  { %202 = vrot.lane.b32.xlu1 %v2755_v2, %s5732_s6  ;;  %200 = vrot.lane.b32.xlu0 %v2757_v3, %s5732_s6  ;;  %5974 = sst [smem:[#allocation30_spill]] %s2805_s9  ;;  %s2840_s15 = sld [smem:[#allocation6 + $0x36]]  ;;  %v331_v32 = vstv %s2814_s12  ;;  %v2898_v37 = vmul.f32 %v313_v28, %v2749_v1  ;;  %v2911_v42 = vmul.f32 %v313_v28, %v2743_v0  ;;  %v214_v28 = vsel %vm158_vm0, %v212_v51, %v213_v52 }
  0x71   :  { %5975 = sst [smem:[#allocation31_spill]] %s2812_s11  ;;  %s2848_s16 = sld [smem:[#allocation6 + $0x37]]  ;;  %v459_v35 = vstv %s2821_s2  ;;  %v2914_v43 = vmul.f32 %v331_v32, %v2858_v20  ;;  %v2917_v44 = vmul.f32 %v331_v32, %v2869_v24  ;;  %v216_v32 = vsel %vm140_vm1, %v215_v11, 0.0 }
  0x72   :  { %5976 = sst [smem:[#allocation32_spill]] %s2819_s13  ;;  %s2850_s17 = sld [smem:[#allocation6 + $0x38]]  ;;  %v477_v39 = vstv %s2827_s4  ;;  %v2926_v47 = vmul.f32 %v459_v35, %v2854_v19  ;;  %v2929_v48 = vmul.f32 %v459_v35, %v2844_v17  ;;  %v232_v52 = vsel %vm177_vm2, %v230_v59, %v231_v60 }
  0x73   :  { %5977 = sst [smem:[#allocation33_spill]] %s2825_s0  ;;  %s2863_s18 = sld [smem:[#allocation6 + $0x3a]]  ;;  %v2936_v49 = vmul.f32 %v477_v39, %v2749_v1  ;;  %v2949_v56 = vmul.f32 %v477_v39, %v2743_v0 }
  0x74   :  { %244 = vrot.lane.b32.xlu1 %v2767_v4, %s5734_s19  ;;  %242 = vrot.lane.b32.xlu0 %v2769_v5, %s5734_s19  ;;  %5978 = sst [smem:[#allocation34_spill]] %s2831_s14  ;;  %s2865_s1 = sld [smem:[#allocation6 + $0x3c]]  ;;  %v495_v46 = vstv %s2838_s5 }
  0x75   :  { %5979 = sst [smem:[#allocation35_spill]] %s2833_s3  ;;  %s2875_s26 = sld [smem:[#allocation6 + $0x3d]]  ;;  %v2957_v58 = vmul.f32 %v495_v46, %v2858_v20  ;;  %v2967_v62 = vmul.f32 %v495_v46, %v2869_v24 }
  0x76   :  { %5980 = sst [smem:[#allocation36_spill]] %s2840_s15  ;;  %s2877_s30 = sld [smem:[#allocation6 + $0xc]] }
  0x77   :  { %s2885_s19 = sld [smem:[#allocation6 + $0x42]]  ;;  %s2893_s10 = sld [smem:[#allocation6 + $0x9]]  ;;  %v623_v50 = vstv %s2848_s16 }
  0x78   :  { %250 = vrot.lane.b32.xlu1 %v2767_v4, %s5732_s6  ;;  %248 = vrot.lane.b32.xlu0 %v2769_v5, %s5732_s6  ;;  %5981 = sst [smem:[#allocation37_spill]] %s2850_s17  ;;  %s2883_s6 = sld [smem:[#allocation6 + $0x27]]  ;;  %v2970_v63 = vmul.f32 %v623_v50, %v2854_v19  ;;  %v2973_v6 = vmul.f32 %v623_v50, %v2844_v17  ;;  %v260_v19 = vrot.slane %v2769_v5, 7 }
  0x79   :  { %s2895_s8 = sld [smem:[#allocation6 + $0x24]]  ;;  %s2905_s12 = sld [smem:[#allocation6 + $0x3f]]  ;;  %v641_v55 = vstv %s2863_s18 }
  0x7a   :  { %5982 = sst [smem:[#allocation38_spill]] %s2865_s1  ;;  %s2907_s2 = sld [smem:[#allocation6 + $0xf]]  ;;  %v2980_v8 = vmul.f32 %v641_v55, %v2749_v1  ;;  %v2984_v10 = vmul.f32 %v641_v55, %v2743_v0  ;;  %v261_v1 = vrot.slane %v2767_v4, 7 }
  0x7b   :  { %s2919_s4 = sld [smem:[#allocation6 + $0xe]]  ;;  %s2921_s7 = sld [smem:[#allocation6 + $0x2a]]  ;;  %v659_v57 = vstv %s2875_s26 }
  0x7c   :  { %s2931_s29 = sld [smem:[#allocation6 + $0x29]]  ;;  %s2933_s28 = sld [smem:[#allocation6 + $0xa]]  ;;  %v2993_v14 = vmul.f32 %v659_v57, %v2858_v20  ;;  %v2996_v15 = vmul.f32 %v659_v57, %v2869_v24  ;;  %v233_v20 = vsel %vm177_vm2, %v231_v60, %v230_v59  ;;  %v263_v54 = vsel %vm158_vm0, %v261_v1, %v260_v19 }
  0x7d   :  { %5984 = sst [smem:[#allocation40_spill]] %s2885_s19  ;;  %s2939_s27 = sld [smem:[#allocation6 + $0x44]]  ;;  %v235_v57 = vsel %vm143_vm3, %v233_v20, 0.0 }
  0x7e   :  { %5983 = sst [smem:[#allocation39_spill]] %s2883_s6  ;;  %s2943_s5 = sld [smem:[#allocation6 + $0x25]] }
  0x7f   :  { %5985 = sst [smem:[#allocation41_spill]] %s2895_s8  ;;  %s2951_s13 = sld [smem:[#allocation6 + $0xb]] }
  0x80   :  { %5986 = sst [smem:[#allocation42_spill]] %s2905_s12  ;;  %s2953_s0 = sld [smem:[#allocation6 + $0x40]] }
  0x81   :  { %5987 = sst [smem:[#allocation43_spill]] %s2907_s2  ;;  %s2961_s16 = sld [smem:[#allocation6 + $0xd]] }
  0x82   :  { %5988 = sst [smem:[#allocation44_spill]] %s2919_s4  ;;  %s2963_s18 = sld [smem:[#allocation6 + $0x10]]  ;;  %v349_v35 = vstv %s2933_s28 }
  0x83   :  { %5989 = sst [smem:[#allocation45_spill]] %s2921_s7  ;;  %s2975_s26 = sld [smem:[#allocation6 + $0x11]]  ;;  %v3041_v46 = vmul.f32 %v349_v35, %v216_v32  ;;  %v3043_v39 = vmul.f32 %v349_v35, %v214_v28 }
  0x84   :  { %5990 = sst [smem:[#allocation46_spill]] %s2931_s29  ;;  %s2977_s3 = sld [smem:[#allocation6 + $0x26]]  ;;  %v513_v55 = vstv %s2943_s5 }
  0x85   :  { %5991 = sst [smem:[#allocation47_spill]] %s2939_s27  ;;  %s2988_s15 = sld [smem:[#allocation6 + $0x28]]  ;;  %5999 = vst [vmem:[#allocation55_spill] sm:$0xff] %v3043_v39  ;;  %v3053_v20 = vmul.f32 %v513_v55, %v216_v32  ;;  %v3055_v11 = vmul.f32 %v513_v55, %v214_v28 }
  0x86   :  { %5992 = sst [smem:[#allocation48_spill]] %s2951_s13  ;;  %s2990_s17 = sld [smem:[#allocation6 + $0x2c]]  ;;  %v677_v17 = vstv %s2953_s0 }
  0x87   :  { %s3000_s1 = sld [smem:[#allocation6 + $0x2b]]  ;;  %s3002_s14 = sld [smem:[#allocation6 + $0x41]]  ;;  %v367_v51 = vstv %s2961_s16  ;;  %6000 = vst [vmem:[#allocation56_spill] sm:$0xff] %v3053_v20  ;;  %6001 = vst [vmem:[#allocation57_spill] sm:$0xff] %v3055_v11  ;;  %v3097_v30 = vmul.f32 %v677_v17, %v216_v32 }
  0x88   :  { %s3009_s9 = sld [smem:[#allocation6 + $0x43]]  ;;  %s3011_s11 = sld [smem:[#allocation6 + $0x45]]  ;;  %v385_v50 = vstv %s2963_s18  ;;  %v3070_v60 = vmul.f32 %v367_v51, %v2757_v3  ;;  %v3073_v55 = vmul.f32 %v367_v51, %v2755_v2 }
  0x89   :  { %5993 = sst [smem:[#allocation49_spill]] %s2975_s26  ;;  %s3021_s6 = sld [smem:[#allocation6 + $0x47]]  ;;  %v3075_v59 = vmul.f32 %v385_v50, %v232_v52  ;;  %v3082_v0 = vmul.f32 %v385_v50, %v235_v57  ;;  %6008 = vst [vmem:[#allocation64_spill] sm:$0xff] %v3097_v30 }
  0x8a   :  { %5994 = sst [smem:[#allocation50_spill]] %s2977_s3  ;;  %s3019_s19 = sld [smem:[#allocation6 + $0x46]]  ;;  %6002 = vst [vmem:[#allocation58_spill] sm:$0xff] %v3070_v60  ;;  %6003 = vst [vmem:[#allocation59_spill] sm:$0xff] %v3073_v55 }
  0x8b   :  { %s3027_s12 = sld [smem:[#allocation6 + $0x15]]  ;;  %s3029_s8 = sld [smem:[#allocation6 + $0x30]]  ;;  %v531_v24 = vstv %s2988_s15  ;;  %6004 = vst [vmem:[#allocation60_spill] sm:$0xff] %v3075_v59  ;;  %6005 = vst [vmem:[#allocation61_spill] sm:$0xff] %v3082_v0  ;;  %v6046_v59 = vstv %s2781_s21  ;;  %v6049_v0 = vstv %s2785_s23 }
  0x8c   :  { %5995 = sst [smem:[#allocation51_spill]] %s2990_s17  ;;  %s3037_s28 = sld [smem:[#allocation6 + $0x4b]]  ;;  %v3092_v51 = vmul.f32 %v531_v24, %v2757_v3  ;;  %v3095_v31 = vmul.f32 %v531_v24, %v2755_v2  ;;  %v3114_v24 = vmul.f32 %v677_v17, %v214_v28 }
  0x8d   :  { %5996 = sst [smem:[#allocation52_spill]] %s3002_s14  ;;  %s3039_s29 = sld [smem:[#allocation6 + $0x12]]  ;;  %v549_v23 = vstv %s3000_s1 }
  0x8e   :  { %5997 = sst [smem:[#allocation53_spill]] %s3011_s11  ;;  %s3047_s5 = sld [smem:[#allocation6 + $0x2d]]  ;;  %v695_v35 = vstv %s3009_s9  ;;  %6006 = vst [vmem:[#allocation62_spill] sm:$0xff] %v3092_v51  ;;  %6007 = vst [vmem:[#allocation63_spill] sm:$0xff] %v3095_v31  ;;  %v3110_v9 = vmul.f32 %v549_v23, %v232_v52  ;;  %v3112_v53 = vmul.f32 %v549_v23, %v235_v57  ;;  %v279_v23 = vrot.slane %v2767_v4, 1 }
  0x8f   :  { %5998 = sst [smem:[#allocation54_spill]] %s3021_s6  ;;  %s3049_s27 = sld [smem:[#allocation6 + $0x48]]  ;;  %6013 = vst [vmem:[#allocation67_spill] sm:$0xff] %v3114_v24  ;;  %v3122_v38 = vmul.f32 %v695_v35, %v2757_v3  ;;  %v3138_v3 = vmul.f32 %v695_v35, %v2755_v2  ;;  %v262_v35 = vsel %vm158_vm0, %v260_v19, %v261_v1 }
  0x90   :  { %s3057_s7 = sld [smem:[#allocation6 + $0x18]]  ;;  %s3059_s4 = sld [smem:[#allocation6 + $0x33]]  ;;  %v713_v50 = vstv %s3019_s19  ;;  %6011 = vst [vmem:[#allocation65_spill] sm:$0xff] %v3110_v9  ;;  %6012 = vst [vmem:[#allocation66_spill] sm:$0xff] %v3112_v53  ;;  %v3175_v19 = vsel %vm177_vm2, %v278_v61, %v279_v23  ;;  %v6044_v9 = vstv %s2779_s20 }
  0x91   :  { %s3065_s16 = sld [smem:[#allocation6 + $0x17]]  ;;  %s3067_s18 = sld [smem:[#allocation6 + $0x13]]  ;;  %6014 = vst [vmem:[#allocation68_spill] sm:$0xff] %v3122_v38  ;;  %6018 = vst [vmem:[#allocation70_spill] sm:$0xff] %v3138_v3  ;;  %v3140_v28 = vmul.f32 %v713_v50, %v232_v52  ;;  %v3147_v12 = vmul.f32 %v713_v50, %v235_v57  ;;  %v264_v57 = vsel %vm140_vm1, %v263_v54, 0.0  ;;  %v281_v50 = vsel %vm177_vm2, %v279_v23, %v278_v61 }
  0x92   :  { %s3078_s26 = sld [smem:[#allocation6 + $0x32]]  ;;  %s3080_s3 = sld [smem:[#allocation6 + $0x4d]]  ;;  %6021 = vst [vmem:[#allocation73_spill] sm:$0xff] %v3175_v19  ;;  %v3183_v16 = vsel %vm143_vm3, %v281_v50, 0.0 }
  0x93   :  { %s3087_s0 = sld [smem:[#allocation6 + $0x2e]]  ;;  %s3089_s15 = sld [smem:[#allocation6 + $0x49]]  ;;  %6019 = vst [vmem:[#allocation71_spill] sm:$0xff] %v3140_v28  ;;  %6020 = vst [vmem:[#allocation72_spill] sm:$0xff] %v3147_v12  ;;  %v6042_v12 = vstv %s2791_s25 }
  0x94   :  { %s3100_s1 = sld [smem:[#allocation6 + $0x14]]  ;;  %s3102_s9 = sld [smem:[#allocation6 + $0x1a]]  ;;  %6023 = vst [vmem:[#allocation75_spill] sm:$0xff] %v3183_v16 }
  0x95   :  { %s3117_s19 = sld [smem:[#allocation6 + $0x16]]  ;;  %s3119_s17 = sld [smem:[#allocation6 + $0x2f]] }
  0x96   :  { %s3127_s13 = sld [smem:[#allocation6 + $0x19]]  ;;  %s3129_s14 = sld [smem:[#allocation6 + $0x35]] }
  0x97   :  { %s3145_s11 = sld [smem:[#allocation6 + $0x31]]  ;;  %s3152_s2 = sld [smem:[#allocation6 + $0x4a]]  ;;  %v403_v32 = vstv %s3067_s18 }
  0x98   :  { %s3159_s6 = sld [smem:[#allocation6 + $0x34]]  ;;  %v3177_v54 = vmul.f32 %v403_v32, %v262_v35  ;;  %v3185_v52 = vmul.f32 %v403_v32, %v264_v57 }
  0x99   :  { %s3171_s18 = sld [smem:[#allocation6 + $0x4c]]  ;;  %v567_v33 = vstv %s3087_s0  ;;  %v731_v2 = vstv %s3089_s15  ;;  %s6041_s0 = sld [smem:[#allocation30_spill]] }
  0x9a   :  { %6022 = vst [vmem:[#allocation74_spill] sm:$0xff] %v3177_v54  ;;  %6024 = vst [vmem:[#allocation76_spill] sm:$0xff] %v3185_v52  ;;  %v3193_v25 = vmul.f32 %v567_v33, %v264_v57  ;;  %v3195_v22 = vmul.f32 %v567_v33, %v262_v35  ;;  %v3198_v18 = vmul.f32 %v731_v2, %v264_v57  ;;  %s6043_s15 = sld [smem:[#allocation34_spill]] }
  0x9b   :  { %v421_v41 = vstv %s3117_s19  ;;  %v3205_v1 = vmul.f32 %v731_v2, %v262_v35  ;;  %s6045_s19 = sld [smem:[#allocation33_spill]] }
  0x9c   :  { %6015 = sst [smem:[#allocation69_spill]] %s3129_s14  ;;  %v439_v27 = vstv %s3127_s13  ;;  %6025 = vst [vmem:[#allocation77_spill] sm:$0xff] %v3193_v25  ;;  %6026 = vst [vmem:[#allocation78_spill] sm:$0xff] %v3195_v22  ;;  %v3203_v32 = vmul.f32 %v421_v41, %v2769_v5  ;;  %v3209_v33 = vmul.f32 %v421_v41, %v2767_v4  ;;  %v6039_v25 = vstv %s2785_s23  ;;  %s6047_s14 = sld [smem:[#allocation37_spill]] }
  0x9d   :  { %6027 = vst [vmem:[#allocation79_spill] sm:$0xff] %v3198_v18  ;;  %6029 = vst [vmem:[#allocation81_spill] sm:$0xff] %v3205_v1  ;;  %v3212_v57 = vmul.f32 %v439_v27, %v3175_v19  ;;  %v6033_v41 = vstv %s3145_s11  ;;  %v6036_v1 = vstv %s2781_s21  ;;  %s6038_s13 = sld [smem:[#allocation31_spill]]  ;;  %v6048_v19 = vstv %s2783_s22  ;;  %s6057_s21 = sld [smem:[#allocation32_spill]] }
  0x9e   :  { %6028 = vst [vmem:[#allocation80_spill] sm:$0xff] %v3203_v32  ;;  %6030 = vst [vmem:[#allocation82_spill] sm:$0xff] %v3209_v33  ;;  %v3227_v32 = vmul.f32 %v6033_v41, %v2769_v5  ;;  %s6069_s23 = sld [smem:[#allocation38_spill]] }
  0x9f   :  { %6031 = vst [vmem:[#allocation83_spill] sm:$0xff] %v3212_v57 }
  0xa0   :  { %6034 = vst [vmem:[#allocation85_spill] sm:$0xff] %v3227_v32  ;;  %v6054_v4 = vstv %s6043_s15  ;;  %s6083_s15 = sld [smem:[#allocation40_spill]] }
  0xa1   :  { %v6055_v3 = vmov %v6054_v4 }
  0xd6   :  { %v151_v45 = vpop.permute.xlu1 %150  ;;  %v145_v34 = vpop.permute.xlu0 %144 }
  0xd7   :  { %v154_v50 = vsel %vm3106_vm4, %v151_v45, 0.0  ;;  %v3215_v45 = vmul.f32 %v439_v27, %v3183_v16  ;;  %v148_v2 = vsel %vm3133_vm5, %v145_v34, 0.0  ;;  %v6035_v34 = vstv %s2779_s20  ;;  %s6053_s20 = sld [smem:[#allocation36_spill]] }
  0xd8   :  { %v169_v33 = vrot.slane %v154_v50, 7  ;;  %v3232_v16 = vmul.f32 %v6035_v34, %v154_v50  ;;  %v156_v41 = vrot.slane %v148_v2, 7  ;;  %v175_v32 = vrot.slane %v148_v2, 1 }
  0xd9   :  { %6032 = vst [vmem:[#allocation84_spill] sm:$0xff] %v3215_v45  ;;  %v188_v45 = vrot.slane %v154_v50, 1  ;;  %v308_v54 = vmul.f32 %v6039_v25, %v148_v2  ;;  %v636_v28 = vmul.f32 %v6042_v12, %v148_v2 }
  0xda   :  { %v153_v23 = vpop.permute.xlu1 %152  ;;  %v147_v61 = vpop.permute.xlu0 %146 }
  0xdb   :  { %v155_v35 = vsel %vm3106_vm4, %v153_v23, 0.0  ;;  %v149_v26 = vsel %vm3133_vm5, %v147_v61, 0.0  ;;  %v3236_v23 = vmul.f32 %v6036_v1, %v154_v50  ;;  %v6037_v61 = vstv %s2783_s22  ;;  %s6066_s22 = sld [smem:[#allocation35_spill]] }
  0xdc   :  { %v170_v57 = vrot.slane %v155_v35, 7  ;;  %v189_v27 = vrot.slane %v155_v35, 1  ;;  %v3240_v18 = vmul.f32 %v6037_v61, %v154_v50  ;;  %v157_v22 = vrot.slane %v149_v26, 7 }
  0xdd   :  { %v176_v52 = vrot.slane %v149_v26, 1  ;;  %v6040_v50 = vstv %s2789_s24  ;;  %v321_v25 = vmul.f32 %v6044_v9, %v155_v35  ;;  %v485_v5 = vmul.f32 %v6046_v59, %v155_v35 }
  0xde   :  { %v172_v21 = vsel %vm158_vm0, %v170_v57, %v169_v33  ;;  %v191_v1 = vsel %vm177_vm2, %v189_v27, %v188_v45  ;;  %v472_v61 = vmul.f32 %v6040_v50, %v148_v2  ;;  %v171_v53 = vsel %vm158_vm0, %v169_v33, %v170_v57 }
  0xdf   :  { %v173_v34 = vsel %vm140_vm1, %v172_v21, 0.0  ;;  %v3260_v21 = vsel %vm177_vm2, %v188_v45, %v189_v27  ;;  %v3266_v50 = vmul.f32 %v6048_v19, %v155_v35  ;;  %v309_v12 = vmul.f32 %v6049_v0, %v149_v26 }
  0xe0   :  { %v3272_v33 = vsel %vm143_vm3, %v191_v1, 0.0  ;;  %v6050_v57 = vstv %s6038_s13  ;;  %v159_v45 = vsel %vm158_vm0, %v156_v41, %v157_v22  ;;  %v160_v2 = vsel %vm158_vm0, %v157_v22, %v156_v41  ;;  %s6081_s13 = sld [smem:[#allocation41_spill]] }
  0xe1   :  { %v302_v9 = vmul.f32 %v6050_v57, %v173_v34  ;;  %v6051_v59 = vmov %v6050_v57  ;;  %v161_v19 = vsel %vm140_vm1, %v160_v2, 0.0  ;;  %v179_v0 = vsel %vm177_vm2, %v176_v52, %v175_v32 }
  0xe2   :  { %v303_v27 = vmul.f32 %v6051_v59, %v171_v53  ;;  %v6052_v35 = vstv %s6041_s0  ;;  %v466_v57 = vmul.f32 %v6054_v4, %v173_v34  ;;  %v467_v38 = vmul.f32 %v6055_v3, %v171_v53  ;;  %s6082_s0 = sld [smem:[#allocation39_spill]] }
  0xe3   :  { %v293_v1 = vmul.f32 %v6052_v35, %v159_v45  ;;  %v6056_v31 = vmov %v6052_v35  ;;  %v6058_v22 = vstv %s6045_s19  ;;  %v6059_v59 = vstv %s6047_s14  ;;  %s6077_s14 = sld [smem:[#allocation29_spill]]  ;;  %s6087_s19 = sld [smem:[#allocation42_spill]] }
  0xe4   :  { %v292_v51 = vmul.f32 %v6056_v31, %v161_v19  ;;  %v456_v41 = vmul.f32 %v6058_v22, %v161_v19  ;;  %v630_v60 = vmul.f32 %v6059_v59, %v173_v34  ;;  %v178_v2 = vsel %vm177_vm2, %v175_v32, %v176_v52 }
  0xe5   :  { %v299_v55 = vadd.f32 %v2903_v40, %v293_v1  ;;  %v6060_v24 = vmov %v6058_v22  ;;  %v6061_v30 = vmov %v6059_v59  ;;  %v181_v4 = vsel %vm143_vm3, %v179_v0, 0.0 }
  0xe6   :  { %v457_v35 = vmul.f32 %v6060_v24, %v159_v45  ;;  %v631_v11 = vmul.f32 %v6061_v30, %v171_v53  ;;  %v298_v3 = vadd.f32 %v2891_v36, %v292_v51  ;;  %v462_v31 = vadd.f32 %v2926_v47, %v456_v41 }
  0xe7   :  { %v305_v22 = vadd.f32 %v303_v27, %v299_v55  ;;  %v6062_v59 = vstv %s6053_s20  ;;  %v6064_v24 = vstv %s6057_s21  ;;  %v6065_v53 = vstv %s2789_s24  ;;  %v197_v55 = vpop.permute.xlu1 %196  ;;  %s6071_s24 = sld [smem:[#allocation27_spill]]  ;;  %s6099_s21 = sld [smem:[#allocation46_spill]] }
  0xe8   :  { %v463_v34 = vadd.f32 %v2929_v48, %v457_v35  ;;  %v620_v52 = vmul.f32 %v6062_v59, %v161_v19  ;;  %v6063_v32 = vmov %v6062_v59  ;;  %v304_v1 = vadd.f32 %v302_v9, %v298_v3  ;;  %v195_v59 = vpop.permute.xlu0 %194  ;;  %s6094_s20 = sld [smem:[#allocation43_spill]] }
  0xe9   :  { %v621_v40 = vmul.f32 %v6063_v32, %v159_v45  ;;  %v326_v20 = vmul.f32 %v6064_v24, %v178_v2  ;;  %v468_v30 = vadd.f32 %v466_v57, %v462_v31  ;;  %v473_v39 = vmul.f32 %v6065_v53, %v149_v26 }
  0xea   :  { %v311_v0 = vadd.f32 %v309_v12, %v305_v22  ;;  %v469_v36 = vadd.f32 %v467_v38, %v463_v34  ;;  %v626_v51 = vadd.f32 %v2970_v63, %v620_v52  ;;  %v310_v27 = vadd.f32 %v308_v54, %v304_v1 }
  0xeb   :  { %v627_v47 = vadd.f32 %v2973_v6, %v621_v40  ;;  %v6067_v48 = vmov %v6064_v24  ;;  %v474_v19 = vadd.f32 %v472_v61, %v468_v30  ;;  %v6068_v35 = vstv %s2791_s25  ;;  %s6074_s25 = sld [smem:[#allocation28_spill]] }
  0xec   :  { %v327_v41 = vmul.f32 %v6067_v48, %v181_v4  ;;  %v637_v45 = vmul.f32 %v6068_v35, %v149_v26  ;;  %v317_v9 = vadd.f32 %v2898_v37, %v311_v0  ;;  %v475_v57 = vadd.f32 %v473_v39, %v469_v36 }
  0xed   :  { %v632_v3 = vadd.f32 %v630_v60, %v626_v51  ;;  %v633_v31 = vadd.f32 %v631_v11, %v627_v47  ;;  %v316_v38 = vadd.f32 %v2911_v42, %v310_v27  ;;  %v480_v63 = vadd.f32 %v2949_v56, %v474_v19 }
  0xee   :  { %v6070_v12 = vstv %s6066_s22  ;;  %v199_v54 = vsel %vm3133_vm5, %v197_v55, 0.0  ;;  %v323_v22 = vadd.f32 %v321_v25, %v317_v9  ;;  %v481_v61 = vadd.f32 %v2936_v49, %v475_v57  ;;  %s6100_s22 = sld [smem:[#allocation47_spill]] }
  0xef   :  { %v490_v6 = vmul.f32 %v6070_v12, %v178_v2  ;;  %v638_v26 = vadd.f32 %v636_v28, %v632_v3  ;;  %v639_v34 = vadd.f32 %v637_v45, %v633_v31  ;;  %v322_v37 = vadd.f32 %v3232_v16, %v316_v38 }
  0xf0   :  { %v486_v39 = vadd.f32 %v3236_v23, %v480_v63  ;;  %v6072_v42 = vmov %v6070_v12  ;;  %v6073_v56 = vstv %s6069_s23  ;;  %v329_v52 = vadd.f32 %v327_v41, %v323_v22  ;;  %s6101_s23 = sld [smem:[#allocation45_spill]] }
  0xf1   :  { %v491_v11 = vmul.f32 %v6072_v42, %v181_v4  ;;  %v654_v60 = vmul.f32 %v6073_v56, %v178_v2  ;;  %v487_v32 = vadd.f32 %v485_v5, %v481_v61  ;;  %v644_v40 = vadd.f32 %v2984_v10, %v638_v26  ;;  %v203_v61 = vpop.permute.xlu1 %202 }
  0xf2   :  { %v645_v25 = vadd.f32 %v2980_v8, %v639_v34  ;;  %v328_v49 = vadd.f32 %v326_v20, %v322_v37  ;;  %v492_v28 = vadd.f32 %v490_v6, %v486_v39  ;;  %v207_v1 = vrot.slane %v199_v54, 7 }
  0xf3   :  { %v198_v16 = vsel %vm3133_vm5, %v195_v59, 0.0  ;;  %v493_v24 = vadd.f32 %v491_v11, %v487_v32  ;;  %v650_v23 = vadd.f32 %v3240_v18, %v644_v40  ;;  %v6075_v30 = vmov %v6073_v56 }
  0xf4   :  { %v651_v2 = vadd.f32 %v3266_v50, %v645_v25  ;;  %v655_v5 = vmul.f32 %v6075_v30, %v181_v4  ;;  %v6076_v10 = vstv %s6071_s24  ;;  %v335_v8 = vadd.f32 %v2917_v44, %v329_v52  ;;  %s6109_s24 = sld [smem:[#allocation50_spill]] }
  0xf5   :  { %v338_v53 = vmul.f32 %v6076_v10, %v3260_v21  ;;  %v225_v20 = vrot.slane %v199_v54, 1  ;;  %v206_v0 = vrot.slane %v198_v16, 7  ;;  %v334_v36 = vadd.f32 %v2914_v43, %v328_v49 }
  0xf6   :  { %v656_v51 = vadd.f32 %v654_v60, %v650_v23  ;;  %v657_v47 = vadd.f32 %v655_v5, %v651_v2  ;;  %v224_v55 = vrot.slane %v198_v16, 1  ;;  %v6078_v18 = vmov %v6076_v10  ;;  %v201_v5 = vpop.permute.xlu0 %200 }
  0xf7   :  { %v339_v50 = vmul.f32 %v6078_v18, %v3272_v33  ;;  %v6079_v4 = vstv %s6074_s25  ;;  %v498_v48 = vadd.f32 %v2957_v58, %v492_v28  ;;  %v209_v44 = vsel %vm158_vm0, %v207_v1, %v206_v0  ;;  %s6112_s25 = sld [smem:[#allocation53_spill]] }
  0xf8   :  { %v502_v27 = vmul.f32 %v6079_v4, %v3260_v21  ;;  %v6080_v41 = vmov %v6079_v4  ;;  %v499_v43 = vadd.f32 %v2967_v62, %v493_v24  ;;  %v208_v35 = vsel %vm158_vm0, %v206_v0, %v207_v1 }
  0xf9   :  { %v503_v19 = vmul.f32 %v6080_v41, %v3272_v33  ;;  %v210_v45 = vsel %vm140_vm1, %v209_v44, 0.0  ;;  %v6084_v58 = vstv %s6077_s14  ;;  %v662_v31 = vadd.f32 %v2993_v14, %v656_v51  ;;  %s6114_s14 = sld [smem:[#allocation52_spill]] }
  0xfa   :  { %v666_v9 = vmul.f32 %v6084_v58, %v3260_v21  ;;  %v6085_v57 = vmov %v6084_v58  ;;  %v6086_v38 = vstv %s2877_s30  ;;  %v663_v62 = vadd.f32 %v2996_v15, %v657_v47  ;;  %s6106_s30 = sld [smem:[#allocation48_spill]] }
  0xfb   :  { %v667_v3 = vmul.f32 %v6085_v57, %v3272_v33  ;;  %v3377_v63 = vmul.f32 %v6086_v38, %v199_v54  ;;  %v227_v12 = vsel %vm177_vm2, %v225_v20, %v224_v55  ;;  %v340_v6 = vadd.f32 %v338_v53, %v334_v36 }
  0xfc   :  { %v341_v22 = vadd.f32 %v339_v50, %v335_v8  ;;  %v6088_v21 = vstv %s2893_s10  ;;  %v504_v59 = vadd.f32 %v502_v27, %v498_v48  ;;  %v6090_v14 = vstv %s6081_s13  ;;  %s6096_s10 = sld [smem:[#allocation44_spill]]  ;;  %s6135_s13 = sld [smem:[#allocation49_spill]] }
  0xfd   :  { %v344_v26 = vmul.f32 %v6088_v21, %v210_v45  ;;  %v6089_v34 = vmov %v6088_v21  ;;  %v508_v37 = vmul.f32 %v6090_v14, %v210_v45  ;;  %v6091_v39 = vstv %s6082_s0  ;;  %s6137_s0 = sld [smem:[#allocation51_spill]] }
  0xfe   :  { %v345_v33 = vmul.f32 %v6089_v34, %v208_v35  ;;  %v527_v42 = vmul.f32 %v6091_v39, %v199_v54  ;;  %v6092_v11 = vstv %s6083_s15  ;;  %v505_v56 = vadd.f32 %v503_v19, %v499_v43  ;;  %s6140_s15 = sld [smem:[#allocation54_spill]] }
  0xff   :  { %v3392_v15 = vmul.f32 %v6092_v11, %v199_v54  ;;  %v6093_v60 = vmov %v6090_v14  ;;  %v226_v32 = vsel %vm177_vm2, %v224_v55, %v225_v20  ;;  %v668_v40 = vadd.f32 %v666_v9, %v662_v31 }
 0x100   :  { %v509_v52 = vmul.f32 %v6093_v60, %v208_v35  ;;  %v6095_v25 = vstv %s6087_s19  ;;  %v3402_v28 = vsel %vm3106_vm4, %v203_v61, 0.0  ;;  %v3406_v54 = vsel %vm143_vm3, %v227_v12, 0.0  ;;  %v6115_v61 = vld [vmem:[#allocation56_spill] sm:$0xff]  ;;  %s3752_s19 = sld [smem:[#allocation9 + $0xd]] }
 0x101   :  { %v672_v49 = vmul.f32 %v6095_v25, %v210_v45  ;;  %v6097_v1 = vmov %v6086_v38  ;;  %v669_v23 = vadd.f32 %v667_v3, %v663_v62  ;;  %v6098_v2 = vmov %v6095_v25  ;;  %v6113_v62 = vld [vmem:[#allocation55_spill] sm:$0xff] }
 0x102   :  { %v362_v24 = vmul.f32 %v6097_v1, %v198_v16  ;;  %v673_v30 = vmul.f32 %v6098_v2, %v208_v35  ;;  %v346_v10 = vadd.f32 %v344_v26, %v340_v6  ;;  %v347_v53 = vadd.f32 %v345_v33, %v341_v22  ;;  %v6116_v26 = vld [vmem:[#allocation57_spill] sm:$0xff] }
 0x103   :  { %v510_v8 = vadd.f32 %v508_v37, %v504_v59  ;;  %v6102_v20 = vmov %v6091_v39  ;;  %v511_v36 = vadd.f32 %v509_v52, %v505_v56  ;;  %v6103_v51 = vmov %v6092_v11  ;;  %v6119_v39 = vld [vmem:[#allocation64_spill] sm:$0xff] }
 0x104   :  { %v526_v0 = vmul.f32 %v6102_v20, %v198_v16  ;;  %v690_v47 = vmul.f32 %v6103_v51, %v198_v16  ;;  %v219_v55 = vrot.slane %v3402_v28, 7  ;;  %v6104_v18 = vstv %s6094_s20  ;;  %s3754_s20 = sld [smem:[#allocation9 + $0x28]] }
 0x105   :  { %v3419_v50 = vmul.f32 %v6104_v18, %v226_v32  ;;  %v674_v4 = vadd.f32 %v672_v49, %v668_v40  ;;  %v237_v27 = vrot.slane %v3402_v28, 1  ;;  %v6105_v48 = vstv %s6096_s10  ;;  %s3756_s10 = sld [smem:[#allocation9 + $0x3]] }
 0x106   :  { %v375_v44 = vmul.f32 %v6105_v48, %v3402_v28  ;;  %v204_v41 = vsel %vm3106_vm4, %v201_v5, 0.0  ;;  %v675_v19 = vadd.f32 %v673_v30, %v669_v23  ;;  %v6107_v43 = vstv %s6099_s21  ;;  %6217 = sst [smem:[#allocation36_spill]] %s3752_s19 }
 0x107   :  { %v539_v16 = vmul.f32 %v6107_v43, %v3402_v28  ;;  %v6108_v35 = vstv %s6100_s22  ;;  %v218_v58 = vrot.slane %v204_v41, 7  ;;  %v6110_v9 = vmov %v6104_v18  ;;  %v245_v18 = vpop.permute.xlu1 %244 }
 0x108   :  { %v703_v45 = vmul.f32 %v6108_v35, %v3402_v28  ;;  %v381_v57 = vmul.f32 %v6110_v9, %v3406_v54  ;;  %v6111_v3 = vstv %s6101_s23  ;;  %v352_v38 = vadd.f32 %v3041_v46, %v346_v10  ;;  %v6123_v28 = vld [vmem:[#allocation67_spill] sm:$0xff]  ;;  %s3762_s23 = sld [smem:[#allocation9 + $0x39]] }
 0x109   :  { %v544_v31 = vmul.f32 %v6111_v3, %v226_v32  ;;  %v353_v12 = vadd.f32 %v6113_v62, %v347_v53  ;;  %v220_v6 = vsel %vm158_vm0, %v218_v58, %v219_v55  ;;  %v221_v22 = vsel %vm158_vm0, %v219_v55, %v218_v58 }
 0x10a   :  { %v516_v21 = vadd.f32 %v6115_v61, %v510_v8  ;;  %v517_v34 = vadd.f32 %v6116_v26, %v511_v36  ;;  %v6117_v33 = vmov %v6111_v3  ;;  %v222_v46 = vsel %vm140_vm1, %v221_v22, 0.0  ;;  %v6128_v22 = vld [vmem:[#allocation59_spill] sm:$0xff] }
 0x10b   :  { %v545_v59 = vmul.f32 %v6117_v33, %v3406_v54  ;;  %v6118_v14 = vstv %s6106_s30  ;;  %v680_v11 = vadd.f32 %v6119_v39, %v674_v4  ;;  %v6121_v52 = vstv %s6109_s24  ;;  %v6131_v33 = vld [vmem:[#allocation62_spill] sm:$0xff]  ;;  %6218 = sst [smem:[#allocation32_spill]] %s3756_s10  ;;  %s3764_s30 = sld [smem:[#allocation9 + $0xa]] }
 0x10c   :  { %v357_v37 = vmul.f32 %v6118_v14, %v220_v6  ;;  %v6120_v56 = vmov %v6118_v14  ;;  %v520_v40 = vmul.f32 %v6121_v52, %v222_v46  ;;  %v6122_v25 = vmov %v6121_v52  ;;  %v6132_v14 = vld [vmem:[#allocation63_spill] sm:$0xff]  ;;  %v6134_v52 = vld [vmem:[#allocation70_spill] sm:$0xff]  ;;  %s3766_s24 = sld [smem:[#allocation9 + $0x10]]  ;;  %s4148_s10 = sld [smem:[#allocation9 + $0x4e]] }
 0x10d   :  { %v356_v60 = vmul.f32 %v6120_v56, %v222_v46  ;;  %v521_v49 = vmul.f32 %v6122_v25, %v220_v6  ;;  %v681_v1 = vadd.f32 %v6123_v28, %v675_v19  ;;  %v6124_v23 = vstv %s6112_s25 }
 0x10e   :  { %v708_v2 = vmul.f32 %v6124_v23, %v226_v32  ;;  %v236_v30 = vrot.slane %v204_v41, 1  ;;  %v359_v5 = vadd.f32 %v357_v37, %v353_v12  ;;  %v6125_v10 = vstv %s6114_s14  ;;  %v243_v12 = vpop.permute.xlu0 %242  ;;  %6221 = sst [smem:[#allocation27_spill]] %s3762_s23  ;;  %s3770_s14 = sld [smem:[#allocation9 + $0x2b]] }
 0x10f   :  { %v684_v53 = vmul.f32 %v6125_v10, %v222_v46  ;;  %v358_v8 = vadd.f32 %v356_v60, %v352_v38  ;;  %v522_v20 = vadd.f32 %v520_v40, %v516_v21  ;;  %v523_v36 = vadd.f32 %v521_v49, %v517_v34  ;;  %s4030_s23 = sld [smem:[#allocation9 + $0x26]] }
 0x110   :  { %v6126_v51 = vmov %v6125_v10  ;;  %v365_v4 = vadd.f32 %v3377_v63, %v359_v5  ;;  %v374_v43 = vmul.f32 %v6105_v48, %v204_v41  ;;  %v6127_v35 = vstv %s6099_s21  ;;  %v6130_v63 = vld [vmem:[#allocation58_spill] sm:$0xff]  ;;  %s3758_s21 = sld [smem:[#allocation9 + $0x43]] }
 0x111   :  { %v685_v55 = vmul.f32 %v6126_v51, %v220_v6  ;;  %v538_v58 = vmul.f32 %v6127_v35, %v204_v41  ;;  %v686_v19 = vadd.f32 %v684_v53, %v680_v11  ;;  %v364_v9 = vadd.f32 %v362_v24, %v358_v8 }
 0x112   :  { %v528_v32 = vadd.f32 %v526_v0, %v522_v20  ;;  %v529_v3 = vadd.f32 %v527_v42, %v523_v36  ;;  %v371_v38 = vadd.f32 %v6128_v22, %v365_v4  ;;  %v6129_v21 = vstv %s6100_s22  ;;  %s3760_s22 = sld [smem:[#allocation9 + $0x1e]]  ;;  %6222 = sst [smem:[#allocation28_spill]] %s3766_s24 }
 0x113   :  { %v687_v62 = vadd.f32 %v685_v55, %v681_v1  ;;  %v692_v61 = vadd.f32 %v690_v47, %v686_v19  ;;  %v702_v26 = vmul.f32 %v6129_v21, %v204_v41  ;;  %v3477_v6 = vsel %vm3133_vm5, %v245_v18, 0.0  ;;  %v6133_v47 = vld [vmem:[#allocation68_spill] sm:$0xff] }
 0x114   :  { %v370_v34 = vadd.f32 %v6130_v63, %v364_v9  ;;  %v534_v46 = vadd.f32 %v6131_v33, %v528_v32  ;;  %v535_v37 = vadd.f32 %v6132_v14, %v529_v3  ;;  %v239_v42 = vsel %vm177_vm2, %v237_v27, %v236_v30  ;;  %v6146_v18 = vld [vmem:[#allocation60_spill] sm:$0xff]  ;;  %v6149_v9 = vld [vmem:[#allocation65_spill] sm:$0xff]  ;;  %v6150_v3 = vld [vmem:[#allocation66_spill] sm:$0xff] }
 0x115   :  { %v693_v24 = vadd.f32 %v3392_v15, %v687_v62  ;;  %v377_v0 = vadd.f32 %v375_v44, %v371_v38  ;;  %v698_v39 = vadd.f32 %v6133_v47, %v692_v61  ;;  %v3488_v41 = vsel %vm3133_vm5, %v243_v12, 0.0 }
 0x116   :  { %v376_v11 = vadd.f32 %v374_v43, %v370_v34  ;;  %v540_v56 = vadd.f32 %v538_v58, %v534_v46  ;;  %v541_v60 = vadd.f32 %v539_v16, %v535_v37  ;;  %v238_v15 = vsel %vm177_vm2, %v236_v30, %v237_v27  ;;  %v6154_v46 = vld [vmem:[#allocation71_spill] sm:$0xff]  ;;  %6219 = sst [smem:[#allocation35_spill]] %s3758_s21 }
 0x117   :  { %v699_v40 = vadd.f32 %v6134_v52, %v693_v24  ;;  %v383_v25 = vadd.f32 %v381_v57, %v377_v0  ;;  %v704_v44 = vadd.f32 %v702_v26, %v698_v39  ;;  %v255_v49 = vrot.slane %v3477_v6, 7  ;;  %v6138_v57 = vld [vmem:[#allocation25_spill] sm:$0xff]  ;;  %v6155_v0 = vld [vmem:[#allocation72_spill] sm:$0xff]  ;;  %v251_v52 = vpop.permute.xlu1 %250 }
 0x118   :  { %v382_v28 = vadd.f32 %v3419_v50, %v376_v11  ;;  %v546_v1 = vadd.f32 %v544_v31, %v540_v56  ;;  %v547_v23 = vadd.f32 %v545_v59, %v541_v60  ;;  %v6136_v16 = vstv %s6112_s25  ;;  %v6141_v50 = vld [vmem:[#allocation61_spill] sm:$0xff]  ;;  %v6142_v59 = vld [vmem:[#allocation73_spill] sm:$0xff]  ;;  %6220 = sst [smem:[#allocation38_spill]] %s3760_s22  ;;  %s3768_s25 = sld [smem:[#allocation9 + $0x25]] }
 0x119   :  { %v705_v5 = vadd.f32 %v703_v45, %v699_v40  ;;  %v709_v10 = vmul.f32 %v6136_v16, %v3406_v54  ;;  %v241_v53 = vsel %vm143_vm3, %v239_v42, 0.0  ;;  %v254_v27 = vrot.slane %v3488_v41, 7  ;;  %v6144_v54 = vld [vmem:[#allocation26_spill] sm:$0xff]  ;;  %s3875_s22 = sld [smem:[#allocation9 + $0x27]] }
 0x11a   :  { %v6139_v30 = vstv %s3145_s11  ;;  %v389_v20 = vadd.f32 %v6141_v50, %v383_v25  ;;  %v710_v31 = vadd.f32 %v708_v2, %v704_v44  ;;  %v6143_v45 = vstv %s3159_s6  ;;  %s3678_s11 = sld [smem:[#allocation6 + $0x50]] }
 0x11b   :  { %v3504_v8 = vmul.f32 %v6139_v30, %v6138_v57  ;;  %v3510_v36 = vmul.f32 %v6143_v45, %v6142_v59  ;;  %v6145_v51 = vstv %s3171_s18  ;;  %v388_v4 = vadd.f32 %v6146_v18, %v382_v28  ;;  %s3750_s18 = sld [smem:[#allocation9 + $0x3d]] }
 0x11c   :  { %v3515_v55 = vmul.f32 %v6145_v51, %v6144_v54  ;;  %v6147_v48 = vstv %s6135_s13  ;;  %v711_v35 = vadd.f32 %v709_v10, %v705_v5  ;;  %v257_v58 = vsel %vm158_vm0, %v255_v49, %v254_v27  ;;  %s3772_s13 = sld [smem:[#allocation9 + $0x40]] }
 0x11d   :  { %v392_v43 = vmul.f32 %v6147_v48, %v238_v15  ;;  %v6148_v19 = vmov %v6147_v48  ;;  %v552_v32 = vadd.f32 %v6149_v9, %v546_v1  ;;  %v553_v62 = vadd.f32 %v6150_v3, %v547_v23 }
 0x11e   :  { %v393_v2 = vmul.f32 %v6148_v19, %v241_v53  ;;  %v256_v12 = vsel %vm158_vm0, %v254_v27, %v255_v49  ;;  %v6151_v22 = vstv %s6137_s0  ;;  %v6153_v26 = vstv %s6140_s15  ;;  %6223 = sst [smem:[#allocation29_spill]] %s3768_s25  ;;  %s3774_s0 = sld [smem:[#allocation9 + $0x46]] }
 0x11f   :  { %v556_v38 = vmul.f32 %v6151_v22, %v238_v15  ;;  %v6152_v61 = vmov %v6151_v22  ;;  %v720_v63 = vmul.f32 %v6153_v26, %v238_v15  ;;  %v258_v34 = vsel %vm140_vm1, %v257_v58, 0.0  ;;  %s3776_s15 = sld [smem:[#allocation9 + $0x16]] }
 0x120   :  { %v557_v21 = vmul.f32 %v6152_v61, %v241_v53  ;;  %v395_v33 = vadd.f32 %v393_v2, %v389_v20  ;;  %v716_v14 = vadd.f32 %v6154_v46, %v710_v31  ;;  %v273_v37 = vrot.slane %v3477_v6, 1 }
 0x121   :  { %v272_v24 = vrot.slane %v3488_v41, 1  ;;  %v394_v42 = vadd.f32 %v392_v43, %v388_v4  ;;  %v717_v47 = vadd.f32 %v6155_v0, %v711_v35  ;;  %v6156_v39 = vstv %s3039_s29  ;;  %s3659_s29 = sld [smem:[#allocation7 + $0x1]] }
 0x122   :  { %v398_v11 = vmul.f32 %v6156_v39, %v258_v34  ;;  %v6157_v56 = vmov %v6156_v39  ;;  %v558_v40 = vadd.f32 %v556_v38, %v552_v32  ;;  %v559_v15 = vadd.f32 %v557_v21, %v553_v62  ;;  %v6173_v39 = vld [vmem:[#allocation77_spill] sm:$0xff] }
 0x123   :  { %v399_v60 = vmul.f32 %v6157_v56, %v256_v12  ;;  %v6158_v25 = vstv %s3047_s5  ;;  %v6160_v1 = vmov %v6153_v26  ;;  %v6161_v5 = vstv %s3027_s12  ;;  %s6207_s12 = smov 127   ;;  %s3742_s5 = sld [smem:[#allocation9 + $0x1c]] }
 0x124   :  { %v562_v44 = vmul.f32 %v6158_v25, %v258_v34  ;;  %v6159_v49 = vmov %v6158_v25  ;;  %v721_v23 = vmul.f32 %v6160_v1, %v241_v53  ;;  %v417_v16 = vmul.f32 %v6161_v5, %v3477_v6 }
 0x125   :  { %v563_v28 = vmul.f32 %v6159_v49, %v256_v12  ;;  %v6162_v10 = vstv %s3029_s8  ;;  %v6163_v30 = vmov %v6145_v51  ;;  %v722_v20 = vadd.f32 %v720_v63, %v716_v14  ;;  %v249_v51 = vpop.permute.xlu0 %248  ;;  %v6171_v14 = vld [vmem:[#allocation76_spill] sm:$0xff]  ;;  %s3640_s8 = sld [smem:[#allocation7]]  ;;  %6224 = sst [smem:[#allocation41_spill]] %s3776_s15 }
 0x126   :  { %v581_v27 = vmul.f32 %v6162_v10, %v3477_v6  ;;  %v3559_v50 = vmul.f32 %v6163_v30, %v6138_v57  ;;  %v275_v31 = vsel %vm177_vm2, %v273_v37, %v272_v24  ;;  %v6164_v45 = vstv %s3049_s27  ;;  %v6180_v30 = vld [vmem:[#allocation79_spill] sm:$0xff]  ;;  %s3648_s27 = sld [smem:[#allocation6 + $0x4f]]  ;;  %s3798_s15 = sld [smem:[#allocation9 + $0x5]] }
 0x127   :  { %v726_v54 = vmul.f32 %v6164_v45, %v258_v34  ;;  %v3567_v53 = vsel %vm3106_vm4, %v251_v52, 0.0  ;;  %v723_v18 = vadd.f32 %v721_v23, %v717_v47  ;;  %v400_v4 = vadd.f32 %v398_v11, %v394_v42  ;;  %v6174_v11 = vld [vmem:[#allocation78_spill] sm:$0xff] }
 0x128   :  { %v401_v48 = vadd.f32 %v399_v60, %v395_v33  ;;  %v6165_v57 = vmov %v6164_v45  ;;  %v3573_v35 = vsel %vm177_vm2, %v272_v24, %v273_v37  ;;  %v564_v58 = vadd.f32 %v562_v44, %v558_v40  ;;  %v6172_v24 = vld [vmem:[#allocation74_spill] sm:$0xff] }
 0x129   :  { %v727_v43 = vmul.f32 %v6165_v57, %v256_v12  ;;  %v565_v19 = vadd.f32 %v563_v28, %v559_v15  ;;  %v267_v2 = vrot.slane %v3567_v53, 7  ;;  %v6166_v9 = vstv %s3037_s28  ;;  %s3740_s28 = sld [smem:[#allocation9 + $0x1]] }
 0x12a   :  { %v745_v32 = vmul.f32 %v6166_v9, %v3477_v6  ;;  %v3581_v3 = vsel %vm143_vm3, %v275_v31, 0.0  ;;  %v6167_v62 = vmov %v6161_v5  ;;  %v3588_v12 = vsel %vm3106_vm4, %v249_v51, 0.0 }
 0x12b   :  { %v416_v22 = vmul.f32 %v6167_v62, %v3488_v41  ;;  %v6168_v38 = vmov %v6162_v10  ;;  %v728_v21 = vadd.f32 %v726_v54, %v722_v20  ;;  %v6169_v6 = vmov %v6166_v9 }
 0x12c   :  { %v580_v61 = vmul.f32 %v6168_v38, %v3488_v41  ;;  %v744_v26 = vmul.f32 %v6169_v6, %v3488_v41  ;;  %v266_v63 = vrot.slane %v3588_v12, 7  ;;  %v729_v34 = vadd.f32 %v727_v43, %v723_v18  ;;  %v6182_v18 = vld [vmem:[#allocation81_spill] sm:$0xff]  ;;  %6231 = sst [smem:[#allocation47_spill]] %s3798_s15  ;;  %s3813_s15 = sld [smem:[#allocation9 + $0x21]] }
 0x12d   :  { %v6170_v33 = vstv %s3057_s7  ;;  %v406_v37 = vadd.f32 %v6171_v14, %v400_v4  ;;  %v407_v42 = vadd.f32 %v6172_v24, %v401_v48  ;;  %v570_v41 = vadd.f32 %v6173_v39, %v564_v58  ;;  %s3633_s7 = sld [smem:[#allocation6 + $0x4e]] }
 0x12e   :  { %v434_v46 = vmul.f32 %v6170_v33, %v3573_v35  ;;  %v268_v0 = vsel %vm158_vm0, %v266_v63, %v267_v2  ;;  %v269_v47 = vsel %vm158_vm0, %v267_v2, %v266_v63  ;;  %v571_v56 = vadd.f32 %v6174_v11, %v565_v19 }
 0x12f   :  { %v285_v60 = vrot.slane %v3567_v53, 1  ;;  %v6175_v52 = vmov %v6170_v33  ;;  %v270_v15 = vsel %vm140_vm1, %v269_v47, 0.0  ;;  %v6176_v25 = vstv %s3100_s1  ;;  %6214 = sst [smem:[#allocation34_spill]] %s3740_s28 }
 0x130   :  { %v435_v40 = vmul.f32 %v6175_v52, %v3581_v3  ;;  %v411_v44 = vmul.f32 %v6176_v25, %v268_v0  ;;  %v6177_v49 = vmov %v6176_v25  ;;  %v6178_v1 = vstv %s3119_s17  ;;  %s6206_s17 = smov 1   ;;  %s3746_s1 = sld [smem:[#allocation9 + $0x7]] }
 0x131   :  { %v410_v28 = vmul.f32 %v6177_v49, %v270_v15  ;;  %v574_v23 = vmul.f32 %v6178_v1, %v270_v15  ;;  %v6179_v5 = vmov %v6178_v1  ;;  %v734_v20 = vadd.f32 %v6180_v30, %v728_v21  ;;  %6252 = sst [smem:[#allocation34_spill]] %s3875_s22  ;;  %s4081_s22 = sld [smem:[#allocation9 + $0x15]] }
 0x132   :  { %v575_v10 = vmul.f32 %v6179_v5, %v268_v0  ;;  %v6181_v31 = vstv %s3065_s16  ;;  %v284_v54 = vrot.slane %v3588_v12, 1  ;;  %v413_v51 = vadd.f32 %v411_v44, %v407_v42  ;;  %v6187_v42 = vld [vmem:[#allocation82_spill] sm:$0xff]  ;;  %v6193_v5 = vld [vmem:[#allocation75_spill] sm:$0xff]  ;;  %s3744_s16 = sld [smem:[#allocation9 + $0x37]]  ;;  %6235 = sst [smem:[#allocation53_spill]] %s3813_s15 }
 0x133   :  { %v429_v45 = vmul.f32 %v6181_v31, %v3567_v53  ;;  %v735_v4 = vadd.f32 %v6182_v18, %v729_v34  ;;  %v412_v48 = vadd.f32 %v410_v28, %v406_v37  ;;  %v576_v57 = vadd.f32 %v574_v23, %v570_v41  ;;  %s3980_s15 = sld [smem:[#allocation9 + $0x29]] }
 0x134   :  { %v577_v43 = vadd.f32 %v575_v10, %v571_v56  ;;  %v6183_v58 = vstv %s3152_s2  ;;  %v6184_v2 = vstv %s3078_s26  ;;  %v419_v62 = vadd.f32 %v417_v16, %v413_v51  ;;  %v6190_v56 = vld [vmem:[#allocation85_spill] sm:$0xff]  ;;  %s3734_s2 = sld [smem:[#allocation9 + $0x4]]  ;;  %s3738_s26 = sld [smem:[#allocation9 + $0x3a]] }
 0x135   :  { %v738_v19 = vmul.f32 %v6183_v58, %v270_v15  ;;  %v593_v9 = vmul.f32 %v6184_v2, %v3567_v53  ;;  %v6185_v38 = vmov %v6181_v31  ;;  %v6186_v6 = vmov %v6183_v58  ;;  %v6196_v58 = vld [vmem:[#allocation84_spill] sm:$0xff] }
 0x136   :  { %v428_v21 = vmul.f32 %v6185_v38, %v3588_v12  ;;  %v739_v63 = vmul.f32 %v6186_v6, %v268_v0  ;;  %v418_v34 = vadd.f32 %v416_v22, %v412_v48  ;;  %v582_v33 = vadd.f32 %v580_v61, %v576_v57  ;;  %v6189_v0 = vld [vmem:[#allocation80_spill] sm:$0xff]  ;;  %6215 = sst [smem:[#allocation33_spill]] %s3746_s1 }
 0x137   :  { %v583_v14 = vadd.f32 %v581_v27, %v577_v43  ;;  %v740_v37 = vadd.f32 %v738_v19, %v734_v20  ;;  %v287_v24 = vsel %vm177_vm2, %v285_v60, %v284_v54  ;;  %v425_v47 = vadd.f32 %v6187_v42, %v419_v62 }
 0x138   :  { %v6188_v16 = vmov %v6184_v2  ;;  %v741_v41 = vadd.f32 %v739_v63, %v735_v4  ;;  %v424_v11 = vadd.f32 %v6189_v0, %v418_v34  ;;  %v588_v52 = vadd.f32 %v6190_v56, %v582_v33 }
 0x139   :  { %v592_v39 = vmul.f32 %v6188_v16, %v3588_v12  ;;  %v589_v22 = vadd.f32 %v3504_v8, %v583_v14  ;;  %v746_v27 = vadd.f32 %v744_v26, %v740_v37  ;;  %v6191_v61 = vstv %s3059_s4  ;;  %s3736_s4 = sld [smem:[#allocation9 + $0x1f]]  ;;  %6264 = sst [smem:[#allocation35_spill]] %s3980_s15 }
 0x13a   :  { %v598_v15 = vmul.f32 %v6191_v61, %v3573_v35  ;;  %v6192_v25 = vmov %v6191_v61  ;;  %v431_v49 = vadd.f32 %v429_v45, %v425_v47  ;;  %v747_v28 = vadd.f32 %v745_v32, %v741_v41  ;;  %6213 = sst [smem:[#allocation30_spill]] %s3738_s26 }
 0x13b   :  { %v599_v44 = vmul.f32 %v6192_v25, %v3581_v3  ;;  %v289_v1 = vsel %vm143_vm3, %v287_v24, 0.0  ;;  %v430_v23 = vadd.f32 %v428_v21, %v424_v11  ;;  %v594_v8 = vadd.f32 %v592_v39, %v588_v52  ;;  %s4146_s15 = sld [smem:[#allocation9 + $0x33]] }
 0x13c   :  { %v595_v26 = vadd.f32 %v593_v9, %v589_v22  ;;  %v6194_v10 = vstv %s3159_s6  ;;  %v286_v20 = vsel %vm177_vm2, %v284_v54, %v285_v60  ;;  %v437_v31 = vadd.f32 %v435_v40, %v431_v49  ;;  %s6198_s6 = sld [smem:[#allocation69_spill]] }
 0x13d   :  { %v605_v30 = vmul.f32 %v6194_v10, %v6193_v5  ;;  %v753_v32 = vadd.f32 %v3559_v50, %v747_v28  ;;  %v436_v45 = vadd.f32 %v434_v46, %v430_v23  ;;  %v600_v51 = vadd.f32 %v598_v15, %v594_v8  ;;  %v6199_v50 = vld [vmem:[#allocation83_spill] sm:$0xff] }
 0x13e   :  { %v601_v18 = vadd.f32 %v599_v44, %v595_v26  ;;  %v752_v4 = vadd.f32 %v3515_v55, %v746_v27  ;;  %v6195_v48 = vstv %s3080_s3  ;;  %v761_v43 = vstv %s3633_s7  ;;  %s2280_s3 = sld [smem:[#allocation7 + $0x2]]  ;;  %s3778_s7 = sld [smem:[#allocation9 + $0x31]] }
 0x13f   :  { %v757_v57 = vmul.f32 %v6195_v48, %v3567_v53  ;;  %v443_v19 = vadd.f32 %v6196_v58, %v437_v31  ;;  %v6197_v2 = vstv %s3102_s9  ;;  %v451_v60 = vstv %s3640_s8  ;;  %6212 = sst [smem:[#allocation31_spill]] %s3736_s4  ;;  %s3748_s9 = sld [smem:[#allocation9 + $0x22]] }
 0x140   :  { %v447_v9 = vmul.f32 %v6197_v2, %v289_v1  ;;  %v442_v46 = vadd.f32 %v6199_v50, %v436_v45  ;;  %v6200_v40 = vmov %v6197_v2  ;;  %v6201_v55 = vmov %v6195_v48  ;;  %s3780_s8 = sld [smem:[#allocation9 + $0x13]] }
 0x141   :  { %v446_v54 = vmul.f32 %v6200_v40, %v286_v20  ;;  %v756_v62 = vmul.f32 %v6201_v55, %v3588_v12  ;;  %v607_v53 = vadd.f32 %v605_v30, %v601_v18  ;;  %v759_v21 = vadd.f32 %v757_v57, %v753_v32 }
 0x142   :  { %v449_v38 = vadd.f32 %v447_v9, %v443_v19  ;;  %v767_v6 = vstv %s3648_s27  ;;  %v606_v34 = vadd.f32 %v3510_v36, %v600_v51  ;;  %v763_v14 = vmul.f32 %v761_v43, %v3581_v3  ;;  %s3782_s27 = sld [smem:[#allocation9 + $0x4c]] }
 0x143   :  { %v448_v63 = vadd.f32 %v446_v54, %v442_v46  ;;  %v758_v33 = vadd.f32 %v756_v62, %v752_v4  ;;  %v6202_v24 = vstv %s6198_s6  ;;  %v615_v47 = vstv %s3659_s29  ;;  %s3784_s29 = sld [smem:[#allocation9 + $0x19]]  ;;  %s3786_s6 = sld [smem:[#allocation9 + $0x2e]] }
 0x144   :  { %v453_v37 = vadd.f32 %v451_v60, %v449_v38  ;;  %v611_v42 = vmul.f32 %v6202_v24, %v289_v1  ;;  %v762_v16 = vmul.f32 %v761_v43, %v3573_v35  ;;  %v6203_v41 = vmov %v6202_v24  ;;  %6225 = sst [smem:[#allocation39_spill]] %s3778_s7  ;;  %s3796_s7 = sld [smem:[#allocation9 + $0x36]] }
 0x145   :  { %v452_v39 = vadd.f32 %v451_v60, %v448_v63  ;;  %v610_v12 = vmul.f32 %v6203_v41, %v286_v20  ;;  %v769_v0 = vmul.f32 %v767_v6, %v6193_v5  ;;  %v765_v56 = vadd.f32 %v763_v14, %v759_v21  ;;  %6216 = sst [smem:[#allocation37_spill]] %s3748_s9 }
 0x146   :  { %v613_v11 = vadd.f32 %v611_v42, %v607_v53  ;;  %v3696_v52 = vmax.f32 %v453_v37, 0.0  ;;  %v768_v36 = vmul.f32 %v767_v6, %v6142_v59  ;;  %v764_v22 = vadd.f32 %v762_v16, %v758_v33 }
 0x147   :  { %v612_v3 = vadd.f32 %v610_v12, %v606_v34  ;;  %v3699_v27 = vmax.f32 %v452_v39, 0.0  ;;  %v773_v35 = vstv %s3678_s11  ;;  %v771_v15 = vadd.f32 %v769_v0, %v765_v56  ;;  %s3788_s11 = sld [smem:[#allocation9 + $0x34]] }
 0x148   :  { %6204 = vst [vmem:[#allocation55_spill] sm:$0xff] %v3696_v52  ;;  %790 = vrot.lane.b32.xlu1 %v3696_v52, %s6206_s17  ;;  %v617_v61 = vadd.f32 %v615_v47, %v613_v11  ;;  %v770_v44 = vadd.f32 %v768_v36, %v764_v22  ;;  %v775_v49 = vmul.f32 %v773_v35, %v289_v1  ;;  %v779_v8 = vstv %s2280_s3  ;;  %6226 = sst [smem:[#allocation40_spill]] %s3782_s27  ;;  %s3790_s3 = sld [smem:[#allocation9 + $0x49]] }
 0x149   :  { %6205 = vst [vmem:[#allocation56_spill] sm:$0xff] %v3699_v27  ;;  %788 = vrot.lane.b32.xlu0 %v3699_v27, %s6206_s17  ;;  %v616_v25 = vadd.f32 %v615_v47, %v612_v3  ;;  %v774_v59 = vmul.f32 %v773_v35, %v286_v20  ;;  %6227 = sst [smem:[#allocation42_spill]] %s3786_s6  ;;  %v937_v31 = vstv %s3740_s28  ;;  %s3801_s27 = sld [smem:[#allocation9 + $0x20]]  ;;  %v955_v32 = vstv %s3734_s2 }
 0x14a   :  { %v777_v28 = vadd.f32 %v775_v49, %v771_v15  ;;  %v3710_v23 = vmax.f32 %v617_v61, 0.0  ;;  %6230 = sst [smem:[#allocation46_spill]] %s3796_s7  ;;  %v1119_v45 = vstv %s3736_s4  ;;  %v1283_v51 = vstv %s3738_s26  ;;  %s3816_s28 = sld [smem:[#allocation9 + $0x2]] }
 0x14b   :  { %v776_v26 = vadd.f32 %v774_v59, %v770_v44  ;;  %v3712_v5 = vmax.f32 %v616_v25, 0.0  ;;  %s3803_s6 = sld [smem:[#allocation9 + $0x3b]]  ;;  %v1101_v18 = vstv %s3742_s5  ;;  %v1265_v4 = vstv %s3744_s16  ;;  %s6238_s5 = sld [smem:[#allocation41_spill]] }
 0x14c   :  { %796 = vrot.lane.b32.xlu1 %v3696_v52, %s6207_s12  ;;  %6208 = vst [vmem:[#allocation57_spill] sm:$0xff] %v3710_v23  ;;  %v781_v1 = vadd.f32 %v779_v8, %v777_v28  ;;  %v973_v48 = vstv %s3746_s1  ;;  %v1137_v57 = vstv %s3748_s9  ;;  %v1301_v43 = vstv %s3750_s18  ;;  %s6240_s9 = sld [smem:[#allocation39_spill]]  ;;  %s3828_s1 = sld [smem:[#allocation9 + $0x8]] }
 0x14d   :  { %794 = vrot.lane.b32.xlu0 %v3699_v27, %s6207_s12  ;;  %6209 = vst [vmem:[#allocation64_spill] sm:$0xff] %v3712_v5  ;;  %v780_v10 = vadd.f32 %v779_v8, %v776_v26  ;;  %v1009_v58 = vstv %s3752_s19  ;;  %v1173_v19 = vstv %s3754_s20  ;;  %v1337_v2 = vstv %s3758_s21  ;;  %s3830_s4 = sld [smem:[#allocation9 + $0x1d]]  ;;  %s3833_s19 = sld [smem:[#allocation9 + $0x23]] }
 0x14e   :  { %v3722_v30 = vmax.f32 %v781_v1, 0.0  ;;  %v806_v50 = vrot.slane %v3699_v27, 7  ;;  %v807_v46 = vrot.slane %v3696_v52, 7  ;;  %v991_v54 = vstv %s3764_s30  ;;  %s6244_s21 = sld [smem:[#allocation40_spill]]  ;;  %s3873_s7 = sld [smem:[#allocation9 + $0xc]] }
 0x14f   :  { %v3724_v20 = vmax.f32 %v780_v10, 0.0  ;;  %6232 = sst [smem:[#allocation45_spill]] %s3801_s27  ;;  %v1027_v55 = vstv %s3766_s24  ;;  %v1155_v62 = vstv %s3768_s25  ;;  %v1191_v38 = vstv %s3770_s14  ;;  %s3848_s24 = sld [smem:[#allocation9 + $0x38]] }
 0x150   :  { %838 = vrot.lane.b32.xlu1 %v3710_v23, %s6206_s17  ;;  %6210 = vst [vmem:[#allocation67_spill] sm:$0xff] %v3722_v30  ;;  %6236 = sst [smem:[#allocation52_spill]] %s3816_s28  ;;  %v1319_v53 = vstv %s3772_s13  ;;  %v1355_v21 = vstv %s3774_s0  ;;  %v1045_v6 = vstv %s3780_s8  ;;  %v809_v37 = vsel %vm158_vm0, %v807_v46, %v806_v50  ;;  %s3850_s25 = sld [smem:[#allocation9 + $0x3e]] }
 0x151   :  { %836 = vrot.lane.b32.xlu0 %v3712_v5, %s6206_s17  ;;  %6211 = vst [vmem:[#allocation59_spill] sm:$0xff] %v3724_v20  ;;  %6233 = sst [smem:[#allocation48_spill]] %s3803_s6  ;;  %s3818_s6 = sld [smem:[#allocation9 + $0x3c]]  ;;  %v1063_v63 = vstv %s6238_s5  ;;  %v824_v41 = vrot.slane %v3699_v27, 1  ;;  %v825_v12 = vrot.slane %v3696_v52, 1  ;;  %v808_v11 = vsel %vm158_vm0, %v806_v50, %v807_v46 }
 0x152   :  { %6241 = sst [smem:[#allocation51_spill]] %s3828_s1  ;;  %v1227_v14 = vstv %s6240_s9  ;;  %v810_v3 = vsel %vm140_vm1, %v809_v37, 0.0  ;;  %v3879_v59 = vmul.f32 %v937_v31, %v808_v11  ;;  %v3881_v28 = vmul.f32 %v1101_v18, %v808_v11  ;;  %s3950_s26 = sld [smem:[#allocation9 + $0x9]] }
 0x153   :  { %6242 = sst [smem:[#allocation54_spill]] %s3830_s4  ;;  %v827_v26 = vsel %vm177_vm2, %v825_v12, %v824_v41  ;;  %v3890_v1 = vmul.f32 %v937_v31, %v810_v3  ;;  %v3892_v10 = vmul.f32 %v1101_v18, %v810_v3  ;;  %v3896_v50 = vmul.f32 %v1265_v4, %v808_v11  ;;  %s3960_s16 = sld [smem:[#allocation9 + $0x24]] }
 0x154   :  { %844 = vrot.lane.b32.xlu1 %v3710_v23, %s6207_s12  ;;  %6243 = sst [smem:[#allocation69_spill]] %s3833_s19  ;;  %v1391_v47 = vstv %s6244_s21  ;;  %v826_v46 = vsel %vm177_vm2, %v824_v41, %v825_v12  ;;  %v854_v37 = vrot.slane %v3712_v5, 7  ;;  %v872_v8 = vrot.slane %v3712_v5, 1  ;;  %s3962_s1 = sld [smem:[#allocation9 + $0x3f]] }
 0x155   :  { %842 = vrot.lane.b32.xlu0 %v3712_v5, %s6207_s12  ;;  %6248 = sst [smem:[#allocation41_spill]] %s3848_s24  ;;  %v855_v31 = vrot.slane %v3710_v23, 7  ;;  %v873_v18 = vrot.slane %v3710_v23, 1  ;;  %v3906_v49 = vmul.f32 %v1265_v4, %v810_v3  ;;  %v829_v61 = vsel %vm143_vm3, %v827_v26, 0.0  ;;  %s3983_s24 = sld [smem:[#allocation9 + $0x44]] }
 0x156   :  { %6249 = sst [smem:[#allocation39_spill]] %s3850_s25  ;;  %v3915_v41 = vmul.f32 %v955_v32, %v3699_v27  ;;  %v3920_v12 = vmul.f32 %v955_v32, %v3696_v52  ;;  %v3925_v4 = vmul.f32 %v1119_v45, %v3699_v27  ;;  %v3930_v3 = vmul.f32 %v1119_v45, %v3696_v52  ;;  %s3978_s19 = sld [smem:[#allocation9 + $0xe]] }
 0x157   :  { %6237 = sst [smem:[#allocation49_spill]] %s3818_s6  ;;  %s3886_s6 = sld [smem:[#allocation9 + $0x42]]  ;;  %v3934_v26 = vmul.f32 %v973_v48, %v826_v46  ;;  %v3938_v25 = vmul.f32 %v1137_v57, %v826_v46  ;;  %v3943_v32 = vmul.f32 %v1283_v51, %v3699_v27  ;;  %v3948_v11 = vmul.f32 %v1283_v51, %v3696_v52 }
 0x158   :  { %886 = vrot.lane.b32.xlu1 %v3722_v30, %s6206_s17  ;;  %6251 = sst [smem:[#allocation40_spill]] %s3873_s7  ;;  %v3954_v45 = vmul.f32 %v973_v48, %v829_v61  ;;  %v3958_v44 = vmul.f32 %v1301_v43, %v826_v46  ;;  %v857_v35 = vsel %vm158_vm0, %v855_v31, %v854_v37  ;;  %v875_v51 = vsel %vm177_vm2, %v873_v18, %v872_v8  ;;  %s3990_s4 = sld [smem:[#allocation9 + $0xf]] }
 0x159   :  { %884 = vrot.lane.b32.xlu0 %v3724_v20, %s6206_s17  ;;  %s3794_s17 = sld [smem:[#allocation9 + $0x1b]]  ;;  %6259 = sst [smem:[#allocation33_spill]] %s3950_s26  ;;  %v3970_v15 = vmul.f32 %v1137_v57, %v829_v61  ;;  %v3974_v48 = vmul.f32 %v1301_v43, %v829_v61  ;;  %v3988_v56 = vmul.f32 %v1009_v58, %v3712_v5  ;;  %v3995_v57 = vmul.f32 %v1173_v19, %v3712_v5 }
 0x15a   :  { %6260 = sst [smem:[#allocation37_spill]] %s3960_s16  ;;  %v856_v43 = vsel %vm158_vm0, %v854_v37, %v855_v31  ;;  %v4004_v61 = vmul.f32 %v1337_v2, %v3712_v5  ;;  %v858_v36 = vsel %vm140_vm1, %v857_v35, 0.0  ;;  %v874_v46 = vsel %vm177_vm2, %v872_v8, %v873_v18  ;;  %s4014_s7 = sld [smem:[#allocation9 + $0xb]] }
 0x15b   :  { %6261 = sst [smem:[#allocation30_spill]] %s3962_s1  ;;  %6266 = vst [vmem:[#allocation58_spill] sm:$0xff] %v3988_v56  ;;  %6267 = vst [vmem:[#allocation62_spill] sm:$0xff] %v3995_v57  ;;  %s3999_s18 = sld [smem:[#allocation9 + $0x2a]]  ;;  %v877_v22 = vsel %vm143_vm3, %v875_v51, 0.0  ;;  %v4021_v37 = vmul.f32 %v1009_v58, %v3710_v23  ;;  %v4026_v35 = vmul.f32 %v1173_v19, %v3710_v23  ;;  %v902_v8 = vrot.slane %v3724_v20, 7 }
 0x15c   :  { %892 = vrot.lane.b32.xlu1 %v3722_v30, %s6207_s12  ;;  %6263 = sst [smem:[#allocation36_spill]] %s3978_s19  ;;  %6268 = vst [vmem:[#allocation63_spill] sm:$0xff] %v4004_v61  ;;  %v903_v31 = vrot.slane %v3722_v30, 7  ;;  %s4032_s27 = sld [smem:[#allocation9 + $0x2c]]  ;;  %v4036_v18 = vmul.f32 %v991_v54, %v856_v43  ;;  %v4041_v58 = vmul.f32 %v1337_v2, %v3710_v23  ;;  %v920_v19 = vrot.slane %v3724_v20, 1 }
 0x15d   :  { %890 = vrot.lane.b32.xlu0 %v3724_v20, %s6207_s12  ;;  %s3792_s12 = sld [smem:[#allocation9]]  ;;  %6254 = sst [smem:[#allocation31_spill]] %s3886_s6  ;;  %6272 = vst [vmem:[#allocation68_spill] sm:$0xff] %v4021_v37  ;;  %6273 = vst [vmem:[#allocation70_spill] sm:$0xff] %v4026_v35  ;;  %v921_v51 = vrot.slane %v3722_v30, 1  ;;  %v4051_v40 = vmul.f32 %v991_v54, %v858_v36  ;;  %v4055_v0 = vmul.f32 %v1027_v55, %v874_v46 }
 0x15e   :  { %6265 = sst [smem:[#allocation86_spill]] %s3983_s24  ;;  %6274 = vst [vmem:[#allocation25_spill] sm:$0xff] %v4036_v18  ;;  %6275 = vst [vmem:[#allocation61_spill] sm:$0xff] %v4041_v58  ;;  %s4045_s20 = sld [smem:[#allocation9 + $0x41]]  ;;  %v4059_v2 = vmul.f32 %v1027_v55, %v877_v22  ;;  %v4063_v60 = vmul.f32 %v1155_v62, %v858_v36  ;;  %v4067_v39 = vmul.f32 %v1155_v62, %v856_v43 }
 0x15f   :  { %6229 = sst [smem:[#allocation44_spill]] %s3794_s17  ;;  %s3810_s17 = sld [smem:[#allocation9 + $0x6]]  ;;  %6276 = vst [vmem:[#allocation73_spill] sm:$0xff] %v4051_v40  ;;  %6277 = vst [vmem:[#allocation26_spill] sm:$0xff] %v4055_v0  ;;  %v4071_v16 = vmul.f32 %v1191_v38, %v874_v46  ;;  %v4075_v54 = vmul.f32 %v1191_v38, %v877_v22  ;;  %v4079_v9 = vmul.f32 %v1319_v53, %v858_v36 }
 0x160   :  { %s4006_s6 = sld [smem:[#allocation9 + $0x45]]  ;;  %s4047_s2 = sld [smem:[#allocation9 + $0x47]]  ;;  %6278 = vst [vmem:[#allocation60_spill] sm:$0xff] %v4059_v2  ;;  %6279 = vst [vmem:[#allocation65_spill] sm:$0xff] %v4063_v60  ;;  %v4089_v62 = vmul.f32 %v1319_v53, %v856_v43  ;;  %v905_v38 = vsel %vm158_vm0, %v903_v31, %v902_v8  ;;  %v4100_v24 = vmul.f32 %v1355_v21, %v874_v46 }
 0x161   :  { %6280 = vst [vmem:[#allocation66_spill] sm:$0xff] %v4067_v39  ;;  %6281 = vst [vmem:[#allocation71_spill] sm:$0xff] %v4071_v16  ;;  %s4083_s30 = sld [smem:[#allocation9 + $0x30]]  ;;  %s4091_s28 = sld [smem:[#allocation9 + $0x4b]]  ;;  %v4104_v55 = vmul.f32 %v1355_v21, %v877_v22  ;;  %v923_v53 = vsel %vm177_vm2, %v921_v51, %v920_v19  ;;  %v4121_v21 = vmul.f32 %v1063_v63, %v3724_v20  ;;  %v906_v43 = vsel %vm140_vm1, %v905_v38, 0.0 }
 0x162   :  { %6282 = vst [vmem:[#allocation72_spill] sm:$0xff] %v4075_v54  ;;  %6283 = vst [vmem:[#allocation76_spill] sm:$0xff] %v4079_v9  ;;  %s4093_s25 = sld [smem:[#allocation9 + $0x12]]  ;;  %s4106_s14 = sld [smem:[#allocation9 + $0x2d]]  ;;  %v4126_v22 = vmul.f32 %v1227_v14, %v3724_v20  ;;  %v4135_v46 = vmul.f32 %v1391_v47, %v3724_v20  ;;  %v904_v42 = vsel %vm158_vm0, %v902_v8, %v903_v31  ;;  %v4152_v34 = vsel %vm143_vm3, %v923_v53, 0.0 }
 0x163   :  { %6228 = sst [smem:[#allocation43_spill]] %s3792_s12  ;;  %6284 = vst [vmem:[#allocation74_spill] sm:$0xff] %v4089_v62  ;;  %6285 = vst [vmem:[#allocation77_spill] sm:$0xff] %v4100_v24  ;;  %s4114_s16 = sld [smem:[#allocation9 + $0x17]]  ;;  %v4143_v36 = vsel %vm177_vm2, %v920_v19, %v921_v51  ;;  %v4157_v8 = vmul.f32 %v1063_v63, %v3722_v30  ;;  %v4162_v31 = vmul.f32 %v1227_v14, %v3722_v30  ;;  %v6300_v38 = vstv %s3784_s29 }
 0x164   :  { %6286 = vst [vmem:[#allocation78_spill] sm:$0xff] %v4104_v55  ;;  %s4108_s13 = sld [smem:[#allocation9 + $0x48]]  ;;  %s4116_s1 = sld [smem:[#allocation9 + $0x32]]  ;;  %6287 = vst [vmem:[#allocation79_spill] sm:$0xff] %v4121_v21  ;;  %v4174_v63 = vmul.f32 %v1391_v47, %v3722_v30  ;;  %v4182_v14 = vmul.f32 %v1045_v6, %v906_v43  ;;  %v4186_v53 = vmul.f32 %v1045_v6, %v904_v42  ;;  %v6305_v33 = vmov %v6300_v38 }
 0x165   :  { %6234 = sst [smem:[#allocation50_spill]] %s3810_s17  ;;  %s4016_s17 = sld [smem:[#allocation9 + $0x11]]  ;;  %6288 = vst [vmem:[#allocation81_spill] sm:$0xff] %v4126_v22  ;;  %6290 = vst [vmem:[#allocation82_spill] sm:$0xff] %v4135_v46  ;;  %v4191_v51 = vmul.f32 %v6300_v38, %v4143_v36  ;;  %v4204_v30 = vmul.f32 %v6305_v33, %v4152_v34  ;;  %v6309_v38 = vstv %s3788_s11 }
 0x166   :  { %6269 = sst [smem:[#allocation87_spill]] %s4006_s6  ;;  %s4128_s0 = sld [smem:[#allocation9 + $0x4d]]  ;;  %6291 = vst [vmem:[#allocation80_spill] sm:$0xff] %v4143_v36  ;;  %6293 = vst [vmem:[#allocation85_spill] sm:$0xff] %v4152_v34  ;;  %v4213_v23 = vmul.f32 %v6309_v38, %v4143_v36 }
 0x167   :  { %s4130_s19 = sld [smem:[#allocation9 + $0x18]]  ;;  %s6292_s26 = sld [smem:[#allocation42_spill]]  ;;  %6294 = vst [vmem:[#allocation75_spill] sm:$0xff] %v4157_v8  ;;  %6295 = vst [vmem:[#allocation84_spill] sm:$0xff] %v4162_v31 }
 0x168   :  { %s4167_s24 = sld [smem:[#allocation9 + $0x14]]  ;;  %s4169_s12 = sld [smem:[#allocation9 + $0x1a]]  ;;  %6296 = vst [vmem:[#allocation83_spill] sm:$0xff] %v4174_v63  ;;  %6298 = vst [vmem:[#allocation88_spill] sm:$0xff] %v4182_v14 }
 0x169   :  { %s4176_s9 = sld [smem:[#allocation9 + $0x2f]]  ;;  %s4178_s5 = sld [smem:[#allocation9 + $0x35]]  ;;  %6299 = vst [vmem:[#allocation89_spill] sm:$0xff] %v4186_v53  ;;  %6301 = vst [vmem:[#allocation90_spill] sm:$0xff] %v4191_v51  ;;  %v6313_v51 = vstv %s3790_s3 }
 0x16a   :  { %s4197_s21 = sld [smem:[#allocation10]]  ;;  %s4199_s6 = sld [smem:[#allocation9 + $0x4a]]  ;;  %6306 = vst [vmem:[#allocation92_spill] sm:$0xff] %v4204_v30  ;;  %6310 = vst [vmem:[#allocation94_spill] sm:$0xff] %v4213_v23  ;;  %v4224_v33 = vmul.f32 %v6313_v51, %v906_v43  ;;  %v6315_v30 = vmov %v6313_v51 }
 0x16b   :  { %v4228_v63 = vmul.f32 %v6315_v30, %v904_v42  ;;  %s6317_s8 = sld [smem:[#allocation32_spill]]  ;;  %s6318_s29 = sld [smem:[#allocation43_spill]] }
 0x16c   :  { %6314 = vst [vmem:[#allocation96_spill] sm:$0xff] %v4224_v33  ;;  %s6319_s11 = sld [smem:[#allocation44_spill]]  ;;  %s6320_s3 = sld [smem:[#allocation38_spill]] }
 0x16d   :  { %6289 = sst [smem:[#allocation28_spill]] %s4130_s19  ;;  %v6302_v47 = vstv %s6292_s26  ;;  %6316 = vst [vmem:[#allocation97_spill] sm:$0xff] %v4228_v63  ;;  %s6321_s26 = sld [smem:[#allocation46_spill]] }
 0x16e   :  { %v4195_v19 = vmul.f32 %v6302_v47, %v906_v43  ;;  %v6307_v6 = vmov %v6302_v47  ;;  %v6311_v47 = vmov %v6309_v38  ;;  %s6322_s19 = sld [smem:[#allocation27_spill]] }
 0x16f   :  { %6297 = sst [smem:[#allocation29_spill]] %s4178_s5  ;;  %v4208_v20 = vmul.f32 %v6307_v6, %v904_v42  ;;  %v4218_v5 = vmul.f32 %v6311_v47, %v4152_v34 }
 0x170   :  { %6303 = vst [vmem:[#allocation91_spill] sm:$0xff] %v4195_v19  ;;  %6304 = sst [smem:[#allocation42_spill]] %s4197_s21  ;;  %s6333_s21 = sld [smem:[#allocation47_spill]] }
 0x171   :  { %6308 = vst [vmem:[#allocation93_spill] sm:$0xff] %v4208_v20  ;;  %6312 = vst [vmem:[#allocation95_spill] sm:$0xff] %v4218_v5  ;;  %v6324_v22 = vstv %s6318_s29  ;;  %v6331_v24 = vstv %s6317_s8  ;;  %s6335_s5 = sld [smem:[#allocation45_spill]]  ;;  %s6336_s29 = sld [smem:[#allocation48_spill]] }
 0x172   :  { %v6326_v8 = vstv %s6320_s3  ;;  %v6327_v33 = vmov %v6324_v22  ;;  %s6344_s3 = sld [smem:[#allocation41_spill]] }
 0x173   :  { %v6332_v54 = vmov %v6326_v8 }
 0x174   :  { %v6330_v14 = vstv %s6322_s19  ;;  %s6340_s19 = sld [smem:[#allocation54_spill]] }
 0x178   :  { %v6354_v57 = vstv %s6344_s3  ;;  %s6371_s3 = sld [smem:[#allocation31_spill]] }
 0x17a   :  { %v6351_v2 = vstv %s6340_s19  ;;  %s6370_s19 = sld [smem:[#allocation34_spill]] }
 0x17b   :  { %v6352_v61 = vmov %v6351_v2 }
 0x1ba   :  { %v791_v47 = vpop.permute.xlu1 %790 }
 0x1bb   :  { %v793_v43 = vsel %vm3133_vm5, %v791_v47, 0.0  ;;  %v789_v30 = vpop.permute.xlu0 %788 }
 0x1bc   :  { %v801_v23 = vrot.slane %v793_v43, 7  ;;  %v819_v52 = vrot.slane %v793_v43, 1  ;;  %v792_v5 = vsel %vm3133_vm5, %v789_v30, 0.0  ;;  %v6323_v30 = vstv %s6317_s8  ;;  %s6338_s8 = sld [smem:[#allocation52_spill]] }
 0x1bd   :  { %v800_v46 = vrot.slane %v792_v5, 7  ;;  %v818_v42 = vrot.slane %v792_v5, 1  ;;  %v951_v6 = vmul.f32 %v6323_v30, %v793_v43  ;;  %v6325_v30 = vstv %s6319_s11  ;;  %s6339_s11 = sld [smem:[#allocation50_spill]] }
 0x1be   :  { %v797_v51 = vpop.permute.xlu1 %796  ;;  %v1115_v63 = vmul.f32 %v6326_v8, %v793_v43  ;;  %v6328_v19 = vmov %v6325_v30  ;;  %v1279_v55 = vmul.f32 %v6330_v14, %v793_v43  ;;  %v1114_v16 = vmul.f32 %v6332_v54, %v792_v5 }
 0x1bf   :  { %v802_v47 = vsel %vm158_vm0, %v800_v46, %v801_v23  ;;  %v803_v21 = vsel %vm158_vm0, %v801_v23, %v800_v46  ;;  %v799_v31 = vsel %vm3106_vm4, %v797_v51, 0.0  ;;  %v821_v27 = vsel %vm177_vm2, %v819_v52, %v818_v42  ;;  %v795_v51 = vpop.permute.xlu0 %794 }
 0x1c0   :  { %v804_v36 = vsel %vm140_vm1, %v803_v21, 0.0  ;;  %v935_v34 = vmul.f32 %v6324_v22, %v802_v47  ;;  %v1099_v38 = vmul.f32 %v6325_v30, %v802_v47  ;;  %v6329_v46 = vstv %s6321_s26  ;;  %s6348_s26 = sld [smem:[#allocation53_spill]] }
 0x1c1   :  { %v934_v20 = vmul.f32 %v6327_v33, %v804_v36  ;;  %v1098_v23 = vmul.f32 %v6328_v19, %v804_v36  ;;  %v1262_v53 = vmul.f32 %v6329_v46, %v804_v36  ;;  %v950_v21 = vmul.f32 %v6331_v24, %v792_v5 }
 0x1c2   :  { %v6334_v0 = vmov %v6329_v46  ;;  %v820_v8 = vsel %vm177_vm2, %v818_v42, %v819_v52  ;;  %v823_v19 = vsel %vm143_vm3, %v821_v27, 0.0  ;;  %v6337_v33 = vmov %v6330_v14 }
 0x1c3   :  { %v1263_v22 = vmul.f32 %v6334_v0, %v802_v47  ;;  %v1278_v36 = vmul.f32 %v6337_v33, %v792_v5  ;;  %v813_v30 = vrot.slane %v799_v31, 7  ;;  %v941_v14 = vadd.f32 %v3879_v59, %v935_v34 }
 0x1c4   :  { %v1105_v24 = vadd.f32 %v3881_v28, %v1099_v38  ;;  %v831_v54 = vrot.slane %v799_v31, 1  ;;  %v798_v0 = vsel %vm3106_vm4, %v795_v51, 0.0  ;;  %v940_v52 = vadd.f32 %v3890_v1, %v934_v20 }
 0x1c5   :  { %v1104_v27 = vadd.f32 %v3892_v10, %v1098_v23  ;;  %v1268_v5 = vadd.f32 %v3906_v49, %v1262_v53  ;;  %v812_v43 = vrot.slane %v798_v0, 7  ;;  %v1269_v34 = vadd.f32 %v3896_v50, %v1263_v22 }
 0x1c6   :  { %v6341_v59 = vstv %s6333_s21  ;;  %v6342_v38 = vstv %s6335_s5  ;;  %v830_v47 = vrot.slane %v798_v0, 1  ;;  %v6343_v46 = vstv %s6336_s29  ;;  %s6355_s21 = sld [smem:[#allocation51_spill]] }
 0x1c7   :  { %v963_v28 = vmul.f32 %v6341_v59, %v799_v31  ;;  %v1127_v42 = vmul.f32 %v6342_v38, %v799_v31  ;;  %v1291_v51 = vmul.f32 %v6343_v46, %v799_v31  ;;  %v814_v20 = vsel %vm158_vm0, %v812_v43, %v813_v30 }
 0x1c8   :  { %v815_v1 = vsel %vm158_vm0, %v813_v30, %v812_v43  ;;  %v6345_v49 = vmov %v6341_v59  ;;  %v6346_v53 = vstv %s6338_s8  ;;  %v6347_v22 = vstv %s6339_s11  ;;  %s6363_s8 = sld [smem:[#allocation69_spill]]  ;;  %s6367_s11 = sld [smem:[#allocation40_spill]] }
 0x1c9   :  { %v962_v10 = vmul.f32 %v6345_v49, %v798_v0  ;;  %v816_v50 = vsel %vm140_vm1, %v815_v1, 0.0  ;;  %v945_v23 = vmul.f32 %v6346_v53, %v814_v20  ;;  %v968_v33 = vmul.f32 %v6347_v22, %v820_v8 }
 0x1ca   :  { %v6349_v59 = vmov %v6347_v22  ;;  %v6350_v38 = vmov %v6346_v53  ;;  %v1108_v58 = vmul.f32 %v6351_v2, %v816_v50  ;;  %v1109_v30 = vmul.f32 %v6352_v61, %v814_v20 }
 0x1cb   :  { %v969_v31 = vmul.f32 %v6349_v59, %v823_v19  ;;  %v944_v46 = vmul.f32 %v6350_v38, %v816_v50  ;;  %v6353_v43 = vstv %s6335_s5  ;;  %v832_v35 = vsel %vm177_vm2, %v830_v47, %v831_v54  ;;  %s6359_s5 = sld [smem:[#allocation49_spill]] }
 0x1cc   :  { %v1126_v49 = vmul.f32 %v6353_v43, %v798_v0  ;;  %v833_v1 = vsel %vm177_vm2, %v831_v54, %v830_v47  ;;  %v947_v53 = vadd.f32 %v945_v23, %v941_v14  ;;  %v1272_v22 = vmul.f32 %v6354_v57, %v816_v50 }
 0x1cd   :  { %v946_v56 = vadd.f32 %v944_v46, %v940_v52  ;;  %v1110_v59 = vadd.f32 %v1108_v58, %v1104_v27  ;;  %v1111_v37 = vadd.f32 %v1109_v30, %v1105_v24  ;;  %v6356_v38 = vmov %v6354_v57 }
 0x1ce   :  { %v1273_v62 = vmul.f32 %v6356_v38, %v814_v20  ;;  %v953_v2 = vadd.f32 %v951_v6, %v947_v53  ;;  %v6357_v9 = vstv %s6348_s26  ;;  %v1274_v60 = vadd.f32 %v1272_v22, %v1268_v5  ;;  %s6375_s26 = sld [smem:[#allocation33_spill]] }
 0x1cf   :  { %v1132_v61 = vmul.f32 %v6357_v9, %v820_v8  ;;  %v6358_v39 = vmov %v6357_v9  ;;  %v952_v40 = vadd.f32 %v950_v21, %v946_v56  ;;  %v1116_v18 = vadd.f32 %v1114_v16, %v1110_v59  ;;  %v839_v21 = vpop.permute.xlu1 %838 }
 0x1d0   :  { %v1133_v43 = vmul.f32 %v6358_v39, %v823_v19  ;;  %v1117_v54 = vadd.f32 %v1115_v63, %v1111_v37  ;;  %v1275_v14 = vadd.f32 %v1273_v62, %v1269_v34  ;;  %v835_v57 = vsel %vm143_vm3, %v833_v1, 0.0 }
 0x1d1   :  { %v959_v58 = vadd.f32 %v3920_v12, %v953_v2  ;;  %v6360_v24 = vstv %s6355_s21  ;;  %v1280_v27 = vadd.f32 %v1278_v36, %v1274_v60  ;;  %v958_v9 = vadd.f32 %v3915_v41, %v952_v40  ;;  %s6377_s21 = sld [smem:[#allocation37_spill]] }
 0x1d2   :  { %v980_v52 = vmul.f32 %v6360_v24, %v832_v35  ;;  %v1122_v39 = vadd.f32 %v3925_v4, %v1116_v18  ;;  %v1123_v6 = vadd.f32 %v3930_v3, %v1117_v54  ;;  %v1281_v56 = vadd.f32 %v1279_v55, %v1275_v14 }
 0x1d3   :  { %v965_v16 = vadd.f32 %v963_v28, %v959_v58  ;;  %v1286_v37 = vadd.f32 %v3943_v32, %v1280_v27  ;;  %v6361_v62 = vstv %s6336_s29  ;;  %v6362_v5 = vstv %s6359_s5  ;;  %s6365_s29 = sld [smem:[#allocation39_spill]]  ;;  %v845_v14 = vpop.permute.xlu1 %844  ;;  %s6381_s5 = sld [smem:[#allocation30_spill]] }
 0x1d4   :  { %v1290_v63 = vmul.f32 %v6361_v62, %v798_v0  ;;  %v1296_v12 = vmul.f32 %v6362_v5, %v820_v8  ;;  %v964_v60 = vadd.f32 %v962_v10, %v958_v9  ;;  %v1128_v36 = vadd.f32 %v1126_v49, %v1122_v39  ;;  %v837_v8 = vpop.permute.xlu0 %836 }
 0x1d5   :  { %v1129_v34 = vadd.f32 %v1127_v42, %v1123_v6  ;;  %v1287_v40 = vadd.f32 %v3948_v11, %v1281_v56  ;;  %v971_v41 = vadd.f32 %v969_v31, %v965_v16  ;;  %v6364_v3 = vmov %v6362_v5 }
 0x1d6   :  { %v1292_v4 = vadd.f32 %v1290_v63, %v1286_v37  ;;  %v1297_v18 = vmul.f32 %v6364_v3, %v823_v19  ;;  %v841_v55 = vsel %vm3133_vm5, %v839_v21, 0.0  ;;  %v970_v32 = vadd.f32 %v968_v33, %v964_v60 }
 0x1d7   :  { %v1134_v28 = vadd.f32 %v1132_v61, %v1128_v36  ;;  %v1135_v0 = vadd.f32 %v1133_v43, %v1129_v34  ;;  %v1293_v47 = vadd.f32 %v1291_v51, %v1287_v40  ;;  %v6366_v20 = vmov %v6360_v24 }
 0x1d8   :  { %v981_v10 = vmul.f32 %v6366_v20, %v835_v57  ;;  %v6368_v42 = vstv %s6363_s8  ;;  %v1298_v31 = vadd.f32 %v1296_v12, %v1292_v4  ;;  %v976_v19 = vadd.f32 %v3934_v26, %v970_v32  ;;  %v843_v40 = vpop.permute.xlu0 %842  ;;  %s6386_s8 = sld [smem:[#allocation36_spill]] }
 0x1d9   :  { %v1144_v50 = vmul.f32 %v6368_v42, %v832_v35  ;;  %v6369_v11 = vmov %v6368_v42  ;;  %v977_v46 = vadd.f32 %v3954_v45, %v971_v41  ;;  %v1140_v33 = vadd.f32 %v3938_v25, %v1134_v28 }
 0x1da   :  { %v1145_v23 = vmul.f32 %v6369_v11, %v835_v57  ;;  %v1299_v30 = vadd.f32 %v1297_v18, %v1293_v47  ;;  %v1141_v49 = vadd.f32 %v3970_v15, %v1135_v0  ;;  %v1304_v51 = vadd.f32 %v3958_v44, %v1298_v31 }
 0x1db   :  { %v849_v1 = vrot.slane %v841_v55, 7  ;;  %v840_v53 = vsel %vm3133_vm5, %v837_v8, 0.0  ;;  %v6372_v22 = vstv %s6365_s29  ;;  %v867_v61 = vrot.slane %v841_v55, 1  ;;  %s6389_s29 = sld [smem:[#allocation35_spill]] }
 0x1dc   :  { %v1308_v59 = vmul.f32 %v6372_v22, %v832_v35  ;;  %v6373_v38 = vmov %v6372_v22  ;;  %v6374_v26 = vstv %s6367_s11  ;;  %v1305_v25 = vadd.f32 %v3974_v48, %v1299_v30  ;;  %s6391_s11 = sld [smem:[#allocation86_spill]]  ;;  %v6393_v22 = vld [vmem:[#allocation25_spill] sm:$0xff] }
 0x1dd   :  { %v1309_v2 = vmul.f32 %v6373_v38, %v835_v57  ;;  %v4379_v45 = vmul.f32 %v6374_v26, %v841_v55  ;;  %v6376_v15 = vstv %s6370_s19  ;;  %v848_v44 = vrot.slane %v840_v53, 7  ;;  %s4798_s19 = sld [smem:[#allocation12 + $0x22]] }
 0x1de   :  { %v4384_v43 = vmul.f32 %v6376_v15, %v841_v55  ;;  %v866_v54 = vrot.slane %v840_v53, 1  ;;  %v982_v58 = vadd.f32 %v980_v52, %v976_v19  ;;  %v983_v35 = vadd.f32 %v981_v10, %v977_v46 }
 0x1df   :  { %v1146_v24 = vadd.f32 %v1144_v50, %v1140_v33  ;;  %v6378_v57 = vstv %s6371_s3  ;;  %v1147_v9 = vadd.f32 %v1145_v23, %v1141_v49  ;;  %v1310_v39 = vadd.f32 %v1308_v59, %v1304_v51  ;;  %s4800_s3 = sld [smem:[#allocation12 + $0x3d]] }
 0x1e0   :  { %v4388_v27 = vmul.f32 %v6378_v57, %v841_v55  ;;  %v850_v48 = vsel %vm158_vm0, %v848_v44, %v849_v1  ;;  %v851_v6 = vsel %vm158_vm0, %v849_v1, %v848_v44  ;;  %v6379_v52 = vstv %s6375_s26  ;;  %s4802_s26 = sld [smem:[#allocation12 + $0xa]] }
 0x1e1   :  { %v852_v56 = vsel %vm140_vm1, %v851_v6, 0.0  ;;  %v987_v21 = vmul.f32 %v6379_v52, %v850_v48  ;;  %v6380_v16 = vmov %v6374_v26  ;;  %v847_v62 = vsel %vm3106_vm4, %v845_v14, 0.0  ;;  %v6400_v6 = vld [vmem:[#allocation66_spill] sm:$0xff] }
 0x1e2   :  { %v1004_v37 = vmul.f32 %v6380_v16, %v840_v53  ;;  %v1311_v63 = vadd.f32 %v1309_v2, %v1305_v25  ;;  %v869_v5 = vsel %vm177_vm2, %v867_v61, %v866_v54  ;;  %v6382_v12 = vmov %v6379_v52  ;;  %v6395_v25 = vld [vmem:[#allocation65_spill] sm:$0xff] }
 0x1e3   :  { %v986_v60 = vmul.f32 %v6382_v12, %v852_v56  ;;  %v6383_v36 = vstv %s6377_s21  ;;  %v4410_v41 = vsel %vm177_vm2, %v866_v54, %v867_v61  ;;  %v989_v4 = vadd.f32 %v987_v21, %v983_v35  ;;  %v6394_v61 = vld [vmem:[#allocation73_spill] sm:$0xff]  ;;  %s4804_s21 = sld [smem:[#allocation12 + $0x10]] }
 0x1e4   :  { %v1150_v34 = vmul.f32 %v6383_v36, %v852_v56  ;;  %v6384_v3 = vmov %v6376_v15  ;;  %v6385_v55 = vmov %v6378_v57  ;;  %v6387_v0 = vmov %v6383_v36 }
 0x1e5   :  { %v1168_v18 = vmul.f32 %v6384_v3, %v840_v53  ;;  %v1332_v32 = vmul.f32 %v6385_v55, %v840_v53  ;;  %v988_v28 = vadd.f32 %v986_v60, %v982_v58  ;;  %v1151_v47 = vmul.f32 %v6387_v0, %v850_v48 }
 0x1e6   :  { %v1152_v8 = vadd.f32 %v1150_v34, %v1146_v24  ;;  %v861_v20 = vrot.slane %v847_v62, 7  ;;  %v4420_v10 = vsel %vm143_vm3, %v869_v5, 0.0  ;;  %v6388_v42 = vstv %s6381_s5  ;;  %s4806_s5 = sld [smem:[#allocation12 + $0x25]] }
 0x1e7   :  { %v1314_v50 = vmul.f32 %v6388_v42, %v852_v56  ;;  %v6390_v11 = vmov %v6388_v42  ;;  %v846_v31 = vsel %vm3106_vm4, %v843_v40, 0.0  ;;  %v1153_v19 = vadd.f32 %v1151_v47, %v1147_v9 }
 0x1e8   :  { %v1315_v23 = vmul.f32 %v6390_v11, %v850_v48  ;;  %v879_v46 = vrot.slane %v847_v62, 1  ;;  %v860_v33 = vrot.slane %v846_v31, 7  ;;  %v878_v30 = vrot.slane %v846_v31, 1  ;;  %v6407_v11 = vld [vmem:[#allocation74_spill] sm:$0xff] }
 0x1e9   :  { %v1316_v49 = vadd.f32 %v1314_v50, %v1310_v39  ;;  %v6392_v1 = vstv %s6386_s8  ;;  %v995_v59 = vadd.f32 %v6393_v22, %v989_v4  ;;  %v994_v26 = vadd.f32 %v6394_v61, %v988_v28  ;;  %s4808_s8 = sld [smem:[#allocation12 + $0x2b]] }
 0x1ea   :  { %v1317_v51 = vadd.f32 %v1315_v23, %v1311_v63  ;;  %v1017_v53 = vmul.f32 %v6392_v1, %v847_v62  ;;  %v862_v38 = vsel %vm158_vm0, %v860_v33, %v861_v20  ;;  %v863_v2 = vsel %vm158_vm0, %v861_v20, %v860_v33  ;;  %v6409_v33 = vld [vmem:[#allocation68_spill] sm:$0xff] }
 0x1eb   :  { %v1158_v15 = vadd.f32 %v6395_v25, %v1152_v8  ;;  %v6396_v44 = vstv %s6389_s29  ;;  %v6397_v14 = vstv %s6391_s11  ;;  %v864_v35 = vsel %vm140_vm1, %v863_v2, 0.0  ;;  %v6406_v8 = vld [vmem:[#allocation76_spill] sm:$0xff]  ;;  %v6413_v25 = vld [vmem:[#allocation62_spill] sm:$0xff]  ;;  %s4810_s29 = sld [smem:[#allocation12 + $0x40]] }
 0x1ec   :  { %v1181_v54 = vmul.f32 %v6396_v44, %v847_v62  ;;  %v1345_v58 = vmul.f32 %v6397_v14, %v847_v62  ;;  %v6398_v24 = vstv %s4014_s7  ;;  %v881_v9 = vsel %vm177_vm2, %v879_v46, %v878_v30  ;;  %s4631_s7 = sld [smem:[#allocation10 + $0x1]] }
 0x1ed   :  { %v999_v57 = vmul.f32 %v6398_v24, %v862_v38  ;;  %v6399_v39 = vmov %v6398_v24  ;;  %v1159_v56 = vadd.f32 %v6400_v6, %v1153_v19  ;;  %v6401_v52 = vstv %s4030_s23  ;;  %v887_v6 = vpop.permute.xlu1 %886  ;;  %s6418_s23 = sld [smem:[#allocation87_spill]] }
 0x1ee   :  { %v998_v48 = vmul.f32 %v6399_v39, %v864_v35  ;;  %v1162_v21 = vmul.f32 %v6401_v52, %v864_v35  ;;  %v6402_v63 = vmov %v6392_v1  ;;  %v6403_v62 = vstv %s3990_s4  ;;  %s4774_s4 = sld [smem:[#allocation12 + $0x1e]] }
 0x1ef   :  { %v1001_v16 = vadd.f32 %v999_v57, %v995_v59  ;;  %v1016_v5 = vmul.f32 %v6402_v63, %v846_v31  ;;  %v1022_v12 = vmul.f32 %v6403_v62, %v4410_v41  ;;  %v6404_v60 = vmov %v6401_v52 }
 0x1f0   :  { %v1163_v36 = vmul.f32 %v6404_v60, %v862_v38  ;;  %v880_v34 = vsel %vm177_vm2, %v878_v30, %v879_v46  ;;  %v1000_v40 = vadd.f32 %v998_v48, %v994_v26  ;;  %v6405_v4 = vmov %v6403_v62  ;;  %v6420_v60 = vld [vmem:[#allocation63_spill] sm:$0xff] }
 0x1f1   :  { %v1023_v3 = vmul.f32 %v6405_v4, %v4420_v10  ;;  %v1164_v55 = vadd.f32 %v1162_v21, %v1158_v15  ;;  %v883_v28 = vsel %vm143_vm3, %v881_v9, 0.0  ;;  %v1007_v0 = vadd.f32 %v4379_v45, %v1001_v16  ;;  %v6412_v45 = vld [vmem:[#allocation58_spill] sm:$0xff] }
 0x1f2   :  { %v1165_v47 = vadd.f32 %v1163_v36, %v1159_v56  ;;  %v1322_v20 = vadd.f32 %v6406_v8, %v1316_v49  ;;  %v1006_v42 = vadd.f32 %v1004_v37, %v1000_v40  ;;  %v1323_v23 = vadd.f32 %v6407_v11, %v1317_v51  ;;  %v6427_v11 = vld [vmem:[#allocation26_spill] sm:$0xff] }
 0x1f3   :  { %v1170_v50 = vadd.f32 %v1168_v18, %v1164_v55  ;;  %v6408_v19 = vstv %s4045_s20  ;;  %v1013_v30 = vadd.f32 %v6409_v33, %v1007_v0  ;;  %v6410_v1 = vstv %s4016_s17  ;;  %v6423_v0 = vld [vmem:[#allocation61_spill] sm:$0xff]  ;;  %s6448_s17 = sld [smem:[#allocation28_spill]]  ;;  %s4778_s20 = sld [smem:[#allocation12 + $0x4]] }
 0x1f4   :  { %v1326_v46 = vmul.f32 %v6408_v19, %v864_v35  ;;  %v1034_v22 = vmul.f32 %v6410_v1, %v880_v34  ;;  %v1171_v59 = vadd.f32 %v4384_v43, %v1165_v47  ;;  %v6411_v2 = vmov %v6408_v19  ;;  %v6416_v35 = vld [vmem:[#allocation70_spill] sm:$0xff]  ;;  %v6428_v19 = vld [vmem:[#allocation71_spill] sm:$0xff]  ;;  %6501 = sst [smem:[#allocation43_spill]] %s4774_s4  ;;  %s4847_s4 = sld [smem:[#allocation12 + $0x6]] }
 0x1f5   :  { %v1327_v61 = vmul.f32 %v6411_v2, %v862_v38  ;;  %v1012_v26 = vadd.f32 %v6412_v45, %v1006_v42  ;;  %v1176_v49 = vadd.f32 %v6413_v25, %v1170_v50  ;;  %v6414_v37 = vmov %v6396_v44 }
 0x1f6   :  { %v1180_v18 = vmul.f32 %v6414_v37, %v846_v31  ;;  %v1328_v15 = vadd.f32 %v1326_v46, %v1322_v20  ;;  %v1019_v51 = vadd.f32 %v1017_v53, %v1013_v30  ;;  %v6415_v44 = vmov %v6410_v1 }
 0x1f7   :  { %v1035_v14 = vmul.f32 %v6415_v44, %v883_v28  ;;  %v1177_v24 = vadd.f32 %v6416_v35, %v1171_v59  ;;  %v1329_v57 = vadd.f32 %v1327_v61, %v1323_v23  ;;  %v1018_v9 = vadd.f32 %v1016_v5, %v1012_v26  ;;  %v6430_v59 = vld [vmem:[#allocation72_spill] sm:$0xff] }
 0x1f8   :  { %v1182_v43 = vadd.f32 %v1180_v18, %v1176_v49  ;;  %v6417_v38 = vstv %s3999_s18  ;;  %v1334_v48 = vadd.f32 %v1332_v32, %v1328_v15  ;;  %v1025_v56 = vadd.f32 %v1023_v3, %v1019_v51  ;;  %v6424_v3 = vld [vmem:[#allocation60_spill] sm:$0xff]  ;;  %s4776_s18 = sld [smem:[#allocation12 + $0x39]] }
 0x1f9   :  { %v1186_v39 = vmul.f32 %v6417_v38, %v4410_v41  ;;  %v1183_v52 = vadd.f32 %v1181_v54, %v1177_v24  ;;  %v6419_v53 = vmov %v6417_v38  ;;  %v1335_v16 = vadd.f32 %v4388_v27, %v1329_v57  ;;  %v6433_v51 = vld [vmem:[#allocation77_spill] sm:$0xff]  ;;  %v893_v38 = vpop.permute.xlu1 %892 }
 0x1fa   :  { %v1187_v21 = vmul.f32 %v6419_v53, %v4420_v10  ;;  %v1024_v63 = vadd.f32 %v1022_v12, %v1018_v9  ;;  %v1340_v5 = vadd.f32 %v6420_v60, %v1334_v48  ;;  %v6421_v36 = vstv %s6391_s11  ;;  %v6435_v9 = vld [vmem:[#allocation78_spill] sm:$0xff]  ;;  %s4812_s11 = sld [smem:[#allocation12 + $0x46]] }
 0x1fb   :  { %v1188_v62 = vadd.f32 %v1186_v39, %v1182_v43  ;;  %v1344_v40 = vmul.f32 %v6421_v36, %v846_v31  ;;  %v6422_v55 = vstv %s4032_s27  ;;  %v1341_v47 = vadd.f32 %v6423_v0, %v1335_v16  ;;  %v885_v31 = vpop.permute.xlu0 %884  ;;  %s4634_s27 = sld [smem:[#allocation9 + $0x50]]  ;;  %6515 = sst [smem:[#allocation49_spill]] %s4847_s4 }
 0x1fc   :  { %v1189_v4 = vadd.f32 %v1187_v21, %v1183_v52  ;;  %v1198_v32 = vmul.f32 %v6422_v55, %v880_v34  ;;  %v889_v54 = vsel %vm3133_vm5, %v887_v6, 0.0  ;;  %v1031_v8 = vadd.f32 %v6424_v3, %v1025_v56  ;;  %s5005_s4 = sld [smem:[#allocation12 + $0xf]] }
 0x1fd   :  { %v6425_v27 = vmov %v6422_v55  ;;  %v1346_v20 = vadd.f32 %v1344_v40, %v1340_v5  ;;  %v6426_v42 = vstv %s6418_s23  ;;  %v1030_v23 = vadd.f32 %v6427_v11, %v1024_v63  ;;  %s4814_s23 = sld [smem:[#allocation12 + $0x16]] }
 0x1fe   :  { %v1199_v12 = vmul.f32 %v6425_v27, %v883_v28  ;;  %v1350_v50 = vmul.f32 %v6426_v42, %v4410_v41  ;;  %v1194_v46 = vadd.f32 %v6428_v19, %v1188_v62  ;;  %v1347_v33 = vadd.f32 %v1345_v58, %v1341_v47  ;;  %6502 = sst [smem:[#allocation44_spill]] %s4776_s18  ;;  %s4862_s18 = sld [smem:[#allocation12 + $0x23]] }
 0x1ff   :  { %v6429_v30 = vmov %v6426_v42  ;;  %v1195_v2 = vadd.f32 %v6430_v59, %v1189_v4  ;;  %v6431_v45 = vstv %s4047_s2  ;;  %v897_v25 = vrot.slane %v889_v54, 7  ;;  %v891_v27 = vpop.permute.xlu0 %890  ;;  %s4780_s2 = sld [smem:[#allocation12 + $0x1f]] }
 0x200   :  { %v1351_v1 = vmul.f32 %v6429_v30, %v4420_v10  ;;  %v1352_v61 = vadd.f32 %v1350_v50, %v1346_v20  ;;  %v1362_v26 = vmul.f32 %v6431_v45, %v880_v34  ;;  %v6432_v37 = vmov %v6431_v45 }
 0x201   :  { %v1363_v41 = vmul.f32 %v6432_v37, %v883_v28  ;;  %v915_v18 = vrot.slane %v889_v54, 1  ;;  %v888_v15 = vsel %vm3133_vm5, %v885_v31, 0.0  ;;  %v1037_v58 = vadd.f32 %v1035_v14, %v1031_v8 }
 0x202   :  { %v1353_v49 = vadd.f32 %v1351_v1, %v1347_v33  ;;  %v1358_v10 = vadd.f32 %v6433_v51, %v1352_v61  ;;  %v6434_v44 = vstv %s4081_s22  ;;  %v896_v34 = vrot.slane %v888_v15, 7  ;;  %s4782_s22 = sld [smem:[#allocation12 + $0x3a]] }
 0x203   :  { %v4520_v35 = vmul.f32 %v6434_v44, %v889_v54  ;;  %v1036_v24 = vadd.f32 %v1034_v22, %v1030_v23  ;;  %v1200_v57 = vadd.f32 %v1198_v32, %v1194_v46  ;;  %v914_v43 = vrot.slane %v888_v15, 1 }
 0x204   :  { %v1359_v28 = vadd.f32 %v6435_v9, %v1353_v49  ;;  %v1201_v39 = vadd.f32 %v1199_v12, %v1195_v2  ;;  %v6436_v48 = vstv %s4083_s30  ;;  %v898_v6 = vsel %vm158_vm0, %v896_v34, %v897_v25  ;;  %s4784_s30 = sld [smem:[#allocation12 + $0xd]]  ;;  %6520 = sst [smem:[#allocation34_spill]] %s4862_s18 }
 0x205   :  { %v1223_v14 = vmul.f32 %v6436_v48, %v889_v54  ;;  %v899_v56 = vsel %vm158_vm0, %v897_v25, %v896_v34  ;;  %v6437_v52 = vstv %s4091_s28  ;;  %v6438_v21 = vmov %v6434_v44  ;;  %s4786_s28 = sld [smem:[#allocation12 + $0x28]]  ;;  %s4964_s18 = sld [smem:[#allocation12 + $0xe]] }
 0x206   :  { %v4531_v53 = vmul.f32 %v6437_v52, %v889_v54  ;;  %v900_v22 = vsel %vm140_vm1, %v899_v56, 0.0  ;;  %v1058_v16 = vmul.f32 %v6438_v21, %v888_v15  ;;  %v6439_v63 = vmov %v6436_v48 }
 0x207   :  { %v1222_v62 = vmul.f32 %v6439_v63, %v888_v15  ;;  %v1364_v60 = vadd.f32 %v1362_v26, %v1358_v10  ;;  %v6440_v5 = vstv %s4093_s25  ;;  %v895_v55 = vsel %vm3106_vm4, %v893_v38, 0.0  ;;  %v6451_v10 = vld [vmem:[#allocation89_spill] sm:$0xff]  ;;  %s4788_s25 = sld [smem:[#allocation12 + $0x1]] }
 0x208   :  { %v1040_v36 = vmul.f32 %v6440_v5, %v900_v22  ;;  %v6441_v40 = vmov %v6440_v5  ;;  %v1365_v32 = vadd.f32 %v1363_v41, %v1359_v28  ;;  %v917_v0 = vsel %vm177_vm2, %v915_v18, %v914_v43  ;;  %v6453_v28 = vld [vmem:[#allocation93_spill] sm:$0xff] }
 0x209   :  { %v1041_v4 = vmul.f32 %v6441_v40, %v898_v6  ;;  %v6442_v47 = vstv %s4106_s14  ;;  %v6444_v42 = vstv %s4108_s13  ;;  %v6445_v31 = vmov %v6437_v52  ;;  %s4790_s14 = sld [smem:[#allocation12 + $0x43]]  ;;  %s4792_s13 = sld [smem:[#allocation12 + $0x1c]] }
 0x20a   :  { %v1204_v54 = vmul.f32 %v6442_v47, %v900_v22  ;;  %v6443_v3 = vmov %v6442_v47  ;;  %v1042_v12 = vadd.f32 %v1040_v36, %v1036_v24  ;;  %v1368_v50 = vmul.f32 %v6444_v42, %v900_v22  ;;  %6503 = sst [smem:[#allocation38_spill]] %s4784_s30 }
 0x20b   :  { %v1205_v8 = vmul.f32 %v6443_v3, %v898_v6  ;;  %v1043_v20 = vadd.f32 %v1041_v4, %v1037_v58  ;;  %v1386_v11 = vmul.f32 %v6445_v31, %v888_v15  ;;  %v6446_v46 = vmov %v6444_v42  ;;  %v6450_v58 = vld [vmem:[#allocation88_spill] sm:$0xff]  ;;  %6504 = sst [smem:[#allocation46_spill]] %s4786_s28 }
 0x20c   :  { %v1206_v23 = vadd.f32 %v1204_v54, %v1200_v57  ;;  %v1369_v33 = vmul.f32 %v6446_v46, %v898_v6  ;;  %v909_v30 = vrot.slane %v895_v55, 7  ;;  %v4559_v1 = vsel %vm177_vm2, %v914_v43, %v915_v18  ;;  %v6452_v57 = vld [vmem:[#allocation91_spill] sm:$0xff]  ;;  %v6463_v31 = vld [vmem:[#allocation96_spill] sm:$0xff]  ;;  %6532 = sst [smem:[#allocation87_spill]] %s4964_s18  ;;  %s5228_s18 = sld [smem:[#allocation13]] }
 0x20d   :  { %v1207_v19 = vadd.f32 %v1205_v8, %v1201_v39  ;;  %v4563_v59 = vsel %vm143_vm3, %v917_v0, 0.0  ;;  %v927_v2 = vrot.slane %v895_v55, 1  ;;  %v894_v61 = vsel %vm3106_vm4, %v891_v27, 0.0 }
 0x20e   :  { %v1370_v45 = vadd.f32 %v1368_v50, %v1364_v60  ;;  %v1371_v26 = vadd.f32 %v1369_v33, %v1365_v32  ;;  %v6447_v25 = vstv %s4114_s16  ;;  %v908_v37 = vrot.slane %v894_v61, 7  ;;  %s6480_s16 = sld [smem:[#allocation42_spill]] }
 0x20f   :  { %v1071_v49 = vmul.f32 %v6447_v25, %v895_v55  ;;  %v6449_v41 = vstv %s4116_s1  ;;  %v926_v15 = vrot.slane %v894_v61, 1  ;;  %v1048_v51 = vadd.f32 %v6450_v58, %v1042_v12  ;;  %s6495_s1 = smov 127   ;;  %6505 = sst [smem:[#allocation27_spill]] %s4790_s14 }
 0x210   :  { %v1235_v18 = vmul.f32 %v6449_v41, %v895_v55  ;;  %v1049_v44 = vadd.f32 %v6451_v10, %v1043_v20  ;;  %v910_v34 = vsel %vm158_vm0, %v908_v37, %v909_v30  ;;  %v911_v24 = vsel %vm158_vm0, %v909_v30, %v908_v37 }
 0x211   :  { %v1212_v9 = vadd.f32 %v6452_v57, %v1206_v23  ;;  %v1213_v43 = vadd.f32 %v6453_v28, %v1207_v19  ;;  %v6454_v38 = vstv %s4128_s0  ;;  %v912_v48 = vsel %vm140_vm1, %v911_v24, 0.0  ;;  %v6464_v19 = vld [vmem:[#allocation97_spill] sm:$0xff]  ;;  %v6470_v57 = vld [vmem:[#allocation81_spill] sm:$0xff] }
 0x212   :  { %v1399_v39 = vmul.f32 %v6454_v38, %v895_v55  ;;  %v6455_v6 = vstv %s4167_s24  ;;  %v6456_v52 = vmov %v6447_v25  ;;  %v6458_v60 = vstv %s6448_s17  ;;  %s4614_s24 = sld [smem:[#allocation9 + $0x4f]]  ;;  %s4816_s17 = sld [smem:[#allocation12 + $0x13]] }
 0x213   :  { %v1053_v56 = vmul.f32 %v6455_v6, %v910_v34  ;;  %v1070_v22 = vmul.f32 %v6456_v52, %v894_v61  ;;  %v6457_v21 = vmov %v6455_v6  ;;  %v1076_v5 = vmul.f32 %v6458_v60, %v4559_v1 }
 0x214   :  { %v1052_v63 = vmul.f32 %v6457_v21, %v912_v48  ;;  %v6459_v36 = vstv %s4176_s9  ;;  %v4598_v55 = vsel %vm177_vm2, %v926_v15, %v927_v2  ;;  %v6461_v47 = vmov %v6458_v60  ;;  %s4796_s9 = sld [smem:[#allocation12 + $0x7]] }
 0x215   :  { %v1216_v40 = vmul.f32 %v6459_v36, %v912_v48  ;;  %v6460_v4 = vmov %v6459_v36  ;;  %v1055_v0 = vadd.f32 %v1053_v56, %v1049_v44  ;;  %v1077_v54 = vmul.f32 %v6461_v47, %v4563_v59  ;;  %v6469_v44 = vld [vmem:[#allocation79_spill] sm:$0xff] }
 0x216   :  { %v1217_v32 = vmul.f32 %v6460_v4, %v910_v34  ;;  %v6462_v3 = vmov %v6449_v41  ;;  %v929_v27 = vsel %vm177_vm2, %v927_v2, %v926_v15  ;;  %v1054_v12 = vadd.f32 %v1052_v63, %v1048_v51  ;;  %v6467_v15 = vld [vmem:[#allocation75_spill] sm:$0xff] }
 0x217   :  { %v1234_v8 = vmul.f32 %v6462_v3, %v894_v61  ;;  %v1218_v20 = vadd.f32 %v1216_v40, %v1212_v9  ;;  %v1061_v50 = vadd.f32 %v4520_v35, %v1055_v0  ;;  %v1376_v23 = vadd.f32 %v6463_v31, %v1370_v45  ;;  %v6475_v40 = vld [vmem:[#allocation82_spill] sm:$0xff]  ;;  %v6478_v3 = vld [vmem:[#allocation83_spill] sm:$0xff] }
 0x218   :  { %v1219_v42 = vadd.f32 %v1217_v32, %v1213_v43  ;;  %v1377_v46 = vadd.f32 %v6464_v19, %v1371_v26  ;;  %v6465_v33 = vstv %s4199_s6  ;;  %v1060_v25 = vadd.f32 %v1058_v16, %v1054_v12  ;;  %s6477_s6 = sld [smem:[#allocation29_spill]] }
 0x219   :  { %v1380_v30 = vmul.f32 %v6465_v33, %v912_v48  ;;  %v1224_v37 = vadd.f32 %v1222_v62, %v1218_v20  ;;  %v6466_v58 = vmov %v6465_v33  ;;  %v931_v2 = vsel %vm143_vm3, %v929_v27, 0.0  ;;  %v6471_v62 = vld [vmem:[#allocation84_spill] sm:$0xff] }
 0x21a   :  { %v1225_v41 = vadd.f32 %v1223_v14, %v1219_v42  ;;  %v1381_v10 = vmul.f32 %v6466_v58, %v910_v34  ;;  %v1067_v35 = vadd.f32 %v6467_v15, %v1061_v50  ;;  %v6468_v45 = vstv %s4169_s12  ;;  %v6483_v50 = vld [vmem:[#allocation90_spill] sm:$0xff]  ;;  %s4658_s12 = sld [smem:[#allocation10 + $0x2]] }
 0x21b   :  { %v1088_v51 = vmul.f32 %v6468_v45, %v4598_v55  ;;  %v1382_v26 = vadd.f32 %v1380_v30, %v1376_v23  ;;  %v1066_v24 = vadd.f32 %v6469_v44, %v1060_v25  ;;  %v1230_v16 = vadd.f32 %v6470_v57, %v1224_v37  ;;  %v6485_v23 = vld [vmem:[#allocation95_spill] sm:$0xff]  ;;  %v6490_v57 = vld [vmem:[#allocation80_spill] sm:$0xff] }
 0x21c   :  { %v1231_v14 = vadd.f32 %v6471_v62, %v1225_v41  ;;  %v1383_v34 = vadd.f32 %v1381_v10, %v1377_v46  ;;  %v1073_v9 = vadd.f32 %v1071_v49, %v1067_v35  ;;  %v6472_v28 = vstv %s4146_s15  ;;  %v6491_v62 = vld [vmem:[#allocation85_spill] sm:$0xff]  ;;  %s4772_s15 = sld [smem:[#allocation12 + $0x3]] }
 0x21d   :  { %v1240_v43 = vmul.f32 %v6472_v28, %v4559_v1  ;;  %v6473_v38 = vmov %v6472_v28  ;;  %v1388_v6 = vadd.f32 %v1386_v11, %v1382_v26  ;;  %v1072_v56 = vadd.f32 %v1070_v22, %v1066_v24 }
 0x21e   :  { %v1241_v48 = vmul.f32 %v6473_v38, %v4563_v59  ;;  %v1236_v52 = vadd.f32 %v1234_v8, %v1230_v16  ;;  %v1237_v21 = vadd.f32 %v1235_v18, %v1231_v14  ;;  %v1389_v63 = vadd.f32 %v4531_v53, %v1383_v34  ;;  %v6479_v18 = vld [vmem:[#allocation92_spill] sm:$0xff] }
 0x21f   :  { %v1079_v60 = vadd.f32 %v1077_v54, %v1073_v9  ;;  %v6474_v49 = vmov %v6468_v45  ;;  %v1394_v4 = vadd.f32 %v6475_v40, %v1388_v6  ;;  %v6476_v32 = vstv %s4128_s0  ;;  %v6492_v6 = vld [vmem:[#allocation55_spill] sm:$0xff]  ;;  %s4794_s0 = sld [smem:[#allocation12 + $0x37]] }
 0x220   :  { %v1089_v36 = vmul.f32 %v6474_v49, %v931_v2  ;;  %v1398_v11 = vmul.f32 %v6476_v32, %v894_v61  ;;  %v1078_v0 = vadd.f32 %v1076_v5, %v1072_v56  ;;  %v1242_v47 = vadd.f32 %v1240_v43, %v1236_v52  ;;  %v6484_v61 = vld [vmem:[#allocation94_spill] sm:$0xff] }
 0x221   :  { %v1243_v22 = vadd.f32 %v1241_v48, %v1237_v21  ;;  %v1395_v8 = vadd.f32 %v6478_v3, %v1389_v63  ;;  %v1085_v27 = vadd.f32 %v6479_v18, %v1079_v60  ;;  %v6481_v54 = vstv %s4148_s10  ;;  %v6493_v63 = vld [vmem:[#allocation56_spill] sm:$0xff]  ;;  %s6494_s10 = smov 1  }
 0x222   :  { %v1400_v53 = vadd.f32 %v1398_v11, %v1394_v4  ;;  %v1404_v12 = vmul.f32 %v6481_v54, %v4559_v1  ;;  %v6482_v20 = vmov %v6481_v54  ;;  %v1084_v31 = vadd.f32 %v6483_v50, %v1078_v0  ;;  %6500 = sst [smem:[#allocation32_spill]] %s4772_s15  ;;  %s4849_s15 = sld [smem:[#allocation12 + $0x8]] }
 0x223   :  { %v1405_v42 = vmul.f32 %v6482_v20, %v4563_v59  ;;  %v1248_v5 = vadd.f32 %v6484_v61, %v1242_v47  ;;  %v1249_v19 = vadd.f32 %v6485_v23, %v1243_v22  ;;  %v1401_v46 = vadd.f32 %v1399_v39, %v1395_v8  ;;  %v6496_v8 = vld [vmem:[#allocation64_spill] sm:$0xff] }
 0x224   :  { %v1409_v33 = vstv %s4614_s24  ;;  %v1091_v30 = vadd.f32 %v1089_v36, %v1085_v27  ;;  %v6486_v25 = vstv %s6477_s6  ;;  %v1090_v58 = vadd.f32 %v1088_v51, %v1084_v31  ;;  %v6497_v27 = vld [vmem:[#allocation57_spill] sm:$0xff]  ;;  %s4818_s24 = sld [smem:[#allocation12 + $0x31]]  ;;  %s4824_s6 = sld [smem:[#allocation12]] }
 0x225   :  { %v1252_v37 = vmul.f32 %v6486_v25, %v4598_v55  ;;  %v6487_v41 = vmov %v6486_v25  ;;  %v1406_v10 = vadd.f32 %v1404_v12, %v1400_v53  ;;  %v1407_v59 = vadd.f32 %v1405_v42, %v1401_v46 }
 0x226   :  { %v1253_v1 = vmul.f32 %v6487_v41, %v931_v2  ;;  %v6488_v15 = vstv %s6480_s16  ;;  %v1257_v44 = vstv %s4631_s7  ;;  %v1410_v16 = vmul.f32 %v1409_v33, %v6490_v57  ;;  %s4820_s7 = sld [smem:[#allocation12 + $0x19]]  ;;  %s4826_s16 = sld [smem:[#allocation12 + $0x34]] }
 0x227   :  { %v1095_v35 = vadd.f32 %v6488_v15, %v1091_v30  ;;  %v1254_v45 = vadd.f32 %v1252_v37, %v1248_v5  ;;  %v6489_v24 = vmov %v6488_v15  ;;  %v1411_v14 = vmul.f32 %v1409_v33, %v6491_v62  ;;  %v6499_v33 = vld [vmem:[#allocation67_spill] sm:$0xff] }
 0x228   :  { %v1255_v26 = vadd.f32 %v1253_v1, %v1249_v19  ;;  %v1094_v39 = vadd.f32 %v6489_v24, %v1090_v58  ;;  %v1415_v34 = vstv %s4634_s27  ;;  %v1412_v28 = vadd.f32 %v1410_v16, %v1406_v10  ;;  %v6498_v19 = vld [vmem:[#allocation59_spill] sm:$0xff]  ;;  %s4822_s27 = sld [smem:[#allocation12 + $0x2e]]  ;;  %6516 = sst [smem:[#allocation69_spill]] %s4849_s15 }
 0x229   :  { %v1425_v9 = vmax.f32 %v1095_v35, 0.0  ;;  %v1413_v51 = vadd.f32 %v1411_v14, %v1407_v59  ;;  %v1258_v38 = vadd.f32 %v1257_v44, %v1254_v45  ;;  %v1416_v52 = vmul.f32 %v1415_v34, %v4598_v55  ;;  %s4943_s15 = sld [smem:[#allocation12 + $0x9]] }
 0x22a   :  { %v1424_v43 = vmax.f32 %v1094_v39, 0.0  ;;  %v1259_v48 = vadd.f32 %v1257_v44, %v1255_v26  ;;  %v1417_v21 = vmul.f32 %v1415_v34, %v931_v2  ;;  %v1421_v32 = vstv %s4658_s12  ;;  %6506 = sst [smem:[#allocation47_spill]] %s4818_s24  ;;  %s4828_s12 = sld [smem:[#allocation12 + $0x1b]] }
 0x22b   :  { %v4669_v56 = vadd.f32 %v1425_v9, %v6492_v6  ;;  %v1418_v36 = vadd.f32 %v1416_v52, %v1412_v28  ;;  %v1428_v11 = vmax.f32 %v1258_v38, 0.0  ;;  %6507 = sst [smem:[#allocation45_spill]] %s4824_s6  ;;  %s4836_s24 = sld [smem:[#allocation12 + $0x20]]  ;;  %v1603_v16 = vstv %s4778_s20 }
 0x22c   :  { %v4673_v60 = vadd.f32 %v1424_v43, %v6493_v63  ;;  %v1419_v40 = vadd.f32 %v1417_v21, %v1413_v51  ;;  %v1429_v0 = vmax.f32 %v1259_v48, 0.0  ;;  %6508 = sst [smem:[#allocation48_spill]] %s4826_s16  ;;  %s4839_s6 = sld [smem:[#allocation12 + $0x3b]]  ;;  %v1767_v62 = vstv %s4780_s2 }
 0x22d   :  { %1438 = vrot.lane.b32.xlu1 %v4669_v56, %s6494_s10  ;;  %v1455_v49 = vrot.slane %v4669_v56, 7  ;;  %v1422_v47 = vadd.f32 %v1421_v32, %v1418_v36  ;;  %v4696_v18 = vadd.f32 %v1428_v11, %v6496_v8  ;;  %v1473_v54 = vrot.slane %v4669_v56, 1  ;;  %s4841_s16 = sld [smem:[#allocation12 + $0x2]]  ;;  %s4857_s20 = sld [smem:[#allocation12 + $0x1d]] }
 0x22e   :  { %1436 = vrot.lane.b32.xlu0 %v4673_v60, %s6494_s10  ;;  %v1454_v4 = vrot.slane %v4673_v60, 7  ;;  %v1423_v22 = vadd.f32 %v1421_v32, %v1419_v40  ;;  %v1472_v3 = vrot.slane %v4673_v60, 1  ;;  %v4699_v53 = vadd.f32 %v1429_v0, %v6497_v27  ;;  %s4859_s2 = sld [smem:[#allocation12 + $0x21]] }
 0x22f   :  { %v1432_v12 = vmax.f32 %v1422_v47, 0.0  ;;  %v1502_v31 = vrot.slane %v4696_v18, 7  ;;  %v1520_v61 = vrot.slane %v4696_v18, 1  ;;  %v1931_v14 = vstv %s4782_s22  ;;  %6528 = sst [smem:[#allocation36_spill]] %s4943_s15  ;;  %s5205_s15 = sld [smem:[#allocation12 + $0x2f]] }
 0x230   :  { %v4684_v55 = vsel %vm158_vm0, %v1454_v4, %v1455_v49  ;;  %v4688_v2 = vsel %vm158_vm0, %v1455_v49, %v1454_v4  ;;  %v1433_v20 = vmax.f32 %v1423_v22, 0.0  ;;  %v4708_v42 = vsel %vm177_vm2, %v1472_v3, %v1473_v54  ;;  %6509 = sst [smem:[#allocation52_spill]] %s4828_s12  ;;  %s5060_s12 = sld [smem:[#allocation12 + $0x45]] }
 0x231   :  { %1444 = vrot.lane.b32.xlu1 %v4669_v56, %s6495_s1  ;;  %v4712_v50 = vsel %vm177_vm2, %v1473_v54, %v1472_v3  ;;  %v1503_v5 = vrot.slane %v4699_v53, 7  ;;  %v1521_v23 = vrot.slane %v4699_v53, 1  ;;  %v4721_v46 = vadd.f32 %v1432_v12, %v6498_v19  ;;  %6512 = sst [smem:[#allocation41_spill]] %s4836_s24  ;;  %s4915_s24 = sld [smem:[#allocation12 + $0x49]] }
 0x232   :  { %1442 = vrot.lane.b32.xlu0 %v4673_v60, %s6495_s1  ;;  %v4724_v30 = vadd.f32 %v1433_v20, %v6499_v33  ;;  %6513 = sst [smem:[#allocation53_spill]] %s4839_s6  ;;  %v1585_v34 = vstv %s4788_s25  ;;  %v1657_v9 = vstv %s4784_s30  ;;  %v1821_v28 = vstv %s4786_s28  ;;  %s6519_s25 = sld [smem:[#allocation47_spill]] }
 0x233   :  { %v4730_v25 = vsel %vm158_vm0, %v1502_v31, %v1503_v5  ;;  %v4734_v37 = vsel %vm158_vm0, %v1503_v5, %v1502_v31  ;;  %v4738_v41 = vsel %vm177_vm2, %v1520_v61, %v1521_v23  ;;  %v4742_v1 = vsel %vm177_vm2, %v1521_v23, %v1520_v61  ;;  %6514 = sst [smem:[#allocation51_spill]] %s4841_s16  ;;  %s4917_s6 = sld [smem:[#allocation12 + $0x4c]] }
 0x234   :  { %v1550_v58 = vrot.slane %v4721_v46, 7  ;;  %v1568_v10 = vrot.slane %v4721_v46, 1  ;;  %v1551_v59 = vrot.slane %v4724_v30, 7  ;;  %v1569_v15 = vrot.slane %v4724_v30, 1  ;;  %6517 = sst [smem:[#allocation39_spill]] %s4857_s20  ;;  %s4864_s30 = sld [smem:[#allocation12 + $0x38]] }
 0x235   :  { %1486 = vrot.lane.b32.xlu1 %v4699_v53, %s6494_s10  ;;  %v1985_v51 = vstv %s4790_s14  ;;  %v1749_v43 = vstv %s4792_s13  ;;  %v1913_v38 = vstv %s4794_s0  ;;  %6518 = sst [smem:[#allocation40_spill]] %s4859_s2  ;;  %s4870_s13 = sld [smem:[#allocation12 + $0x3c]]  ;;  %v1458_v54 = vsel %vm140_vm1, %v4688_v2, 0.0 }
 0x236   :  { %1484 = vrot.lane.b32.xlu0 %v4696_v18, %s6494_s10  ;;  %v4758_v35 = vsel %vm158_vm0, %v1550_v58, %v1551_v59  ;;  %v4762_v45 = vsel %vm158_vm0, %v1551_v59, %v1550_v58  ;;  %v4766_v26 = vsel %vm177_vm2, %v1568_v10, %v1569_v15  ;;  %v4770_v44 = vsel %vm177_vm2, %v1569_v15, %v1568_v10  ;;  %s4872_s0 = sld [smem:[#allocation12 + $0x3e]]  ;;  %s4933_s28 = sld [smem:[#allocation12 + $0x27]] }
 0x237   :  { %v1621_v48 = vstv %s4796_s9  ;;  %v1785_v6 = vstv %s4798_s19  ;;  %v1949_v52 = vstv %s4800_s3  ;;  %v1639_v21 = vstv %s4802_s26  ;;  %s4935_s14 = sld [smem:[#allocation12 + $0x42]]  ;;  %s4945_s2 = sld [smem:[#allocation12 + $0x24]] }
 0x238   :  { %v1675_v63 = vstv %s4804_s21  ;;  %v1803_v49 = vstv %s4806_s5  ;;  %v1839_v36 = vstv %s4808_s8  ;;  %v1967_v40 = vstv %s4810_s29  ;;  %s4981_s22 = sld [smem:[#allocation12 + $0x29]]  ;;  %s4983_s20 = sld [smem:[#allocation12 + $0x44]] }
 0x239   :  { %1492 = vrot.lane.b32.xlu1 %v4699_v53, %s6495_s1  ;;  %v2003_v4 = vstv %s4812_s11  ;;  %v1693_v32 = vstv %s4816_s17  ;;  %v1711_v11 = vstv %s4814_s23  ;;  %v4889_v12 = vmul.f32 %v1603_v16, %v4673_v60  ;;  %s5003_s16 = sld [smem:[#allocation12 + $0xb]]  ;;  %s5012_s9 = sld [smem:[#allocation12 + $0x11]] }
 0x23a   :  { %1490 = vrot.lane.b32.xlu0 %v4696_v18, %s6495_s1  ;;  %6522 = sst [smem:[#allocation31_spill]] %s4864_s30  ;;  %v1729_v0 = vstv %s4820_s7  ;;  %v1857_v47 = vstv %s4822_s27  ;;  %v1875_v22 = vstv %s6519_s25  ;;  %v4892_v20 = vmul.f32 %v1603_v16, %v4669_v56  ;;  %s5014_s19 = sld [smem:[#allocation12 + $0x26]] }
 0x23b   :  { %6523 = sst [smem:[#allocation33_spill]] %s4870_s13  ;;  %v4895_v31 = vmul.f32 %v1767_v62, %v4669_v56  ;;  %v4902_v2 = vmul.f32 %v1767_v62, %v4673_v60  ;;  %v4904_v33 = vmul.f32 %v1585_v34, %v1458_v54  ;;  %v4907_v58 = vmul.f32 %v1585_v34, %v4684_v55  ;;  %s4962_s13 = sld [smem:[#allocation12 + $0x3f]] }
 0x23c   :  { %6524 = sst [smem:[#allocation37_spill]] %s4872_s0  ;;  %v4910_v10 = vmul.f32 %v1749_v43, %v4684_v55  ;;  %v4913_v59 = vmul.f32 %v1913_v38, %v4684_v55  ;;  %v4919_v15 = vmul.f32 %v1749_v43, %v1458_v54  ;;  %v4921_v16 = vmul.f32 %v1913_v38, %v1458_v54  ;;  %s5058_s30 = sld [smem:[#allocation12 + $0x41]] }
 0x23d   :  { %1534 = vrot.lane.b32.xlu1 %v4724_v30, %s6494_s10  ;;  %6527 = sst [smem:[#allocation30_spill]] %s4935_s14  ;;  %v1477_v62 = vsel %vm143_vm3, %v4712_v50, 0.0  ;;  %v4950_v5 = vmul.f32 %v1621_v48, %v4708_v42  ;;  %v4955_v55 = vmul.f32 %v1931_v14, %v4673_v60  ;;  %v4960_v54 = vmul.f32 %v1931_v14, %v4669_v56  ;;  %s5036_s3 = sld [smem:[#allocation12 + $0x2a]] }
 0x23e   :  { %1532 = vrot.lane.b32.xlu0 %v4721_v46, %s6494_s10  ;;  %s4830_s10 = sld [smem:[#allocation12 + $0x36]]  ;;  %6529 = sst [smem:[#allocation35_spill]] %s4945_s2  ;;  %v4969_v50 = vmul.f32 %v1657_v9, %v4696_v18  ;;  %v4974_v38 = vmul.f32 %v1785_v6, %v4708_v42  ;;  %v4979_v60 = vmul.f32 %v1949_v52, %v4708_v42  ;;  %v1506_v56 = vsel %vm140_vm1, %v4734_v37, 0.0 }
 0x23f   :  { %6535 = sst [smem:[#allocation28_spill]] %s4981_s22  ;;  %v1525_v14 = vsel %vm143_vm3, %v4742_v1, 0.0  ;;  %v4993_v43 = vmul.f32 %v1621_v48, %v1477_v62  ;;  %v4997_v42 = vmul.f32 %v1785_v6, %v1477_v62  ;;  %v5001_v23 = vmul.f32 %v1949_v52, %v1477_v62  ;;  %s5077_s26 = sld [smem:[#allocation12 + $0x47]] }
 0x240   :  { %6534 = vst [vmem:[#allocation25_spill] sm:$0xff] %v4969_v50  ;;  %v5010_v37 = vmul.f32 %v1821_v28, %v4696_v18  ;;  %6537 = sst [smem:[#allocation29_spill]] %s5014_s19  ;;  %v5019_v1 = vmul.f32 %v1985_v51, %v4696_v18  ;;  %v5024_v48 = vmul.f32 %v1657_v9, %v4699_v53  ;;  %v5029_v6 = vmul.f32 %v1821_v28, %v4699_v53  ;;  %s5038_s19 = sld [smem:[#allocation12 + $0x2c]] }
 0x241   :  { %1540 = vrot.lane.b32.xlu1 %v4724_v30, %s6495_s1  ;;  %6531 = sst [smem:[#allocation86_spill]] %s4962_s13  ;;  %v5034_v52 = vmul.f32 %v1985_v51, %v4699_v53  ;;  %v5042_v18 = vmul.f32 %v1639_v21, %v1506_v56  ;;  %v5047_v9 = vmul.f32 %v1639_v21, %v4730_v25  ;;  %v5052_v28 = vmul.f32 %v1675_v63, %v4738_v41  ;;  %s5103_s5 = sld [smem:[#allocation12 + $0x30]] }
 0x242   :  { %1538 = vrot.lane.b32.xlu0 %v4721_v46, %s6495_s1  ;;  %s4834_s1 = sld [smem:[#allocation12 + $0x5]]  ;;  %6536 = vst [vmem:[#allocation73_spill] sm:$0xff] %v5010_v37  ;;  %6538 = vst [vmem:[#allocation65_spill] sm:$0xff] %v5019_v1  ;;  %v5056_v53 = vmul.f32 %v1675_v63, %v1525_v14  ;;  %v5064_v51 = vmul.f32 %v1803_v49, %v1506_v56  ;;  %v5069_v21 = vmul.f32 %v1803_v49, %v4730_v25  ;;  %s5105_s8 = sld [smem:[#allocation12 + $0x4b]] }
 0x243   :  { %6539 = vst [vmem:[#allocation66_spill] sm:$0xff] %v5024_v48  ;;  %6540 = vst [vmem:[#allocation76_spill] sm:$0xff] %v5029_v6  ;;  %v5074_v62 = vmul.f32 %v1839_v36, %v4738_v41  ;;  %v2039_v63 = vstv %s4917_s6  ;;  %v5081_v19 = vmul.f32 %v1839_v36, %v1525_v14  ;;  %v5085_v34 = vmul.f32 %v1967_v40, %v1506_v56  ;;  %s5097_s21 = sld [smem:[#allocation12 + $0x15]]  ;;  %s5120_s29 = sld [smem:[#allocation12 + $0x12]] }
 0x244   :  { %6510 = sst [smem:[#allocation50_spill]] %s4830_s10  ;;  %6541 = vst [vmem:[#allocation74_spill] sm:$0xff] %v5034_v52  ;;  %6542 = vst [vmem:[#allocation68_spill] sm:$0xff] %v5047_v9  ;;  %v5090_v27 = vmul.f32 %v1967_v40, %v4730_v25  ;;  %v5095_v49 = vmul.f32 %v2003_v4, %v4738_v41  ;;  %v5101_v8 = vmul.f32 %v2003_v4, %v1525_v14  ;;  %v1554_v36 = vsel %vm140_vm1, %v4762_v45, 0.0  ;;  %s5122_s11 = sld [smem:[#allocation12 + $0x2d]] }
 0x245   :  { %s4927_s10 = sld [smem:[#allocation12 + $0x4f]]  ;;  %6543 = vst [vmem:[#allocation58_spill] sm:$0xff] %v5052_v28  ;;  %6544 = vst [vmem:[#allocation62_spill] sm:$0xff] %v5056_v53  ;;  %v5110_v25 = vmul.f32 %v1711_v11, %v4721_v46  ;;  %v5115_v41 = vmul.f32 %v1875_v22, %v4721_v46  ;;  %v2021_v40 = vstv %s4915_s24  ;;  %v5126_v4 = vmul.f32 %v2039_v63, %v4721_v46  ;;  %s5132_s6 = sld [smem:[#allocation12 + $0x48]] }
 0x246   :  { %6545 = vst [vmem:[#allocation70_spill] sm:$0xff] %v5064_v51  ;;  %6546 = vst [vmem:[#allocation63_spill] sm:$0xff] %v5069_v21  ;;  %6548 = sst [smem:[#allocation42_spill]] %s5077_s26  ;;  %v1573_v14 = vsel %vm143_vm3, %v4770_v44, 0.0  ;;  %v5139_v45 = vmul.f32 %v1693_v32, %v4758_v35  ;;  %v5144_v46 = vmul.f32 %v1711_v11, %v4724_v30  ;;  %v5149_v3 = vmul.f32 %v1875_v22, %v4724_v30  ;;  %s6564_s24 = sld [smem:[#allocation48_spill]] }
 0x247   :  { %6547 = vst [vmem:[#allocation61_spill] sm:$0xff] %v5074_v62  ;;  %6549 = vst [vmem:[#allocation60_spill] sm:$0xff] %v5081_v19  ;;  %s5134_s0 = sld [smem:[#allocation12 + $0x17]]  ;;  %v5152_v44 = vmul.f32 %v2039_v63, %v4724_v30  ;;  %v5161_v39 = vmul.f32 %v1693_v32, %v1554_v36  ;;  %v5166_v11 = vmul.f32 %v1729_v0, %v4766_v26  ;;  %s5174_s23 = sld [smem:[#allocation12 + $0x18]] }
 0x248   :  { %6511 = sst [smem:[#allocation54_spill]] %s4834_s1  ;;  %s4925_s1 = sld [smem:[#allocation12 + $0xc]]  ;;  %6550 = vst [vmem:[#allocation26_spill] sm:$0xff] %v5085_v34  ;;  %6551 = vst [vmem:[#allocation71_spill] sm:$0xff] %v5090_v27  ;;  %v5170_v22 = vmul.f32 %v1857_v47, %v1554_v36  ;;  %v5180_v57 = vmul.f32 %v1729_v0, %v1573_v14  ;;  %v5185_v32 = vmul.f32 %v1857_v47, %v4758_v35 }
 0x249   :  { %6552 = vst [vmem:[#allocation72_spill] sm:$0xff] %v5095_v49  ;;  %6553 = sst [smem:[#allocation47_spill]] %s5097_s21  ;;  %6554 = vst [vmem:[#allocation77_spill] sm:$0xff] %v5101_v8  ;;  %s5176_s25 = sld [smem:[#allocation12 + $0x33]]  ;;  %v5207_v47 = vmul.f32 %v2021_v40, %v1554_v36  ;;  %v5210_v61 = vmul.f32 %v2021_v40, %v4758_v35 }
 0x24a   :  { %6555 = vst [vmem:[#allocation78_spill] sm:$0xff] %v5110_v25  ;;  %6556 = vst [vmem:[#allocation88_spill] sm:$0xff] %v5115_v41  ;;  %6557 = sst [smem:[#allocation38_spill]] %s5120_s29  ;;  %s5189_s17 = sld [smem:[#allocation12 + $0x14]] }
 0x24b   :  { %6558 = vst [vmem:[#allocation89_spill] sm:$0xff] %v5126_v4  ;;  %v2057_v56 = vstv %s4927_s10  ;;  %6560 = vst [vmem:[#allocation91_spill] sm:$0xff] %v5139_v45  ;;  %s5155_s10 = sld [smem:[#allocation12 + $0x32]]  ;;  %s5191_s14 = sld [smem:[#allocation12 + $0x4e]] }
 0x24c   :  { %6561 = vst [vmem:[#allocation93_spill] sm:$0xff] %v5144_v46  ;;  %6562 = vst [vmem:[#allocation96_spill] sm:$0xff] %v5149_v3  ;;  %v6573_v63 = vstv %s6564_s24  ;;  %s6577_s7 = sld [smem:[#allocation29_spill]]  ;;  %s5218_s24 = sld [smem:[#allocation12 + $0x35]]  ;;  %v5222_v36 = vmul.f32 %v2057_v56, %v1573_v14 }
 0x24d   :  { %6559 = sst [smem:[#allocation46_spill]] %s5134_s0  ;;  %6563 = vst [vmem:[#allocation97_spill] sm:$0xff] %v5152_v44  ;;  %s5157_s0 = sld [smem:[#allocation12 + $0x4d]]  ;;  %6566 = vst [vmem:[#allocation75_spill] sm:$0xff] %v5161_v39  ;;  %v5196_v30 = vmul.f32 %v6573_v63, %v4766_v26 }
 0x24e   :  { %6567 = vst [vmem:[#allocation79_spill] sm:$0xff] %v5166_v11  ;;  %6568 = vst [vmem:[#allocation81_spill] sm:$0xff] %v5170_v22  ;;  %6569 = sst [smem:[#allocation48_spill]] %s5174_s23  ;;  %v6575_v11 = vmov %v6573_v63  ;;  %s5203_s27 = sld [smem:[#allocation12 + $0x1a]]  ;;  %v5213_v63 = vmul.f32 %v2057_v56, %v4766_v26 }
 0x24f   :  { %6570 = vst [vmem:[#allocation84_spill] sm:$0xff] %v5180_v57  ;;  %6571 = vst [vmem:[#allocation82_spill] sm:$0xff] %v5185_v32  ;;  %v5200_v0 = vmul.f32 %v6575_v11, %v1573_v14  ;;  %s5220_s13 = sld [smem:[#allocation12 + $0x4a]]  ;;  %s5230_s22 = sld [smem:[#allocation12 + $0x50]] }
 0x250   :  { %6574 = vst [vmem:[#allocation83_spill] sm:$0xff] %v5196_v30  ;;  %6578 = vst [vmem:[#allocation90_spill] sm:$0xff] %v5207_v47  ;;  %6583 = sst [smem:[#allocation29_spill]] %s5228_s18  ;;  %s6585_s26 = sld [smem:[#allocation32_spill]] }
 0x251   :  { %6565 = sst [smem:[#allocation27_spill]] %s5155_s10  ;;  %6576 = vst [vmem:[#allocation92_spill] sm:$0xff] %v5200_v0  ;;  %6579 = vst [vmem:[#allocation94_spill] sm:$0xff] %v5210_v61  ;;  %s6587_s29 = sld [smem:[#allocation44_spill]] }
 0x252   :  { %6572 = sst [smem:[#allocation98_spill]] %s5191_s14  ;;  %6580 = vst [vmem:[#allocation95_spill] sm:$0xff] %v5213_v63  ;;  %6581 = vst [vmem:[#allocation80_spill] sm:$0xff] %v5222_v36  ;;  %s6586_s21 = sld [smem:[#allocation43_spill]] }
 0x253   :  { %s6588_s2 = sld [smem:[#allocation45_spill]]  ;;  %s6589_s10 = sld [smem:[#allocation52_spill]] }
 0x254   :  { %s6590_s23 = sld [smem:[#allocation50_spill]]  ;;  %s6603_s18 = sld [smem:[#allocation41_spill]] }
 0x255   :  { %6584 = sst [smem:[#allocation99_spill]] %s5230_s22  ;;  %s6601_s22 = sld [smem:[#allocation54_spill]]  ;;  %v6720_v29 = vld [vmem:[#allocation81_spill] sm:$0xff] }
 0x256   :  { %v6591_v40 = vstv %s6585_s26  ;;  %s6605_s14 = sld [smem:[#allocation53_spill]] }
 0x257   :  { %v6604_v62 = vstv %s6587_s29 }
 0x258   :  { %v6592_v0 = vstv %s6586_s21  ;;  %v6602_v19 = vstv %s6586_s21  ;;  %s6608_s21 = sld [smem:[#allocation39_spill]] }
 0x25a   :  { %v6598_v45 = vstv %s6590_s23  ;;  %s6629_s23 = sld [smem:[#allocation33_spill]] }
 0x25e   :  { %v6621_v53 = vstv %s6608_s21  ;;  %s6644_s21 = sld [smem:[#allocation35_spill]] }
 0x25f   :  { %v6622_v1 = vmov %v6621_v53 }
 0x29f   :  { %v1439_v36 = vpop.permute.xlu1 %1438 }
 0x2a0   :  { %v1441_v24 = vsel %vm3133_vm5, %v1439_v36, 0.0  ;;  %v1437_v57 = vpop.permute.xlu0 %1436  ;;  %v6593_v36 = vstv %s6587_s29  ;;  %s6613_s29 = sld [smem:[#allocation40_spill]] }
 0x2a1   :  { %v1449_v26 = vrot.slane %v1441_v24, 7  ;;  %v1467_v30 = vrot.slane %v1441_v24, 1  ;;  %v1440_v44 = vsel %vm3133_vm5, %v1437_v57, 0.0  ;;  %v1599_v11 = vmul.f32 %v6591_v40, %v1441_v24 }
 0x2a2   :  { %v1448_v4 = vrot.slane %v1440_v44, 7  ;;  %v1466_v56 = vrot.slane %v1440_v44, 1  ;;  %v1763_v41 = vmul.f32 %v6592_v0, %v1441_v24  ;;  %v5266_v63 = vmul.f32 %v6593_v36, %v1441_v24 }
 0x2a3   :  { %v1445_v14 = vpop.permute.xlu1 %1444  ;;  %v6594_v57 = vstv %s6588_s2  ;;  %v6595_v24 = vstv %s6589_s10  ;;  %s6606_s2 = sld [smem:[#allocation49_spill]]  ;;  %s6614_s10 = sld [smem:[#allocation31_spill]] }
 0x2a4   :  { %v1450_v46 = vsel %vm158_vm0, %v1448_v4, %v1449_v26  ;;  %v1451_v35 = vsel %vm158_vm0, %v1449_v26, %v1448_v4  ;;  %v1447_v3 = vsel %vm3106_vm4, %v1445_v14, 0.0  ;;  %v1469_v40 = vsel %vm177_vm2, %v1467_v30, %v1466_v56  ;;  %v1443_v8 = vpop.permute.xlu0 %1442 }
 0x2a5   :  { %v1452_v0 = vsel %vm140_vm1, %v1451_v35, 0.0  ;;  %v1583_v25 = vmul.f32 %v6594_v57, %v1450_v46  ;;  %v1747_v36 = vmul.f32 %v6595_v24, %v1450_v46  ;;  %v6596_v61 = vmov %v6594_v57 }
 0x2a6   :  { %v1582_v47 = vmul.f32 %v6596_v61, %v1452_v0  ;;  %v6597_v32 = vmov %v6595_v24  ;;  %v1910_v39 = vmul.f32 %v6598_v45, %v1452_v0  ;;  %v6599_v4 = vmov %v6598_v45 }
 0x2a7   :  { %v1746_v22 = vmul.f32 %v6597_v32, %v1452_v0  ;;  %v1911_v26 = vmul.f32 %v6599_v4, %v1450_v46  ;;  %v1468_v14 = vsel %vm177_vm2, %v1466_v56, %v1467_v30  ;;  %v6600_v35 = vstv %s6585_s26  ;;  %s6607_s26 = sld [smem:[#allocation51_spill]] }
 0x2a8   :  { %v1598_v49 = vmul.f32 %v6600_v35, %v1440_v44  ;;  %v1762_v57 = vmul.f32 %v6602_v19, %v1440_v44  ;;  %v1926_v24 = vmul.f32 %v6604_v62, %v1440_v44  ;;  %v5300_v61 = vsel %vm143_vm3, %v1469_v40, 0.0 }
 0x2a9   :  { %v1589_v45 = vadd.f32 %v4907_v58, %v1583_v25  ;;  %v1461_v46 = vrot.slane %v1447_v3, 7  ;;  %v1479_v32 = vrot.slane %v1447_v3, 1  ;;  %v1588_v30 = vadd.f32 %v4904_v33, %v1582_v47 }
 0x2aa   :  { %v1752_v56 = vadd.f32 %v4919_v15, %v1746_v22  ;;  %v1753_v19 = vadd.f32 %v4910_v10, %v1747_v36  ;;  %v1446_v62 = vsel %vm3106_vm4, %v1443_v8, 0.0  ;;  %v1916_v44 = vadd.f32 %v4921_v16, %v1910_v39 }
 0x2ab   :  { %v1917_v0 = vadd.f32 %v4913_v59, %v1911_v26  ;;  %v1460_v58 = vrot.slane %v1446_v62, 7  ;;  %v1478_v25 = vrot.slane %v1446_v62, 1  ;;  %v6609_v40 = vstv %s6601_s22  ;;  %s6618_s22 = sld [smem:[#allocation69_spill]] }
 0x2ac   :  { %v1611_v33 = vmul.f32 %v6609_v40, %v1447_v3  ;;  %v6610_v15 = vstv %s6603_s18  ;;  %v6611_v47 = vstv %s6605_s14  ;;  %v6612_v36 = vmov %v6609_v40 }
 0x2ad   :  { %v1775_v22 = vmul.f32 %v6610_v15, %v1447_v3  ;;  %v1939_v10 = vmul.f32 %v6611_v47, %v1447_v3  ;;  %v1610_v4 = vmul.f32 %v6612_v36, %v1446_v62  ;;  %v1462_v39 = vsel %vm158_vm0, %v1460_v58, %v1461_v46 }
 0x2ae   :  { %v1463_v8 = vsel %vm158_vm0, %v1461_v46, %v1460_v58  ;;  %v1481_v59 = vsel %vm177_vm2, %v1479_v32, %v1478_v25  ;;  %v6615_v16 = vstv %s6606_s2  ;;  %v6616_v3 = vstv %s6607_s26  ;;  %s6634_s2 = sld [smem:[#allocation37_spill]]  ;;  %s6642_s26 = sld [smem:[#allocation36_spill]] }
 0x2af   :  { %v1616_v26 = vmul.f32 %v6615_v16, %v1468_v14  ;;  %v1464_v35 = vsel %vm140_vm1, %v1463_v8, 0.0  ;;  %v1593_v40 = vmul.f32 %v6616_v3, %v1462_v39  ;;  %v6617_v15 = vmov %v6615_v16 }
 0x2b0   :  { %v1617_v47 = vmul.f32 %v6617_v15, %v5300_v61  ;;  %v6619_v36 = vstv %s6603_s18  ;;  %v1480_v46 = vsel %vm177_vm2, %v1478_v25, %v1479_v32  ;;  %v6620_v58 = vmov %v6616_v3  ;;  %s6625_s18 = sld [smem:[#allocation34_spill]] }
 0x2b1   :  { %v1774_v28 = vmul.f32 %v6619_v36, %v1446_v62  ;;  %v1592_v52 = vmul.f32 %v6620_v58, %v1464_v35  ;;  %v1756_v16 = vmul.f32 %v6621_v53, %v1464_v35  ;;  %v1757_v6 = vmul.f32 %v6622_v1, %v1462_v39 }
 0x2b2   :  { %v1483_v8 = vsel %vm143_vm3, %v1481_v59, 0.0  ;;  %v1595_v3 = vadd.f32 %v1593_v40, %v1589_v45  ;;  %v6623_v37 = vstv %s6613_s29  ;;  %v6624_v15 = vstv %s6614_s10  ;;  %s6647_s29 = sld [smem:[#allocation86_spill]]  ;;  %s6654_s10 = sld [smem:[#allocation28_spill]] }
 0x2b3   :  { %v1780_v50 = vmul.f32 %v6623_v37, %v1468_v14  ;;  %v1920_v48 = vmul.f32 %v6624_v15, %v1464_v35  ;;  %v1594_v36 = vadd.f32 %v1592_v52, %v1588_v30  ;;  %v1758_v27 = vadd.f32 %v1756_v16, %v1752_v56 }
 0x2b4   :  { %v1759_v34 = vadd.f32 %v1757_v6, %v1753_v19  ;;  %v6626_v32 = vmov %v6624_v15  ;;  %v1601_v58 = vadd.f32 %v1599_v11, %v1595_v3  ;;  %v6627_v21 = vstv %s6618_s22 }
 0x2b5   :  { %v1921_v25 = vmul.f32 %v6626_v32, %v1462_v39  ;;  %v1628_v53 = vmul.f32 %v6627_v21, %v1480_v46  ;;  %v6628_v1 = vmov %v6623_v37  ;;  %v1922_v9 = vadd.f32 %v1920_v48, %v1916_v44  ;;  %v1487_v44 = vpop.permute.xlu1 %1486 }
 0x2b6   :  { %v1781_v51 = vmul.f32 %v6628_v1, %v5300_v61  ;;  %v1600_v45 = vadd.f32 %v1598_v49, %v1594_v36  ;;  %v1764_v59 = vadd.f32 %v1762_v57, %v1758_v27  ;;  %v1765_v37 = vadd.f32 %v1763_v41, %v1759_v34 }
 0x2b7   :  { %v1923_v40 = vadd.f32 %v1921_v25, %v1917_v0  ;;  %v1607_v35 = vadd.f32 %v4892_v20, %v1601_v58  ;;  %v6630_v52 = vmov %v6627_v21  ;;  %v6631_v6 = vstv %s6625_s18 }
 0x2b8   :  { %v1629_v30 = vmul.f32 %v6630_v52, %v1483_v8  ;;  %v1792_v56 = vmul.f32 %v6631_v6, %v1480_v46  ;;  %v1928_v19 = vadd.f32 %v1926_v24, %v1922_v9  ;;  %v1606_v21 = vadd.f32 %v4889_v12, %v1600_v45 }
 0x2b9   :  { %v1770_v11 = vadd.f32 %v4902_v2, %v1764_v59  ;;  %v1771_v48 = vadd.f32 %v4895_v31, %v1765_v37  ;;  %v1929_v49 = vadd.f32 %v5266_v63, %v1923_v40  ;;  %v1613_v27 = vadd.f32 %v1611_v33, %v1607_v35 }
 0x2ba   :  { %v1934_v34 = vadd.f32 %v4955_v55, %v1928_v19  ;;  %v6632_v41 = vstv %s6605_s14  ;;  %v6633_v57 = vstv %s6629_s23  ;;  %v1612_v39 = vadd.f32 %v1610_v4, %v1606_v21  ;;  %s6637_s14 = sld [smem:[#allocation30_spill]] }
 0x2bb   :  { %v1938_v20 = vmul.f32 %v6632_v41, %v1446_v62  ;;  %v1944_v0 = vmul.f32 %v6633_v57, %v1468_v14  ;;  %v1776_v9 = vadd.f32 %v1774_v28, %v1770_v11  ;;  %v1777_v24 = vadd.f32 %v1775_v22, %v1771_v48  ;;  %v1485_v14 = vpop.permute.xlu0 %1484 }
 0x2bc   :  { %v1935_v12 = vadd.f32 %v4960_v54, %v1929_v49  ;;  %v1619_v2 = vadd.f32 %v1617_v47, %v1613_v27  ;;  %v6635_v31 = vmov %v6633_v57  ;;  %v1489_v33 = vsel %vm3133_vm5, %v1487_v44, 0.0 }
 0x2bd   :  { %v1940_v16 = vadd.f32 %v1938_v20, %v1934_v34  ;;  %v1945_v63 = vmul.f32 %v6635_v31, %v5300_v61  ;;  %v1618_v55 = vadd.f32 %v1616_v26, %v1612_v39  ;;  %v1782_v3 = vadd.f32 %v1780_v50, %v1776_v9 }
 0x2be   :  { %v1783_v62 = vadd.f32 %v1781_v51, %v1777_v24  ;;  %v1941_v15 = vadd.f32 %v1939_v10, %v1935_v12  ;;  %v1625_v28 = vadd.f32 %v4993_v43, %v1619_v2  ;;  %v6636_v22 = vmov %v6631_v6 }
 0x2bf   :  { %v1793_v54 = vmul.f32 %v6636_v22, %v1483_v8  ;;  %v1946_v4 = vadd.f32 %v1944_v0, %v1940_v16  ;;  %v6638_v47 = vstv %s6634_s2  ;;  %v1624_v61 = vadd.f32 %v4950_v5, %v1618_v55  ;;  %v1491_v2 = vpop.permute.xlu0 %1490 }
 0x2c0   :  { %v1956_v36 = vmul.f32 %v6638_v47, %v1480_v46  ;;  %v1788_v32 = vadd.f32 %v4974_v38, %v1782_v3  ;;  %v1789_v50 = vadd.f32 %v4997_v42, %v1783_v62  ;;  %v1947_v51 = vadd.f32 %v1945_v63, %v1941_v15 }
 0x2c1   :  { %v1952_v10 = vadd.f32 %v4979_v60, %v1946_v4  ;;  %v1497_v26 = vrot.slane %v1489_v33, 7  ;;  %v1515_v25 = vrot.slane %v1489_v33, 1  ;;  %v1488_v43 = vsel %vm3133_vm5, %v1485_v14, 0.0 }
 0x2c2   :  { %v1953_v58 = vadd.f32 %v5001_v23, %v1947_v51  ;;  %v6639_v1 = vmov %v6638_v47  ;;  %v6640_v46 = vstv %s4925_s1  ;;  %v6641_v5 = vstv %s4933_s28  ;;  %v1493_v23 = vpop.permute.xlu1 %1492  ;;  %s6653_s1 = sld [smem:[#allocation87_spill]]  ;;  %v6657_v51 = vld [vmem:[#allocation68_spill] sm:$0xff]  ;;  %s6691_s28 = sld [smem:[#allocation47_spill]] }
 0x2c3   :  { %v1957_v45 = vmul.f32 %v6639_v1, %v1483_v8  ;;  %v5392_v59 = vmul.f32 %v6640_v46, %v1489_v33  ;;  %v5396_v38 = vmul.f32 %v6641_v5, %v1489_v33  ;;  %v1631_v42 = vadd.f32 %v1629_v30, %v1625_v28  ;;  %v6659_v1 = vld [vmem:[#allocation70_spill] sm:$0xff] }
 0x2c4   :  { %v6643_v37 = vstv %s6637_s14  ;;  %v1496_v40 = vrot.slane %v1488_v43, 7  ;;  %v1514_v35 = vrot.slane %v1488_v43, 1  ;;  %v1630_v52 = vadd.f32 %v1628_v53, %v1624_v61 }
 0x2c5   :  { %v5400_v60 = vmul.f32 %v6643_v37, %v1489_v33  ;;  %v1794_v8 = vadd.f32 %v1792_v56, %v1788_v32  ;;  %v1795_v6 = vadd.f32 %v1793_v54, %v1789_v50  ;;  %v1958_v19 = vadd.f32 %v1956_v36, %v1952_v10 }
 0x2c6   :  { %v1498_v21 = vsel %vm158_vm0, %v1496_v40, %v1497_v26  ;;  %v1499_v30 = vsel %vm158_vm0, %v1497_v26, %v1496_v40  ;;  %v1517_v11 = vsel %vm177_vm2, %v1515_v25, %v1514_v35  ;;  %v6645_v48 = vmov %v6640_v46 }
 0x2c7   :  { %v1652_v49 = vmul.f32 %v6645_v48, %v1488_v43  ;;  %v1959_v44 = vadd.f32 %v1957_v45, %v1953_v58  ;;  %v1500_v27 = vsel %vm140_vm1, %v1499_v30, 0.0  ;;  %v6646_v53 = vstv %s6642_s26 }
 0x2c8   :  { %v1635_v56 = vmul.f32 %v6646_v53, %v1498_v21  ;;  %v1495_v34 = vsel %vm3106_vm4, %v1493_v23, 0.0  ;;  %v6648_v41 = vmov %v6646_v53  ;;  %v6649_v57 = vstv %s6644_s21 }
 0x2c9   :  { %v1634_v20 = vmul.f32 %v6648_v41, %v1500_v27  ;;  %v1798_v0 = vmul.f32 %v6649_v57, %v1500_v27  ;;  %v6650_v39 = vmov %v6641_v5  ;;  %v6651_v24 = vmov %v6643_v37 }
 0x2ca   :  { %v1816_v9 = vmul.f32 %v6650_v39, %v1488_v43  ;;  %v5424_v12 = vmul.f32 %v6651_v24, %v1488_v43  ;;  %v5428_v16 = vsel %vm177_vm2, %v1514_v35, %v1515_v25  ;;  %v5432_v31 = vsel %vm143_vm3, %v1517_v11, 0.0  ;;  %v6664_v11 = vld [vmem:[#allocation63_spill] sm:$0xff] }
 0x2cb   :  { %v1637_v63 = vadd.f32 %v1635_v56, %v1631_v42  ;;  %v6652_v33 = vmov %v6649_v57  ;;  %v1636_v3 = vadd.f32 %v1634_v20, %v1630_v52  ;;  %v1800_v62 = vadd.f32 %v1798_v0, %v1794_v8 }
 0x2cc   :  { %v1799_v55 = vmul.f32 %v6652_v33, %v1498_v21  ;;  %v1509_v15 = vrot.slane %v1495_v34, 7  ;;  %v1527_v14 = vrot.slane %v1495_v34, 1  ;;  %v6655_v22 = vstv %s6647_s29 }
 0x2cd   :  { %v1962_v54 = vmul.f32 %v6655_v22, %v1500_v27  ;;  %v6656_v4 = vmov %v6655_v22  ;;  %v1494_v36 = vsel %vm3106_vm4, %v1491_v2, 0.0  ;;  %v1642_v50 = vadd.f32 %v5042_v18, %v1636_v3 }
 0x2ce   :  { %v1801_v28 = vadd.f32 %v1799_v55, %v1795_v6  ;;  %v1963_v47 = vmul.f32 %v6656_v4, %v1498_v21  ;;  %v1508_v61 = vrot.slane %v1494_v36, 7  ;;  %v1526_v32 = vrot.slane %v1494_v36, 1 }
 0x2cf   :  { %v1643_v10 = vadd.f32 %v6657_v51, %v1637_v63  ;;  %v1964_v26 = vadd.f32 %v1962_v54, %v1958_v19  ;;  %v6658_v43 = vstv %s6653_s1  ;;  %v1806_v45 = vadd.f32 %v6659_v1, %v1800_v62  ;;  %v6675_v51 = vld [vmem:[#allocation66_spill] sm:$0xff] }
 0x2d0   :  { %v1965_v25 = vadd.f32 %v1963_v47, %v1959_v44  ;;  %v1665_v58 = vmul.f32 %v6658_v43, %v1495_v34  ;;  %v6660_v46 = vstv %s6654_s10  ;;  %v1510_v42 = vsel %vm158_vm0, %v1508_v61, %v1509_v15  ;;  %v6673_v47 = vld [vmem:[#allocation71_spill] sm:$0xff] }
 0x2d1   :  { %v1829_v5 = vmul.f32 %v6660_v46, %v1495_v34  ;;  %v1511_v18 = vsel %vm158_vm0, %v1509_v15, %v1508_v61  ;;  %v1529_v37 = vsel %vm177_vm2, %v1527_v14, %v1526_v32  ;;  %v6661_v40 = vstv %s4983_s20 }
 0x2d2   :  { %v1993_v35 = vmul.f32 %v6661_v40, %v1495_v34  ;;  %v1512_v23 = vsel %vm140_vm1, %v1511_v18, 0.0  ;;  %v1528_v52 = vsel %vm177_vm2, %v1526_v32, %v1527_v14  ;;  %v6662_v8 = vstv %s5003_s16  ;;  %v6678_v18 = vld [vmem:[#allocation25_spill] sm:$0xff]  ;;  %v6679_v40 = vld [vmem:[#allocation73_spill] sm:$0xff]  ;;  %s6699_s16 = sld [smem:[#allocation38_spill]] }
 0x2d3   :  { %v1647_v6 = vmul.f32 %v6662_v8, %v1510_v42  ;;  %v1531_v19 = vsel %vm143_vm3, %v1529_v37, 0.0  ;;  %v6663_v21 = vmov %v6662_v8  ;;  %v1807_v48 = vadd.f32 %v6664_v11, %v1801_v28  ;;  %v6672_v28 = vld [vmem:[#allocation26_spill] sm:$0xff] }
 0x2d4   :  { %v1646_v30 = vmul.f32 %v6663_v21, %v1512_v23  ;;  %v6665_v44 = vstv %s6577_s7  ;;  %v6666_v56 = vmov %v6658_v43  ;;  %v6667_v41 = vstv %s5005_s4  ;;  %s6685_s4 = sld [smem:[#allocation42_spill]] }
 0x2d5   :  { %v1810_v27 = vmul.f32 %v6665_v44, %v1512_v23  ;;  %v1649_v53 = vadd.f32 %v1647_v6, %v1643_v10  ;;  %v1664_v34 = vmul.f32 %v6666_v56, %v1494_v36  ;;  %v1670_v20 = vmul.f32 %v6667_v41, %v5428_v16  ;;  %v6681_v6 = vld [vmem:[#allocation76_spill] sm:$0xff] }
 0x2d6   :  { %v6668_v57 = vmov %v6665_v44  ;;  %v1648_v39 = vadd.f32 %v1646_v30, %v1642_v50  ;;  %v6669_v24 = vmov %v6667_v41  ;;  %v6670_v63 = vstv %s5012_s9  ;;  %s6712_s9 = sld [smem:[#allocation27_spill]] }
 0x2d7   :  { %v1811_v0 = vmul.f32 %v6668_v57, %v1510_v42  ;;  %v1671_v2 = vmul.f32 %v6669_v24, %v5432_v31  ;;  %v1682_v33 = vmul.f32 %v6670_v63, %v1528_v52  ;;  %v1812_v55 = vadd.f32 %v1810_v27, %v1806_v45 }
 0x2d8   :  { %v1655_v3 = vadd.f32 %v5392_v59, %v1649_v53  ;;  %v6671_v62 = vmov %v6670_v63  ;;  %v1970_v22 = vadd.f32 %v6672_v28, %v1964_v26  ;;  %v1654_v54 = vadd.f32 %v1652_v49, %v1648_v39  ;;  %v1535_v53 = vpop.permute.xlu1 %1534  ;;  %v6686_v63 = vld [vmem:[#allocation65_spill] sm:$0xff] }
 0x2d9   :  { %v1683_v15 = vmul.f32 %v6671_v62, %v1531_v19  ;;  %v1813_v14 = vadd.f32 %v1811_v0, %v1807_v48  ;;  %v1818_v4 = vadd.f32 %v1816_v9, %v1812_v55  ;;  %v1971_v61 = vadd.f32 %v6673_v47, %v1965_v25  ;;  %v6688_v62 = vld [vmem:[#allocation62_spill] sm:$0xff]  ;;  %v6689_v28 = vld [vmem:[#allocation74_spill] sm:$0xff] }
 0x2da   :  { %v6674_v32 = vstv %s5058_s30  ;;  %v1661_v10 = vadd.f32 %v6675_v51, %v1655_v3  ;;  %v6676_v1 = vmov %v6660_v46  ;;  %v1660_v37 = vadd.f32 %v6678_v18, %v1654_v54  ;;  %v6692_v54 = vld [vmem:[#allocation61_spill] sm:$0xff]  ;;  %s6750_s30 = sld [smem:[#allocation29_spill]] }
 0x2db   :  { %v1974_v50 = vmul.f32 %v6674_v32, %v1512_v23  ;;  %v1819_v43 = vadd.f32 %v5396_v38, %v1813_v14  ;;  %v1828_v45 = vmul.f32 %v6676_v1, %v1494_v36  ;;  %v6677_v59 = vmov %v6674_v32  ;;  %v1533_v32 = vpop.permute.xlu0 %1532 }
 0x2dc   :  { %v1975_v46 = vmul.f32 %v6677_v59, %v1510_v42  ;;  %v1824_v26 = vadd.f32 %v6679_v40, %v1818_v4  ;;  %v6680_v49 = vstv %s5036_s3  ;;  %v1667_v8 = vadd.f32 %v1665_v58, %v1661_v10  ;;  %v1541_v17 = vpop.permute.xlu1 %1540  ;;  %s5641_s3 = sld [smem:[#allocation13 + $0x2]] }
 0x2dd   :  { %v1834_v9 = vmul.f32 %v6680_v49, %v5428_v16  ;;  %v1976_v25 = vadd.f32 %v1974_v50, %v1970_v22  ;;  %v1825_v23 = vadd.f32 %v6681_v6, %v1819_v43  ;;  %v6682_v21 = vmov %v6680_v49  ;;  %v6694_v50 = vld [vmem:[#allocation60_spill] sm:$0xff] }
 0x2de   :  { %v1835_v38 = vmul.f32 %v6682_v21, %v5432_v31  ;;  %v1977_v30 = vadd.f32 %v1975_v46, %v1971_v61  ;;  %v1666_v11 = vadd.f32 %v1664_v34, %v1660_v37  ;;  %v1830_v48 = vadd.f32 %v1828_v45, %v1824_v26  ;;  %v6701_v6 = vld [vmem:[#allocation77_spill] sm:$0xff] }
 0x2df   :  { %v6683_v42 = vstv %s5038_s19  ;;  %v1982_v27 = vadd.f32 %v5424_v12, %v1976_v25  ;;  %v1673_v56 = vadd.f32 %v1671_v2, %v1667_v8  ;;  %v1831_v41 = vadd.f32 %v1829_v5, %v1825_v23  ;;  %v6690_v2 = vld [vmem:[#allocation58_spill] sm:$0xff]  ;;  %v6700_v25 = vld [vmem:[#allocation72_spill] sm:$0xff]  ;;  %s6717_s19 = sld [smem:[#allocation48_spill]] }
 0x2e0   :  { %v1846_v44 = vmul.f32 %v6683_v42, %v1528_v52  ;;  %v6684_v57 = vmov %v6683_v42  ;;  %v1983_v58 = vadd.f32 %v5400_v60, %v1977_v30  ;;  %v1672_v39 = vadd.f32 %v1670_v20, %v1666_v11 }
 0x2e1   :  { %v1847_v0 = vmul.f32 %v6684_v57, %v1531_v19  ;;  %v1836_v24 = vadd.f32 %v1834_v9, %v1830_v48  ;;  %v1988_v55 = vadd.f32 %v6686_v63, %v1982_v27  ;;  %v6687_v34 = vstv %s4983_s20  ;;  %s6711_s20 = sld [smem:[#allocation46_spill]] }
 0x2e2   :  { %v1992_v3 = vmul.f32 %v6687_v34, %v1494_v36  ;;  %v1679_v14 = vadd.f32 %v6688_v62, %v1673_v56  ;;  %v1837_v12 = vadd.f32 %v1835_v38, %v1831_v41  ;;  %v1989_v22 = vadd.f32 %v6689_v28, %v1983_v58 }
 0x2e3   :  { %v1537_v5 = vsel %vm3133_vm5, %v1535_v53, 0.0  ;;  %v1678_v60 = vadd.f32 %v6690_v2, %v1672_v39  ;;  %v1842_v20 = vadd.f32 %v6692_v54, %v1836_v24  ;;  %v6693_v47 = vstv %s5060_s12  ;;  %v1539_v2 = vpop.permute.xlu0 %1538  ;;  %s6753_s12 = sld [smem:[#allocation99_spill]] }
 0x2e4   :  { %v1994_v4 = vadd.f32 %v1992_v3, %v1988_v55  ;;  %v1998_v61 = vmul.f32 %v6693_v47, %v5428_v16  ;;  %v1843_v36 = vadd.f32 %v6694_v50, %v1837_v12  ;;  %v1995_v51 = vadd.f32 %v1993_v35, %v1989_v22 }
 0x2e5   :  { %v6695_v10 = vmov %v6693_v47  ;;  %v6696_v1 = vstv %s6685_s4  ;;  %v1545_v37 = vrot.slane %v1537_v5, 7  ;;  %v1563_v40 = vrot.slane %v1537_v5, 1 }
 0x2e6   :  { %v1999_v43 = vmul.f32 %v6695_v10, %v5432_v31  ;;  %v2010_v45 = vmul.f32 %v6696_v1, %v1528_v52  ;;  %v2000_v59 = vadd.f32 %v1998_v61, %v1994_v4  ;;  %v6697_v46 = vmov %v6696_v1  ;;  %v6715_v1 = vld [vmem:[#allocation75_spill] sm:$0xff] }
 0x2e7   :  { %v2011_v18 = vmul.f32 %v6697_v46, %v1531_v19  ;;  %v1685_v26 = vadd.f32 %v1683_v15, %v1679_v14  ;;  %v6698_v16 = vstv %s6691_s28  ;;  %v1536_v35 = vsel %vm3133_vm5, %v1533_v32, 0.0 }
 0x2e8   :  { %v2001_v49 = vadd.f32 %v1999_v43, %v1995_v51  ;;  %v5532_v9 = vmul.f32 %v6698_v16, %v1537_v5  ;;  %v1684_v31 = vadd.f32 %v1682_v33, %v1678_v60  ;;  %v1848_v52 = vadd.f32 %v1846_v44, %v1842_v20 }
 0x2e9   :  { %v2006_v19 = vadd.f32 %v6700_v25, %v2000_v59  ;;  %v1544_v8 = vrot.slane %v1536_v35, 7  ;;  %v1849_v15 = vadd.f32 %v1847_v0, %v1843_v36  ;;  %v6702_v21 = vstv %s5103_s5  ;;  %v6716_v59 = vld [vmem:[#allocation91_spill] sm:$0xff]  ;;  %v6721_v25 = vld [vmem:[#allocation82_spill] sm:$0xff]  ;;  %s2663_s5 = smov [#allocation15]  }
 0x2ea   :  { %v2007_v23 = vadd.f32 %v6701_v6, %v2001_v49  ;;  %v5540_v38 = vmul.f32 %v6702_v21, %v1537_v5  ;;  %v1562_v30 = vrot.slane %v1536_v35, 1  ;;  %v6703_v11 = vstv %s5105_s8  ;;  %s2167_s8 = sshll.u32 %s2663_s5, 4  ;;  %s2168_s8 = int_to_ptr.vmem [resolvable:$true] %s2167_s8 }
 0x2eb   :  { %v5544_v48 = vmul.f32 %v6703_v11, %v1537_v5  ;;  %v1546_v33 = vsel %vm158_vm0, %v1544_v8, %v1545_v37  ;;  %v1547_v42 = vsel %vm158_vm0, %v1545_v37, %v1544_v8  ;;  %v6704_v44 = vmov %v6698_v16  ;;  %p2599_p11 = scmp.lt.s32.totalorder %s2168_s8, %s2168_s8 }
 0x2ec   :  { %v1706_v27 = vmul.f32 %v6704_v44, %v1536_v35  ;;  %v1548_v53 = vsel %vm140_vm1, %v1547_v42, 0.0  ;;  %v6705_v56 = vstv %s6699_s16  ;;  %v6706_v57 = vmov %v6702_v21 }
 0x2ed   :  { %v1689_v41 = vmul.f32 %v6705_v56, %v1546_v33  ;;  %v1870_v0 = vmul.f32 %v6706_v57, %v1536_v35  ;;  %v6707_v58 = vmov %v6703_v11  ;;  %v6708_v24 = vmov %v6705_v56 }
 0x2ee   :  { %v5560_v39 = vmul.f32 %v6707_v58, %v1536_v35  ;;  %v1688_v63 = vmul.f32 %v6708_v24, %v1548_v53  ;;  %v6709_v55 = vstv %s5122_s11  ;;  %v1543_v14 = vsel %vm3106_vm4, %v1541_v17, 0.0  ;;  %s2594_s11 = scalar_lea.vmem %s2168_s8, 768 }
 0x2ef   :  { %v1852_v34 = vmul.f32 %v6709_v55, %v1548_v53  ;;  %v6710_v3 = vmov %v6709_v55  ;;  %v2012_v12 = vadd.f32 %v2010_v45, %v2006_v19  ;;  %v2013_v28 = vadd.f32 %v2011_v18, %v2007_v23  ;;  %p2595_p10 = scmp.ne.s32.totalorder %s2168_s8, %s2594_s11  ;;  %p2600_p12 = scmp.lt.s32.totalorder %s2594_s11, %s2594_s11 }
 0x2f0   :  { %v1853_v62 = vmul.f32 %v6710_v3, %v1546_v33  ;;  %v1565_v22 = vsel %vm177_vm2, %v1563_v40, %v1562_v30  ;;  %v1691_v5 = vadd.f32 %v1689_v41, %v1685_v26  ;;  %v5574_v60 = vsel %vm177_vm2, %v1562_v30, %v1563_v40 }
 0x2f1   :  { %v1690_v54 = vadd.f32 %v1688_v63, %v1684_v31  ;;  %v1854_v20 = vadd.f32 %v1852_v34, %v1848_v52  ;;  %v6713_v47 = vstv %s5132_s6  ;;  %v1557_v36 = vrot.slane %v1543_v14, 7  ;;  %p2601_p13 = por %p2600_p12, %p2599_p11 }
 0x2f2   :  { %v1855_v4 = vadd.f32 %v1853_v62, %v1849_v15  ;;  %v2016_v61 = vmul.f32 %v6713_v47, %v1548_v53  ;;  %v6714_v32 = vmov %v6713_v47  ;;  %v1575_v51 = vrot.slane %v1543_v14, 1  ;;  %v6733_v47 = vld [vmem:[#allocation94_spill] sm:$0xff] }
 0x2f3   :  { %v2017_v50 = vmul.f32 %v6714_v32, %v1546_v33  ;;  %v5582_v10 = vsel %vm143_vm3, %v1565_v22, 0.0  ;;  %v1542_v43 = vsel %vm3106_vm4, %v1539_v2, 0.0  ;;  %v1696_v45 = vadd.f32 %v6715_v1, %v1690_v54  ;;  %p2602_p0 = pnand %p2601_p13, %p2595_p10 }
 0x2f4   :  { %v1697_v46 = vadd.f32 %v6716_v59, %v1691_v5  ;;  %v2018_v18 = vadd.f32 %v2016_v61, %v2012_v12  ;;  %v1556_v40 = vrot.slane %v1542_v43, 7  ;;  %v1574_v26 = vrot.slane %v1542_v43, 1 }
 0x2f5   :  { %v2019_v37 = vadd.f32 %v2017_v50, %v2013_v28  ;;  %v6718_v49 = vstv %s6711_s20  ;;  %v6719_v35 = vstv %s6712_s9  ;;  %v1860_v52 = vadd.f32 %v6720_v29, %v1854_v20  ;;  %v6741_v29 = vld [vmem:[#allocation96_spill] sm:$0xff] }
 0x2f6   :  { %v1719_v16 = vmul.f32 %v6718_v49, %v1543_v14  ;;  %v1883_v31 = vmul.f32 %v6719_v35, %v1543_v14  ;;  %v1861_v19 = vadd.f32 %v6721_v25, %v1855_v4  ;;  %v6722_v8 = vstv %s5157_s0  ;;  %v6732_v4 = vld [vmem:[#allocation90_spill] sm:$0xff] }
 0x2f7   :  { %v2047_v15 = vmul.f32 %v6722_v8, %v1543_v14  ;;  %v1558_v6 = vsel %vm158_vm0, %v1556_v40, %v1557_v36  ;;  %v1559_v23 = vsel %vm158_vm0, %v1557_v36, %v1556_v40  ;;  %v1577_v21 = vsel %vm177_vm2, %v1575_v51, %v1574_v26 }
 0x2f8   :  { %v1560_v30 = vsel %vm140_vm1, %v1559_v23, 0.0  ;;  %v5606_v17 = vsel %vm177_vm2, %v1574_v26, %v1575_v51  ;;  %v6723_v11 = vstv %s5189_s17  ;;  %v6724_v42 = vmov %v6718_v49 }
 0x2f9   :  { %v1701_v33 = vmul.f32 %v6723_v11, %v1558_v6  ;;  %v1718_v44 = vmul.f32 %v6724_v42, %v1542_v43  ;;  %v6725_v53 = vmov %v6723_v11  ;;  %v6726_v41 = vstv %s6717_s19 }
 0x2fa   :  { %v1700_v56 = vmul.f32 %v6725_v53, %v1560_v30  ;;  %v1724_v57 = vmul.f32 %v6726_v41, %v5574_v60  ;;  %v6727_v58 = vstv %s5205_s15  ;;  %v1579_v7 = vsel %vm143_vm3, %v1577_v21, 0.0  ;;  %s5639_s15 = sld [smem:[#allocation13 + $0x1]] }
 0x2fb   :  { %v1864_v24 = vmul.f32 %v6727_v58, %v1560_v30  ;;  %v6728_v63 = vmov %v6727_v58  ;;  %v1703_v34 = vadd.f32 %v1701_v33, %v1697_v46  ;;  %v6729_v3 = vmov %v6726_v41  ;;  %v6736_v46 = vld [vmem:[#allocation93_spill] sm:$0xff] }
 0x2fc   :  { %v1865_v55 = vmul.f32 %v6728_v63, %v1558_v6  ;;  %v1725_v62 = vmul.f32 %v6729_v3, %v5582_v10  ;;  %v6730_v14 = vmov %v6719_v35  ;;  %v1702_v28 = vadd.f32 %v1700_v56, %v1696_v45  ;;  %v6740_v35 = vld [vmem:[#allocation88_spill] sm:$0xff] }
 0x2fd   :  { %v1882_v12 = vmul.f32 %v6730_v14, %v1542_v43  ;;  %v6731_v22 = vstv %s5203_s27  ;;  %v1866_v2 = vadd.f32 %v1864_v24, %v1860_v52  ;;  %v1709_v20 = vadd.f32 %v5532_v9, %v1703_v34 }
 0x2fe   :  { %v1736_v5 = vmul.f32 %v6731_v22, %v5606_v17  ;;  %v1867_v54 = vadd.f32 %v1865_v55, %v1861_v19  ;;  %v2024_v13 = vadd.f32 %v6732_v4, %v2018_v18  ;;  %v2025_v61 = vadd.f32 %v6733_v47, %v2019_v37  ;;  %v6756_v4 = vld [vmem:[#allocation92_spill] sm:$0xff] }
 0x2ff   :  { %v6734_v32 = vstv %s5220_s13  ;;  %v1708_v36 = vadd.f32 %v1706_v27, %v1702_v28  ;;  %v1872_v51 = vadd.f32 %v1870_v0, %v1866_v2  ;;  %v1715_v9 = vadd.f32 %v6736_v46, %v1709_v20  ;;  %v6739_v27 = vld [vmem:[#allocation78_spill] sm:$0xff]  ;;  %s6744_s13 = sld [smem:[#allocation98_spill]]  ;;  %v6748_v28 = vld [vmem:[#allocation97_spill] sm:$0xff] }
 0x300   :  { %v2028_v50 = vmul.f32 %v6734_v32, %v1560_v30  ;;  %v1873_v1 = vadd.f32 %v5540_v38, %v1867_v54  ;;  %v6735_v45 = vmov %v6734_v32  ;;  %v6737_v40 = vmov %v6731_v22  ;;  %v6749_v22 = vld [vmem:[#allocation84_spill] sm:$0xff]  ;;  %v6754_v54 = vld [vmem:[#allocation79_spill] sm:$0xff] }
 0x301   :  { %v2029_v59 = vmul.f32 %v6735_v45, %v1558_v6  ;;  %v1737_v18 = vmul.f32 %v6737_v40, %v1579_v7  ;;  %v6738_v37 = vstv %s5176_s25  ;;  %v1714_v0 = vadd.f32 %v6739_v27, %v1708_v36 }
 0x302   :  { %v1888_v26 = vmul.f32 %v6738_v37, %v5574_v60  ;;  %v2030_v49 = vadd.f32 %v2028_v50, %v2024_v13  ;;  %v1878_v38 = vadd.f32 %v6740_v35, %v1872_v51  ;;  %v1879_v52 = vadd.f32 %v6741_v29, %v1873_v1 }
 0x303   :  { %v2031_v25 = vadd.f32 %v2029_v59, %v2025_v61  ;;  %v1721_v19 = vadd.f32 %v1719_v16, %v1715_v9  ;;  %v6742_v8 = vmov %v6738_v37  ;;  %v6743_v23 = vstv %s5218_s24  ;;  %v6746_v16 = vld [vmem:[#allocation89_spill] sm:$0xff] }
 0x304   :  { %v1889_v6 = vmul.f32 %v6742_v8, %v5582_v10  ;;  %v1900_v21 = vmul.f32 %v6743_v23, %v5606_v17  ;;  %v2036_v30 = vadd.f32 %v5560_v39, %v2030_v49  ;;  %v1720_v11 = vadd.f32 %v1718_v44, %v1714_v0 }
 0x305   :  { %v1884_v33 = vadd.f32 %v1882_v12, %v1878_v38  ;;  %v1885_v42 = vadd.f32 %v1883_v31, %v1879_v52  ;;  %v2037_v53 = vadd.f32 %v5544_v48, %v2031_v25  ;;  %v1727_v56 = vadd.f32 %v1725_v62, %v1721_v19  ;;  %v6762_v38 = vld [vmem:[#allocation80_spill] sm:$0xff] }
 0x306   :  { %v6745_v41 = vmov %v6743_v23  ;;  %v2042_v24 = vadd.f32 %v6746_v16, %v2036_v30  ;;  %v6747_v63 = vstv %s5157_s0  ;;  %v1726_v34 = vadd.f32 %v1724_v57, %v1720_v11 }
 0x307   :  { %v1901_v58 = vmul.f32 %v6745_v41, %v1579_v7  ;;  %v2046_v55 = vmul.f32 %v6747_v63, %v1542_v43  ;;  %v1890_v3 = vadd.f32 %v1888_v26, %v1884_v33  ;;  %v1891_v14 = vadd.f32 %v1889_v6, %v1885_v42  ;;  %v6755_v43 = vld [vmem:[#allocation83_spill] sm:$0xff] }
 0x308   :  { %v2043_v39 = vadd.f32 %v6748_v28, %v2037_v53  ;;  %v1733_v44 = vadd.f32 %v6749_v22, %v1727_v56  ;;  %v6751_v48 = vstv %s6744_s13  ;;  %v1732_v20 = vadd.f32 %v6754_v54, %v1726_v34 }
 0x309   :  { %v2048_v31 = vadd.f32 %v2046_v55, %v2042_v24  ;;  %v2052_v62 = vmul.f32 %v6751_v48, %v5574_v60  ;;  %v6752_v12 = vmov %v6751_v48  ;;  %v1896_v57 = vadd.f32 %v6755_v43, %v1890_v3 }
 0x30a   :  { %v2053_v2 = vmul.f32 %v6752_v12, %v5582_v10  ;;  %v1897_v13 = vadd.f32 %v6756_v4, %v1891_v14  ;;  %v2049_v47 = vadd.f32 %v2047_v15, %v2043_v39  ;;  %v1905_v61 = vstv %s5639_s15  ;;  %v6758_v10 = vld [vmem:[#allocation95_spill] sm:$0xff]  ;;  %v2495_v12 = vld [vmem:[#allocation2] sm:$0xff] }
 0x30b   :  { %v2069_v32 = vstv %s5641_s3  ;;  %v1739_v50 = vadd.f32 %v1737_v18, %v1733_v44  ;;  %v2054_v36 = vadd.f32 %v2052_v62, %v2048_v31  ;;  %v1738_v51 = vadd.f32 %v1736_v5, %v1732_v20  ;;  %v2494_v31 = vld [vmem:[#allocation2 + $0x8] sm:$0xff]  ;;  %v2496_v20 = vld [vmem:[#allocation2 + $0x10] sm:$0xff] }
 0x30c   :  { %v1902_v1 = vadd.f32 %v1900_v21, %v1896_v57  ;;  %v1903_v60 = vadd.f32 %v1901_v58, %v1897_v13  ;;  %v2055_v45 = vadd.f32 %v2053_v2, %v2049_v47  ;;  %v6757_v59 = vstv %s6750_s30  ;;  %v2497_v13 = vld [vmem:[#allocation2 + $0x18] sm:$0xff] }
 0x30d   :  { %v1743_v46 = vadd.f32 %v6757_v59, %v1739_v50  ;;  %v2060_v9 = vadd.f32 %v6758_v10, %v2054_v36  ;;  %v6759_v40 = vstv %s6753_s12  ;;  %v6761_v27 = vmov %v6757_v59  ;;  %v2498_v50 = vld [vmem:[#allocation2 + $0x20] sm:$0xff] }
 0x30e   :  { %v2064_v37 = vmul.f32 %v6759_v40, %v5606_v17  ;;  %v6760_v26 = vmov %v6759_v40  ;;  %v1742_v0 = vadd.f32 %v6761_v27, %v1738_v51  ;;  %v1906_v15 = vadd.f32 %v1905_v61, %v1902_v1 }
 0x30f   :  { %v2065_v49 = vmul.f32 %v6760_v26, %v1579_v7  ;;  %v1907_v35 = vadd.f32 %v1905_v61, %v1903_v60  ;;  %v2061_v18 = vadd.f32 %v6762_v38, %v2055_v45  ;;  %v2073_v5 = vsub.f32 0.0, %v1743_v46  ;;  %v2499_v60 = vld [vmem:[#allocation2 + $0x28] sm:$0xff] }
 0x310   :  { %v2066_v29 = vadd.f32 %v2064_v37, %v2060_v9  ;;  %v2072_v25 = vsub.f32 0.0, %v1742_v0  ;;  %v2084_v19 = vsub.f32 0.0, %v1906_v15 }
 0x311   :  { %v2067_v52 = vadd.f32 %v2065_v49, %v2061_v18  ;;  %v2085_v8 = vsub.f32 0.0, %v1907_v35  ;;  %v2076_v23 = vmul.f32 1.442695, %v2073_v5 }
 0x312   :  { %v2070_v6 = vadd.f32 %v2069_v32, %v2066_v29  ;;  %v2074_v30 = vmul.f32 1.442695, %v2072_v25  ;;  %v2086_v11 = vmul.f32 1.442695, %v2084_v19 }
 0x313   :  { %v2071_v21 = vadd.f32 %v2069_v32, %v2067_v52  ;;  %v2088_v17 = vmul.f32 1.442695, %v2085_v8  ;;  %2458 = vpow2.f32 %v2076_v23 }
 0x314   :  { %v2096_v7 = vsub.f32 0.0, %v2070_v6  ;;  %2460 = vpow2.f32 %v2074_v30 }
 0x315   :  { %v2097_v33 = vsub.f32 0.0, %v2071_v21  ;;  %2462 = vpow2.f32 %v2086_v11 }
 0x316   :  { %v2098_v42 = vmul.f32 1.442695, %v2096_v7  ;;  %2464 = vpow2.f32 %v2088_v17 }
 0x317   :  { %v2100_v53 = vmul.f32 1.442695, %v2097_v33 }
 0x318   :  { %2466 = vpow2.f32 %v2098_v42 }
 0x319   :  { %2468 = vpow2.f32 %v2100_v53 }
 0x31d   :  { %v2459_v56 = vpop.eup %2458 }
 0x31e   :  { %v2461_v41 = vpop.eup %2460  ;;  %v2079_v58 = vadd.f32 1.0, %v2459_v56 }
 0x31f   :  { %v2463_v16 = vpop.eup %2462  ;;  %v2078_v24 = vadd.f32 1.0, %v2461_v41 }
 0x320   :  { %v2465_v63 = vpop.eup %2464  ;;  %2470 = vrcp.f32 %v2079_v58  ;;  %v2090_v55 = vadd.f32 1.0, %v2463_v16 }
 0x321   :  { %2472 = vrcp.f32 %v2078_v24  ;;  %v2091_v3 = vadd.f32 1.0, %v2465_v63 }
 0x322   :  { %v2467_v34 = vpop.eup %2466  ;;  %2474 = vrcp.f32 %v2090_v55 }
 0x323   :  { %v2469_v14 = vpop.eup %2468  ;;  %v2102_v28 = vadd.f32 1.0, %v2467_v34  ;;  %2476 = vrcp.f32 %v2091_v3 }
 0x324   :  { %v2103_v39 = vadd.f32 1.0, %v2469_v14 }
 0x325   :  { %2478 = vrcp.f32 %v2102_v28 }
 0x326   :  { %2480 = vrcp.f32 %v2103_v39 }
 0x32a   :  { %v2471_v22 = vpop.eup %2470 }
 0x32b   :  { %v2473_v44 = vpop.eup %2472  ;;  %v2109_v48 = vadd.f32 %v2494_v31, %v2471_v22 }
 0x32c   :  { %v2475_v62 = vpop.eup %2474  ;;  %v2108_v2 = vadd.f32 %v2495_v12, %v2473_v44 }
 0x32d   :  { %v2477_v54 = vpop.eup %2476  ;;  %v2110_v43 = vadd.f32 %v2496_v20, %v2475_v62  ;;  %v2115_v57 = vmax.f32 %v2109_v48, 0.0001 }
 0x32e   :  { %v2111_v47 = vadd.f32 %v2497_v13, %v2477_v54  ;;  %v2114_v61 = vmax.f32 %v2108_v2, 0.0001 }
 0x32f   :  { %v2479_v4 = vpop.eup %2478  ;;  %v2116_v51 = vmax.f32 %v2110_v43, 0.0001  ;;  %v2121_v1 = vmin.f32 %v2115_v57, 1.0 }
 0x330   :  { %v2481_v32 = vpop.eup %2480  ;;  %v2112_v36 = vadd.f32 %v2498_v50, %v2479_v4  ;;  %v2117_v59 = vmax.f32 %v2111_v47, 0.0001  ;;  %v2120_v46 = vmin.f32 %v2114_v61, 1.0 }
 0x331   :  { %v2113_v45 = vadd.f32 %v2499_v60, %v2481_v32  ;;  %v2122_v9 = vmin.f32 %v2116_v51, 1.0  ;;  %2127 = vst [vmem:[#allocation15 + $0x8] sm:$0xff] %v2121_v1  ;;  %2482 = vrcp.f32 %v2121_v1 }
 0x332   :  { %v2118_v10 = vmax.f32 %v2112_v36, 0.0001  ;;  %v2123_v37 = vmin.f32 %v2117_v59, 1.0  ;;  %2126 = vst [vmem:[#allocation15] sm:$0xff] %v2120_v46  ;;  %2484 = vrcp.f32 %v2120_v46 }
 0x333   :  { %v2119_v40 = vmax.f32 %v2113_v45, 0.0001  ;;  %2128 = vst [vmem:[#allocation15 + $0x10] sm:$0xff] %v2122_v9  ;;  %2486 = vrcp.f32 %v2122_v9 }
 0x334   :  { %v2124_v26 = vmin.f32 %v2118_v10, 1.0  ;;  %2129 = vst [vmem:[#allocation15 + $0x18] sm:$0xff] %v2123_v37  ;;  %2488 = vrcp.f32 %v2123_v37 }
 0x335   :  { %v2125_v49 = vmin.f32 %v2119_v40, 1.0 }
 0x336   :  { %2130 = vst [vmem:[#allocation15 + $0x20] sm:$0xff] %v2124_v26  ;;  %2490 = vrcp.f32 %v2124_v26 }
 0x337   :  { %2131 = vst [vmem:[#allocation15 + $0x28] sm:$0xff] %v2125_v49  ;;  %2492 = vrcp.f32 %v2125_v49 }
 0x338   :  { %2605 = shalt.err (!%p2602_p0)
}
 0x339   :  { %s6763_s25 = sld [smem:[#allocation100_spill]] }
 0x33f   :  { %s2606_s17 = scalar_lea.hbm %s6763_s25, 768 }
 0x340   :  { %p2607_p1 = scmp.ne.s32.totalorder %s6763_s25, %s2606_s17  ;;  %p2610_p2 = scmp.lt.u32.totalorder %s2606_s17, %s6763_s25 }
 0x342   :  { %p2612_p3 = pnand %p2610_p2, %p2607_p1 }
 0x344   :  { %2615 = shalt.err (!%p2612_p3)
}
 0x345   :  { %s6764_s18 = smov 8   ;;  %s6765_s23 = smov 128   ;;  %v2483_v27 = vpop.eup %2482 }
 0x346   :  { %2173 = dma.vmem_to_hbm [thread:$0]  %s2168_s8, 768, %s6763_s25, [#allocation4], %s6765_s23, %s6765_s23, %s6764_s18   ;;  %v2485_v0 = vpop.eup %2484  ;;  %v2135_v15 = vmul.f32 %v2494_v31, %v2483_v27 }
 0x347   :  { %v2487_v35 = vpop.eup %2486  ;;  %v2133_v38 = vmul.f32 %v2495_v12, %v2485_v0  ;;  %s2664_s26 = smov [#allocation16]  }
 0x348   :  { %v2489_v18 = vpop.eup %2488  ;;  %v2137_v29 = vmul.f32 %v2496_v20, %v2487_v35  ;;  %v2145_v5 = vmax.f32 %v2135_v15, 0.0  ;;  %s2179_s21 = sshll.u32 %s2664_s26, 4  ;;  %s2180_s21 = int_to_ptr.vmem [resolvable:$true] %s2179_s21 }
 0x349   :  { %v2491_v52 = vpop.eup %2490  ;;  %v2139_v25 = vmul.f32 %v2497_v13, %v2489_v18  ;;  %v2144_v19 = vmax.f32 %v2133_v38, 0.0  ;;  %s2616_s29 = scalar_lea.vmem %s2180_s21, 768  ;;  %p2621_p5 = scmp.lt.s32.totalorder %s2180_s21, %s2180_s21 }
 0x34a   :  { %v2493_v8 = vpop.eup %2492  ;;  %v2141_v6 = vmul.f32 %v2498_v50, %v2491_v52  ;;  %v2146_v23 = vmax.f32 %v2137_v29, 0.0  ;;  %v2151_v21 = vmin.f32 %v2145_v5, 1.0  ;;  %p2617_p4 = scmp.ne.s32.totalorder %s2180_s21, %s2616_s29  ;;  %p2622_p6 = scmp.lt.s32.totalorder %s2616_s29, %s2616_s29 }
 0x34b   :  { %v2143_v30 = vmul.f32 %v2499_v60, %v2493_v8  ;;  %v2147_v11 = vmax.f32 %v2139_v25, 0.0  ;;  %v2150_v17 = vmin.f32 %v2144_v19, 1.0 }
 0x34c   :  { %v2148_v7 = vmax.f32 %v2141_v6, 0.0  ;;  %v2152_v33 = vmin.f32 %v2146_v23, 1.0  ;;  %2157 = vst [vmem:[#allocation16 + $0x8] sm:$0xff] %v2151_v21  ;;  %p2623_p7 = por %p2622_p6, %p2621_p5 }
 0x34d   :  { %v2149_v42 = vmax.f32 %v2143_v30, 0.0  ;;  %v2153_v53 = vmin.f32 %v2147_v11, 1.0  ;;  %2156 = vst [vmem:[#allocation16] sm:$0xff] %v2150_v17 }
 0x34e   :  { %v2154_v56 = vmin.f32 %v2148_v7, 1.0  ;;  %2158 = vst [vmem:[#allocation16 + $0x10] sm:$0xff] %v2152_v33  ;;  %p2624_p8 = pnand %p2623_p7, %p2617_p4 }
 0x34f   :  { %v2155_v41 = vmin.f32 %v2149_v42, 1.0  ;;  %2159 = vst [vmem:[#allocation16 + $0x18] sm:$0xff] %v2153_v53 }
 0x350   :  { %2160 = vst [vmem:[#allocation16 + $0x20] sm:$0xff] %v2154_v56 }
 0x351   :  { %2161 = vst [vmem:[#allocation16 + $0x28] sm:$0xff] %v2155_v41 }
 0x352   :  { %2627 = shalt.err (!%p2624_p8)
}
 0x353   :  { %s6766_s4 = sld [smem:[#allocation101_spill]] }
 0x359   :  { %s2628_s28 = scalar_lea.hbm %s6766_s4, 768 }
 0x35a   :  { %p2629_p9 = scmp.ne.s32.totalorder %s6766_s4, %s2628_s28  ;;  %p2632_p10 = scmp.lt.u32.totalorder %s2628_s28, %s6766_s4 }
 0x35c   :  { %p2634_p11 = pnand %p2632_p10, %p2629_p9 }
 0x35e   :  { %2637 = shalt.err (!%p2634_p11)
}
 0x35f   :  { %2185 = dma.vmem_to_hbm [thread:$0]  %s2180_s21, 768, %s6766_s4, [#allocation17], %s6765_s23, %s6765_s23, %s6764_s18  }
 0x360   :  { %2648 = dma.done.wait [#allocation4], 768  }
 0x361   :  { %2649 = vsyncadd [#allocation4], 4294966528 }
 0x362   :  { %2650 = dma.done.wait [#allocation17], 768  }
 0x363   :  { %2651 = vsyncadd [#allocation17], 4294966528 }
 0x364   :  { %2192 = vsyncpa [#allocation3], 1 }
 0x365   :  { %2193 = vsyncpa [#allocation4], 1 }
 0x366   :  { %2194 = vsyncpa [#allocation17], 1 }
 0x367   :  { %2195 = vsyncpa [#allocation5], 1 }
 0x368   :  { %2196 = vsyncpa [#allocation8], 1 }
 0x369   :  { %2197 = vsyncpa [#allocation11], 1 }
 0x36a   :  { %2198 = vsyncpa [#allocation14], 1 }

</bundles_post_ra>
